<compile_context>
chip_gen: v7x
topology: tpu7x:2x2x1
jax: 0.10.0
libtpu: 0.0.40
codegen_flags: <defaults>
</compile_context>

<pallas_src>
import functools

import jax
import jax.numpy as jnp
from jax.experimental import pallas as pl
from jax.experimental.pallas import tpu as pltpu

BN_EPS = 1e-5
LANE = 128   # lane width: pad feature/node axes to multiples of this
SUB = 8      # sublane width: pad small leading axes (graph count) to multiples of this


def _round_up(x, m):
    return ((x + m - 1) // m) * m


# ------------------------------ Pallas kernel ------------------------------ #
def _gin_fused_kernel(adj_ref, x_ref, pool_ref,
                      w1_ref, s1_ref, t1_ref,
                      w2_ref, s2_ref, t2_ref,
                      wfc1_ref, bfc1_ref, wfc2_ref, bfc2_ref,
                      out_ref, *, num_layers):
    """Entire GIN forward, VMEM-resident. All matmuls on the MXU with f32 accumulation;
    folded-BN affine (+ReLU) epilogues on the VPU. Layer loop is statically unrolled."""
    x = x_ref[...]          # (NP, DP) padded node features
    adj = adj_ref[...]      # (NP, NP) dense (A + I), zero-padded

    for l in range(num_layers):  # static unroll: weights indexed with static l (zero-cost slices)
        # neighbor add-aggregation + self term: (A + I) @ X
        agg = jnp.dot(adj, x, preferred_element_type=jnp.float32)
        # MLP Linear1 fused with BatchNorm(eval) + ReLU:  relu(s1 * (agg @ W1) + shift1)
        h = jnp.dot(agg, w1_ref[l], preferred_element_type=jnp.float32)
        h = jnp.maximum(h * s1_ref[l] + t1_ref[l], 0.0)
        # MLP Linear2; for non-last layers fused with the inter-layer BatchNorm + ReLU,
        # for the last layer scale=1 / shift=b2 (plain_last: no norm/act after final conv)
        x = jnp.dot(h, w2_ref[l], preferred_element_type=jnp.float32)
        x = x * s2_ref[l] + t2_ref[l]
        if l < num_layers - 1:
            x = jnp.maximum(x, 0.0)

    # global_mean_pool expressed as a dense matmul with the (GP, NP) pooling matrix
    xg = jnp.dot(pool_ref[...], x, preferred_element_type=jnp.float32)
    # fc1 + ReLU
    y = jnp.dot(xg, wfc1_ref[...], preferred_element_type=jnp.float32) + bfc1_ref[...]
    y = jnp.maximum(y, 0.0)
    # fc2 (lane-dense (GP, DP) output -> unmasked vector stores)
    out_ref[...] = jnp.dot(y, wfc2_ref[...], preferred_element_type=jnp.float32) + bfc2_ref[...]


def _full_spec(shape):
    nd = len(shape)
    return pl.BlockSpec(shape, lambda i, _nd=nd: (0,) * _nd)


# -------------------------- parameter construction ------------------------- #
def _bn_fold(gamma, beta, mean, var):
    s = gamma / jnp.sqrt(var + BN_EPS)
    t = beta - s * mean
    return s, t


def init_params(key, input_dim, hidden_dim, output_dim, num_layers=5):
    params = {"convs": [], "outer_bn": []}

    def dense(key, fan_in, fan_out):
        k1, k2 = jax.random.split(key)
        bound = 1.0 / jnp.sqrt(fan_in)
        w = jax.random.uniform(k1, (fan_in, fan_out), jnp.float32, -bound, bound)
        b = jax.random.uniform(k2, (fan_out,), jnp.float32, -bound, bound)
        return w, b

    def bn(key, dim):
        k1, k2, k3, k4 = jax.random.split(key, 4)
        gamma = 1.0 + 0.1 * jax.random.normal(k1, (dim,), jnp.float32)
        beta = 0.1 * jax.random.normal(k2, (dim,), jnp.float32)
        mean = 0.1 * jax.random.normal(k3, (dim,), jnp.float32)
        var = 1.0 + 0.2 * jax.random.uniform(k4, (dim,), jnp.float32)
        return gamma, beta, mean, var

    keys = jax.random.split(key, 4 * num_layers + 2)
    in_dim = input_dim
    for l in range(num_layers):
        k_lin1, k_bn1, k_lin2, k_bn_out = keys[4 * l: 4 * l + 4]
        w1, b1 = dense(k_lin1, in_dim, hidden_dim)           # MLP Linear 1
        s1, t1 = _bn_fold(*bn(k_bn1, hidden_dim))            # MLP BatchNorm (eval)
        w2, b2 = dense(k_lin2, hidden_dim, hidden_dim)       # MLP Linear 2
        params["convs"].append(dict(w1=w1, b1=b1, s1=s1, t1=t1, w2=w2, b2=b2))
        if l < num_layers - 1:
            s_o, t_o = _bn_fold(*bn(k_bn_out, hidden_dim))   # inter-layer BatchNorm (eval)
            params["outer_bn"].append((s_o, t_o))
        in_dim = hidden_dim

    params["fc1"] = dense(keys[-2], hidden_dim, hidden_dim)
    params["fc2"] = dense(keys[-1], hidden_dim, output_dim)
    return params


def pack_params(params, input_dim, hidden_dim, output_dim):
    """Pad all weights lane-dense (DP=round_up(max_dim,128)), fold biases into BN shifts,
    and stack per-layer tensors so the kernel takes a fixed small argument list."""
    num_layers = len(params["convs"])
    DP = _round_up(max(input_dim, hidden_dim, output_dim), LANE)

    def pad_mat(a):
        return jnp.zeros((DP, DP), jnp.float32).at[: a.shape[0], : a.shape[1]].set(a)

    def pad_vec(a):
        return jnp.zeros((1, DP), jnp.float32).at[0, : a.shape[0]].set(a)

    w1 = jnp.stack([pad_mat(cp["w1"]) for cp in params["convs"]])                  # (L, DP, DP)
    w2 = jnp.stack([pad_mat(cp["w2"]) for cp in params["convs"]])                  # (L, DP, DP)
    # Linear1 + BN folded:  y = s1 * (agg @ W1) + (s1*b1 + t1)
    s1 = jnp.stack([pad_vec(cp["s1"]) for cp in params["convs"]])                  # (L, 1, DP)
    t1 = jnp.stack([pad_vec(cp["s1"] * cp["b1"] + cp["t1"]) for cp in params["convs"]])
    # Linear2 (+ outer BN for non-last layers) folded
    s2_list, t2_list = [], []
    for l, cp in enumerate(params["convs"]):
        if l < num_layers - 1:
            s_o, t_o = params["outer_bn"][l]
            s2_list.append(pad_vec(s_o))
            t2_list.append(pad_vec(s_o * cp["b2"] + t_o))
        else:
            s2_list.append(pad_vec(jnp.ones_like(cp["b2"])))
            t2_list.append(pad_vec(cp["b2"]))
    s2 = jnp.stack(s2_list)
    t2 = jnp.stack(t2_list)

    w_fc1, b_fc1 = params["fc1"]
    w_fc2, b_fc2 = params["fc2"]
    packed = dict(w1=w1, s1=s1, t1=t1, w2=w2, s2=s2, t2=t2,
                  wfc1=pad_mat(w_fc1), bfc1=pad_vec(b_fc1),
                  wfc2=pad_mat(w_fc2), bfc2=pad_vec(b_fc2))
    return packed, DP


# -------------------------------- forward ---------------------------------- #
def gin_forward(packed, DP, num_layers, x, edge_index, batch, num_graphs, output_dim):
    n, f = x.shape
    NP = _round_up(n, LANE)          # node axis padded lane-dense (adjacency K dim)
    GP = _round_up(num_graphs, SUB)  # graph axis padded to sublane multiple

    # dense (A + I): A[dst, src] += 1 reproduces PyG add-aggregation at the target node;
    # +I only on real diagonal entries is the (1 + eps)*x self term with eps = 0 (GINConv default).
    src, dst = edge_index[0], edge_index[1]
    adj = jnp.zeros((NP, NP), jnp.float32).at[dst, src].add(1.0)
    idx = jnp.arange(n)
    adj = adj.at[idx, idx].add(1.0)
    # TODO(synk): for large graphs replace the dense (A+I) matmul with a scalar-prefetch /
    # CSR segment-sum kernel and tile the node axis ('parallel') so adj never exceeds the
    # 64 MiB v7x VMEM budget; also cast operands to bf16 with f32 accumulation.

    # mean-pool matrix P[g, i] = 1/|V_g| if batch[i] == g, zero-padded to (GP, NP)
    one_hot = (batch[None, :] == jnp.arange(num_graphs)[:, None]).astype(jnp.float32)
    counts = jnp.maximum(one_hot.sum(axis=1, keepdims=True), 1.0)
    pool = jnp.zeros((GP, NP), jnp.float32).at[:num_graphs, :n].set(one_hot / counts)

    xp = jnp.zeros((NP, DP), jnp.float32).at[:n, :f].set(x)

    ins = (adj, xp, pool,
           packed["w1"], packed["s1"], packed["t1"],
           packed["w2"], packed["s2"], packed["t2"],
           packed["wfc1"], packed["bfc1"], packed["wfc2"], packed["bfc2"])

    kern = functools.partial(_gin_fused_kernel, num_layers=num_layers)
    out = pl.pallas_call(
        kern,
        out_shape=jax.ShapeDtypeStruct((GP, DP), jnp.float32),
        grid=(1,),
        in_specs=[_full_spec(a.shape) for a in ins],
        out_specs=_full_spec((GP, DP)),
        compiler_params=pltpu.CompilerParams(
            dimension_semantics=("arbitrary",)),
    )(*ins)
    return out[:num_graphs, :output_dim]


# ---------------------------- pure-JAX reference ---------------------------- #
def gin_reference(params, x, edge_index, batch, num_graphs):
    n = x.shape[0]
    src, dst = edge_index[0], edge_index[1]
    adj = jnp.zeros((n, n), jnp.float32).at[dst, src].add(1.0) + jnp.eye(n, dtype=jnp.float32)
    num_layers = len(params["convs"])
    mm = functools.partial(jnp.dot, precision="highest")
    for l, cp in enumerate(params["convs"]):
        agg = mm(adj, x)
        h = jnp.maximum((mm(agg, cp["w1"]) + cp["b1"]) * cp["s1"] + cp["t1"], 0.0)
        x = mm(h, cp["w2"]) + cp["b2"]
        if l < num_layers - 1:
            s_o, t_o = params["outer_bn"][l]
            x = jnp.maximum(x * s_o + t_o, 0.0)
    one_hot = (batch[None, :] == jnp.arange(num_graphs)[:, None]).astype(jnp.float32)
    pool = one_hot / jnp.maximum(one_hot.sum(axis=1, keepdims=True), 1.0)
    xg = mm(pool, x)
    w_fc1, b_fc1 = params["fc1"]
    w_fc2, b_fc2 = params["fc2"]
    return mm(jnp.maximum(mm(xg, w_fc1) + b_fc1, 0.0), w_fc2) + b_fc2


# ----------------------------------- main ----------------------------------- #
if __name__ == "__main__":
    INPUT_DIM, HIDDEN_DIM, OUTPUT_DIM = 16, 32, 8
    NUM_LAYERS = 5
    NUM_GRAPHS, NODES_PER_GRAPH = 2, 16
    NUM_NODES = NUM_GRAPHS * NODES_PER_GRAPH
    EDGES_PER_GRAPH = 32

    root = jax.random.PRNGKey(0)
    k_param, k_x, k_src, k_dst = jax.random.split(root, 4)

    params = init_params(k_param, INPUT_DIM, HIDDEN_DIM, OUTPUT_DIM, num_layers=NUM_LAYERS)
    packed, DP = pack_params(params, INPUT_DIM, HIDDEN_DIM, OUTPUT_DIM)

    x = jax.random.normal(k_x, (NUM_NODES, INPUT_DIM), jnp.float32)

    # random intra-graph edges; edge_index layout [2, E] = (source row 0, target row 1)
    src = jax.random.randint(k_src, (NUM_GRAPHS, EDGES_PER_GRAPH), 0, NODES_PER_GRAPH)
    dst = jax.random.randint(k_dst, (NUM_GRAPHS, EDGES_PER_GRAPH), 0, NODES_PER_GRAPH)
    offs = (jnp.arange(NUM_GRAPHS) * NODES_PER_GRAPH)[:, None]
    edge_index = jnp.stack([(src + offs).reshape(-1), (dst + offs).reshape(-1)], axis=0)
    batch = jnp.repeat(jnp.arange(NUM_GRAPHS), NODES_PER_GRAPH)

    out = gin_forward(packed, DP, NUM_LAYERS, x, edge_index, batch, NUM_GRAPHS, OUTPUT_DIM)
    out = jax.block_until_ready(out)

    ref = gin_reference(params, x, edge_index, batch, NUM_GRAPHS)
    assert out.shape == (NUM_GRAPHS, OUTPUT_DIM)
    assert jnp.allclose(out, ref, rtol=2e-3, atol=2e-3), "mismatch vs pure-JAX reference"

    # predict() equivalent: jnp.argmax(out, axis=1)
    print("KERNEL_OK")
</pallas_src>

<mosaic_0001>
module attributes {stable_mosaic.version = 11 : i64} {
  func.func @_gin_fused_kernel(%arg0: i32, %arg1: memref<128x128xf32, #tpu.memory_space<vmem>>, %arg2: memref<128x128xf32, #tpu.memory_space<vmem>>, %arg3: memref<8x128xf32, #tpu.memory_space<vmem>>, %arg4: memref<5x128x128xf32, #tpu.memory_space<vmem>>, %arg5: memref<5x1x128xf32, #tpu.memory_space<vmem>>, %arg6: memref<5x1x128xf32, #tpu.memory_space<vmem>>, %arg7: memref<5x128x128xf32, #tpu.memory_space<vmem>>, %arg8: memref<5x1x128xf32, #tpu.memory_space<vmem>>, %arg9: memref<5x1x128xf32, #tpu.memory_space<vmem>>, %arg10: memref<128x128xf32, #tpu.memory_space<vmem>>, %arg11: memref<1x128xf32, #tpu.memory_space<vmem>>, %arg12: memref<128x128xf32, #tpu.memory_space<vmem>>, %arg13: memref<1x128xf32, #tpu.memory_space<vmem>>, %arg14: memref<8x128xf32, #tpu.memory_space<vmem>>) attributes {dimension_semantics = [#tpu.dimension_semantics<arbitrary>], iteration_bounds = array<i64: 1>, scalar_prefetch = 0 : i64, scratch_operands = 0 : i64, tpu.core_type = #tpu.core_type<tc>, window_params = [{pipeline_mode = #tpu.pipeline_mode<synchronous>, transform_indices = @transform_0, window_bounds = array<i64: 128, 128>}, {pipeline_mode = #tpu.pipeline_mode<synchronous>, transform_indices = @transform_1, window_bounds = array<i64: 128, 128>}, {pipeline_mode = #tpu.pipeline_mode<synchronous>, transform_indices = @transform_2, window_bounds = array<i64: 8, 128>}, {pipeline_mode = #tpu.pipeline_mode<synchronous>, transform_indices = @transform_3, window_bounds = array<i64: 5, 128, 128>}, {pipeline_mode = #tpu.pipeline_mode<synchronous>, transform_indices = @transform_4, window_bounds = array<i64: 5, 1, 128>}, {pipeline_mode = #tpu.pipeline_mode<synchronous>, transform_indices = @transform_5, window_bounds = array<i64: 5, 1, 128>}, {pipeline_mode = #tpu.pipeline_mode<synchronous>, transform_indices = @transform_6, window_bounds = array<i64: 5, 128, 128>}, {pipeline_mode = #tpu.pipeline_mode<synchronous>, transform_indices = @transform_7, window_bounds = array<i64: 5, 1, 128>}, {pipeline_mode = #tpu.pipeline_mode<synchronous>, transform_indices = @transform_8, window_bounds = array<i64: 5, 1, 128>}, {pipeline_mode = #tpu.pipeline_mode<synchronous>, transform_indices = @transform_9, window_bounds = array<i64: 128, 128>}, {pipeline_mode = #tpu.pipeline_mode<synchronous>, transform_indices = @transform_10, window_bounds = array<i64: 1, 128>}, {pipeline_mode = #tpu.pipeline_mode<synchronous>, transform_indices = @transform_11, window_bounds = array<i64: 128, 128>}, {pipeline_mode = #tpu.pipeline_mode<synchronous>, transform_indices = @transform_12, window_bounds = array<i64: 1, 128>}, {pipeline_mode = #tpu.pipeline_mode<synchronous>, transform_indices = @transform_13, window_bounds = array<i64: 8, 128>}]} {
    %c0 = arith.constant 0 : index
    %c0_0 = arith.constant 0 : index
    %0 = vector.load %arg2[%c0, %c0_0] : memref<128x128xf32, #tpu.memory_space<vmem>>, vector<128x128xf32>
    %c0_1 = arith.constant 0 : index
    %c0_2 = arith.constant 0 : index
    %1 = vector.load %arg1[%c0_1, %c0_2] : memref<128x128xf32, #tpu.memory_space<vmem>>, vector<128x128xf32>
    %cst = arith.constant dense<0.000000e+00> : vector<128x128xf32>
    %2 = tpu.matmul %1, %0, %cst {dimension_numbers = #tpu.dot_dimension_numbers<[1], [0], [0], [1], [0, 0, 1, 1], [], []>} : vector<128x128xf32>, vector<128x128xf32>, vector<128x128xf32> -> vector<128x128xf32>
    %c0_3 = arith.constant 0 : index
    %c0_4 = arith.constant 0 : index
    %c0_5 = arith.constant 0 : index
    %3 = vector.load %arg4[%c0_3, %c0_4, %c0_5] : memref<5x128x128xf32, #tpu.memory_space<vmem>>, vector<1x128x128xf32>
    %4 = vector.shape_cast %3 : vector<1x128x128xf32> to vector<128x128xf32>
    %cst_6 = arith.constant dense<0.000000e+00> : vector<128x128xf32>
    %5 = tpu.matmul %2, %4, %cst_6 {dimension_numbers = #tpu.dot_dimension_numbers<[1], [0], [0], [1], [0, 0, 1, 1], [], []>} : vector<128x128xf32>, vector<128x128xf32>, vector<128x128xf32> -> vector<128x128xf32>
    %c0_7 = arith.constant 0 : index
    %c0_8 = arith.constant 0 : index
    %c0_9 = arith.constant 0 : index
    %6 = vector.load %arg5[%c0_7, %c0_8, %c0_9] : memref<5x1x128xf32, #tpu.memory_space<vmem>>, vector<1x1x128xf32>
    %7 = vector.shape_cast %6 : vector<1x1x128xf32> to vector<1x128xf32>
    %8 = vector.broadcast %7 : vector<1x128xf32> to vector<128x128xf32>
    %9 = arith.mulf %5, %8 : vector<128x128xf32>
    %c0_10 = arith.constant 0 : index
    %c0_11 = arith.constant 0 : index
    %c0_12 = arith.constant 0 : index
    %10 = vector.load %arg6[%c0_10, %c0_11, %c0_12] : memref<5x1x128xf32, #tpu.memory_space<vmem>>, vector<1x1x128xf32>
    %11 = vector.shape_cast %10 : vector<1x1x128xf32> to vector<1x128xf32>
    %12 = vector.broadcast %11 : vector<1x128xf32> to vector<128x128xf32>
    %13 = arith.addf %9, %12 : vector<128x128xf32>
    %cst_13 = arith.constant 0.000000e+00 : f32
    %14 = vector.broadcast %cst_13 : f32 to vector<128x128xf32>
    %15 = arith.maximumf %13, %14 : vector<128x128xf32>
    %c0_14 = arith.constant 0 : index
    %c0_15 = arith.constant 0 : index
    %c0_16 = arith.constant 0 : index
    %16 = vector.load %arg7[%c0_14, %c0_15, %c0_16] : memref<5x128x128xf32, #tpu.memory_space<vmem>>, vector<1x128x128xf32>
    %17 = vector.shape_cast %16 : vector<1x128x128xf32> to vector<128x128xf32>
    %cst_17 = arith.constant dense<0.000000e+00> : vector<128x128xf32>
    %18 = tpu.matmul %15, %17, %cst_17 {dimension_numbers = #tpu.dot_dimension_numbers<[1], [0], [0], [1], [0, 0, 1, 1], [], []>} : vector<128x128xf32>, vector<128x128xf32>, vector<128x128xf32> -> vector<128x128xf32>
    %c0_18 = arith.constant 0 : index
    %c0_19 = arith.constant 0 : index
    %c0_20 = arith.constant 0 : index
    %19 = vector.load %arg8[%c0_18, %c0_19, %c0_20] : memref<5x1x128xf32, #tpu.memory_space<vmem>>, vector<1x1x128xf32>
    %20 = vector.shape_cast %19 : vector<1x1x128xf32> to vector<1x128xf32>
    %21 = vector.broadcast %20 : vector<1x128xf32> to vector<128x128xf32>
    %22 = arith.mulf %18, %21 : vector<128x128xf32>
    %c0_21 = arith.constant 0 : index
    %c0_22 = arith.constant 0 : index
    %c0_23 = arith.constant 0 : index
    %23 = vector.load %arg9[%c0_21, %c0_22, %c0_23] : memref<5x1x128xf32, #tpu.memory_space<vmem>>, vector<1x1x128xf32>
    %24 = vector.shape_cast %23 : vector<1x1x128xf32> to vector<1x128xf32>
    %25 = vector.broadcast %24 : vector<1x128xf32> to vector<128x128xf32>
    %26 = arith.addf %22, %25 : vector<128x128xf32>
    %cst_24 = arith.constant 0.000000e+00 : f32
    %27 = vector.broadcast %cst_24 : f32 to vector<128x128xf32>
    %28 = arith.maximumf %26, %27 : vector<128x128xf32>
    %cst_25 = arith.constant dense<0.000000e+00> : vector<128x128xf32>
    %29 = tpu.matmul %1, %28, %cst_25 {dimension_numbers = #tpu.dot_dimension_numbers<[1], [0], [0], [1], [0, 0, 1, 1], [], []>} : vector<128x128xf32>, vector<128x128xf32>, vector<128x128xf32> -> vector<128x128xf32>
    %c1 = arith.constant 1 : index
    %c0_26 = arith.constant 0 : index
    %c0_27 = arith.constant 0 : index
    %30 = vector.load %arg4[%c1, %c0_26, %c0_27] : memref<5x128x128xf32, #tpu.memory_space<vmem>>, vector<1x128x128xf32>
    %31 = vector.shape_cast %30 : vector<1x128x128xf32> to vector<128x128xf32>
    %cst_28 = arith.constant dense<0.000000e+00> : vector<128x128xf32>
    %32 = tpu.matmul %29, %31, %cst_28 {dimension_numbers = #tpu.dot_dimension_numbers<[1], [0], [0], [1], [0, 0, 1, 1], [], []>} : vector<128x128xf32>, vector<128x128xf32>, vector<128x128xf32> -> vector<128x128xf32>
    %c1_29 = arith.constant 1 : index
    %c0_30 = arith.constant 0 : index
    %c0_31 = arith.constant 0 : index
    %33 = vector.load %arg5[%c1_29, %c0_30, %c0_31] : memref<5x1x128xf32, #tpu.memory_space<vmem>>, vector<1x1x128xf32>
    %34 = vector.shape_cast %33 : vector<1x1x128xf32> to vector<1x128xf32>
    %35 = vector.broadcast %34 : vector<1x128xf32> to vector<128x128xf32>
    %36 = arith.mulf %32, %35 : vector<128x128xf32>
    %c1_32 = arith.constant 1 : index
    %c0_33 = arith.constant 0 : index
    %c0_34 = arith.constant 0 : index
    %37 = vector.load %arg6[%c1_32, %c0_33, %c0_34] : memref<5x1x128xf32, #tpu.memory_space<vmem>>, vector<1x1x128xf32>
    %38 = vector.shape_cast %37 : vector<1x1x128xf32> to vector<1x128xf32>
    %39 = vector.broadcast %38 : vector<1x128xf32> to vector<128x128xf32>
    %40 = arith.addf %36, %39 : vector<128x128xf32>
    %cst_35 = arith.constant 0.000000e+00 : f32
    %41 = vector.broadcast %cst_35 : f32 to vector<128x128xf32>
    %42 = arith.maximumf %40, %41 : vector<128x128xf32>
    %c1_36 = arith.constant 1 : index
    %c0_37 = arith.constant 0 : index
    %c0_38 = arith.constant 0 : index
    %43 = vector.load %arg7[%c1_36, %c0_37, %c0_38] : memref<5x128x128xf32, #tpu.memory_space<vmem>>, vector<1x128x128xf32>
    %44 = vector.shape_cast %43 : vector<1x128x128xf32> to vector<128x128xf32>
    %cst_39 = arith.constant dense<0.000000e+00> : vector<128x128xf32>
    %45 = tpu.matmul %42, %44, %cst_39 {dimension_numbers = #tpu.dot_dimension_numbers<[1], [0], [0], [1], [0, 0, 1, 1], [], []>} : vector<128x128xf32>, vector<128x128xf32>, vector<128x128xf32> -> vector<128x128xf32>
    %c1_40 = arith.constant 1 : index
    %c0_41 = arith.constant 0 : index
    %c0_42 = arith.constant 0 : index
    %46 = vector.load %arg8[%c1_40, %c0_41, %c0_42] : memref<5x1x128xf32, #tpu.memory_space<vmem>>, vector<1x1x128xf32>
    %47 = vector.shape_cast %46 : vector<1x1x128xf32> to vector<1x128xf32>
    %48 = vector.broadcast %47 : vector<1x128xf32> to vector<128x128xf32>
    %49 = arith.mulf %45, %48 : vector<128x128xf32>
    %c1_43 = arith.constant 1 : index
    %c0_44 = arith.constant 0 : index
    %c0_45 = arith.constant 0 : index
    %50 = vector.load %arg9[%c1_43, %c0_44, %c0_45] : memref<5x1x128xf32, #tpu.memory_space<vmem>>, vector<1x1x128xf32>
    %51 = vector.shape_cast %50 : vector<1x1x128xf32> to vector<1x128xf32>
    %52 = vector.broadcast %51 : vector<1x128xf32> to vector<128x128xf32>
    %53 = arith.addf %49, %52 : vector<128x128xf32>
    %cst_46 = arith.constant 0.000000e+00 : f32
    %54 = vector.broadcast %cst_46 : f32 to vector<128x128xf32>
    %55 = arith.maximumf %53, %54 : vector<128x128xf32>
    %cst_47 = arith.constant dense<0.000000e+00> : vector<128x128xf32>
    %56 = tpu.matmul %1, %55, %cst_47 {dimension_numbers = #tpu.dot_dimension_numbers<[1], [0], [0], [1], [0, 0, 1, 1], [], []>} : vector<128x128xf32>, vector<128x128xf32>, vector<128x128xf32> -> vector<128x128xf32>
    %c2 = arith.constant 2 : index
    %c0_48 = arith.constant 0 : index
    %c0_49 = arith.constant 0 : index
    %57 = vector.load %arg4[%c2, %c0_48, %c0_49] : memref<5x128x128xf32, #tpu.memory_space<vmem>>, vector<1x128x128xf32>
    %58 = vector.shape_cast %57 : vector<1x128x128xf32> to vector<128x128xf32>
    %cst_50 = arith.constant dense<0.000000e+00> : vector<128x128xf32>
    %59 = tpu.matmul %56, %58, %cst_50 {dimension_numbers = #tpu.dot_dimension_numbers<[1], [0], [0], [1], [0, 0, 1, 1], [], []>} : vector<128x128xf32>, vector<128x128xf32>, vector<128x128xf32> -> vector<128x128xf32>
    %c2_51 = arith.constant 2 : index
    %c0_52 = arith.constant 0 : index
    %c0_53 = arith.constant 0 : index
    %60 = vector.load %arg5[%c2_51, %c0_52, %c0_53] : memref<5x1x128xf32, #tpu.memory_space<vmem>>, vector<1x1x128xf32>
    %61 = vector.shape_cast %60 : vector<1x1x128xf32> to vector<1x128xf32>
    %62 = vector.broadcast %61 : vector<1x128xf32> to vector<128x128xf32>
    %63 = arith.mulf %59, %62 : vector<128x128xf32>
    %c2_54 = arith.constant 2 : index
    %c0_55 = arith.constant 0 : index
    %c0_56 = arith.constant 0 : index
    %64 = vector.load %arg6[%c2_54, %c0_55, %c0_56] : memref<5x1x128xf32, #tpu.memory_space<vmem>>, vector<1x1x128xf32>
    %65 = vector.shape_cast %64 : vector<1x1x128xf32> to vector<1x128xf32>
    %66 = vector.broadcast %65 : vector<1x128xf32> to vector<128x128xf32>
    %67 = arith.addf %63, %66 : vector<128x128xf32>
    %cst_57 = arith.constant 0.000000e+00 : f32
    %68 = vector.broadcast %cst_57 : f32 to vector<128x128xf32>
    %69 = arith.maximumf %67, %68 : vector<128x128xf32>
    %c2_58 = arith.constant 2 : index
    %c0_59 = arith.constant 0 : index
    %c0_60 = arith.constant 0 : index
    %70 = vector.load %arg7[%c2_58, %c0_59, %c0_60] : memref<5x128x128xf32, #tpu.memory_space<vmem>>, vector<1x128x128xf32>
    %71 = vector.shape_cast %70 : vector<1x128x128xf32> to vector<128x128xf32>
    %cst_61 = arith.constant dense<0.000000e+00> : vector<128x128xf32>
    %72 = tpu.matmul %69, %71, %cst_61 {dimension_numbers = #tpu.dot_dimension_numbers<[1], [0], [0], [1], [0, 0, 1, 1], [], []>} : vector<128x128xf32>, vector<128x128xf32>, vector<128x128xf32> -> vector<128x128xf32>
    %c2_62 = arith.constant 2 : index
    %c0_63 = arith.constant 0 : index
    %c0_64 = arith.constant 0 : index
    %73 = vector.load %arg8[%c2_62, %c0_63, %c0_64] : memref<5x1x128xf32, #tpu.memory_space<vmem>>, vector<1x1x128xf32>
    %74 = vector.shape_cast %73 : vector<1x1x128xf32> to vector<1x128xf32>
    %75 = vector.broadcast %74 : vector<1x128xf32> to vector<128x128xf32>
    %76 = arith.mulf %72, %75 : vector<128x128xf32>
    %c2_65 = arith.constant 2 : index
    %c0_66 = arith.constant 0 : index
    %c0_67 = arith.constant 0 : index
    %77 = vector.load %arg9[%c2_65, %c0_66, %c0_67] : memref<5x1x128xf32, #tpu.memory_space<vmem>>, vector<1x1x128xf32>
    %78 = vector.shape_cast %77 : vector<1x1x128xf32> to vector<1x128xf32>
    %79 = vector.broadcast %78 : vector<1x128xf32> to vector<128x128xf32>
    %80 = arith.addf %76, %79 : vector<128x128xf32>
    %cst_68 = arith.constant 0.000000e+00 : f32
    %81 = vector.broadcast %cst_68 : f32 to vector<128x128xf32>
    %82 = arith.maximumf %80, %81 : vector<128x128xf32>
    %cst_69 = arith.constant dense<0.000000e+00> : vector<128x128xf32>
    %83 = tpu.matmul %1, %82, %cst_69 {dimension_numbers = #tpu.dot_dimension_numbers<[1], [0], [0], [1], [0, 0, 1, 1], [], []>} : vector<128x128xf32>, vector<128x128xf32>, vector<128x128xf32> -> vector<128x128xf32>
    %c3 = arith.constant 3 : index
    %c0_70 = arith.constant 0 : index
    %c0_71 = arith.constant 0 : index
    %84 = vector.load %arg4[%c3, %c0_70, %c0_71] : memref<5x128x128xf32, #tpu.memory_space<vmem>>, vector<1x128x128xf32>
    %85 = vector.shape_cast %84 : vector<1x128x128xf32> to vector<128x128xf32>
    %cst_72 = arith.constant dense<0.000000e+00> : vector<128x128xf32>
    %86 = tpu.matmul %83, %85, %cst_72 {dimension_numbers = #tpu.dot_dimension_numbers<[1], [0], [0], [1], [0, 0, 1, 1], [], []>} : vector<128x128xf32>, vector<128x128xf32>, vector<128x128xf32> -> vector<128x128xf32>
    %c3_73 = arith.constant 3 : index
    %c0_74 = arith.constant 0 : index
    %c0_75 = arith.constant 0 : index
    %87 = vector.load %arg5[%c3_73, %c0_74, %c0_75] : memref<5x1x128xf32, #tpu.memory_space<vmem>>, vector<1x1x128xf32>
    %88 = vector.shape_cast %87 : vector<1x1x128xf32> to vector<1x128xf32>
    %89 = vector.broadcast %88 : vector<1x128xf32> to vector<128x128xf32>
    %90 = arith.mulf %86, %89 : vector<128x128xf32>
    %c3_76 = arith.constant 3 : index
    %c0_77 = arith.constant 0 : index
    %c0_78 = arith.constant 0 : index
    %91 = vector.load %arg6[%c3_76, %c0_77, %c0_78] : memref<5x1x128xf32, #tpu.memory_space<vmem>>, vector<1x1x128xf32>
    %92 = vector.shape_cast %91 : vector<1x1x128xf32> to vector<1x128xf32>
    %93 = vector.broadcast %92 : vector<1x128xf32> to vector<128x128xf32>
    %94 = arith.addf %90, %93 : vector<128x128xf32>
    %cst_79 = arith.constant 0.000000e+00 : f32
    %95 = vector.broadcast %cst_79 : f32 to vector<128x128xf32>
    %96 = arith.maximumf %94, %95 : vector<128x128xf32>
    %c3_80 = arith.constant 3 : index
    %c0_81 = arith.constant 0 : index
    %c0_82 = arith.constant 0 : index
    %97 = vector.load %arg7[%c3_80, %c0_81, %c0_82] : memref<5x128x128xf32, #tpu.memory_space<vmem>>, vector<1x128x128xf32>
    %98 = vector.shape_cast %97 : vector<1x128x128xf32> to vector<128x128xf32>
    %cst_83 = arith.constant dense<0.000000e+00> : vector<128x128xf32>
    %99 = tpu.matmul %96, %98, %cst_83 {dimension_numbers = #tpu.dot_dimension_numbers<[1], [0], [0], [1], [0, 0, 1, 1], [], []>} : vector<128x128xf32>, vector<128x128xf32>, vector<128x128xf32> -> vector<128x128xf32>
    %c3_84 = arith.constant 3 : index
    %c0_85 = arith.constant 0 : index
    %c0_86 = arith.constant 0 : index
    %100 = vector.load %arg8[%c3_84, %c0_85, %c0_86] : memref<5x1x128xf32, #tpu.memory_space<vmem>>, vector<1x1x128xf32>
    %101 = vector.shape_cast %100 : vector<1x1x128xf32> to vector<1x128xf32>
    %102 = vector.broadcast %101 : vector<1x128xf32> to vector<128x128xf32>
    %103 = arith.mulf %99, %102 : vector<128x128xf32>
    %c3_87 = arith.constant 3 : index
    %c0_88 = arith.constant 0 : index
    %c0_89 = arith.constant 0 : index
    %104 = vector.load %arg9[%c3_87, %c0_88, %c0_89] : memref<5x1x128xf32, #tpu.memory_space<vmem>>, vector<1x1x128xf32>
    %105 = vector.shape_cast %104 : vector<1x1x128xf32> to vector<1x128xf32>
    %106 = vector.broadcast %105 : vector<1x128xf32> to vector<128x128xf32>
    %107 = arith.addf %103, %106 : vector<128x128xf32>
    %cst_90 = arith.constant 0.000000e+00 : f32
    %108 = vector.broadcast %cst_90 : f32 to vector<128x128xf32>
    %109 = arith.maximumf %107, %108 : vector<128x128xf32>
    %cst_91 = arith.constant dense<0.000000e+00> : vector<128x128xf32>
    %110 = tpu.matmul %1, %109, %cst_91 {dimension_numbers = #tpu.dot_dimension_numbers<[1], [0], [0], [1], [0, 0, 1, 1], [], []>} : vector<128x128xf32>, vector<128x128xf32>, vector<128x128xf32> -> vector<128x128xf32>
    %c4 = arith.constant 4 : index
    %c0_92 = arith.constant 0 : index
    %c0_93 = arith.constant 0 : index
    %111 = vector.load %arg4[%c4, %c0_92, %c0_93] : memref<5x128x128xf32, #tpu.memory_space<vmem>>, vector<1x128x128xf32>
    %112 = vector.shape_cast %111 : vector<1x128x128xf32> to vector<128x128xf32>
    %cst_94 = arith.constant dense<0.000000e+00> : vector<128x128xf32>
    %113 = tpu.matmul %110, %112, %cst_94 {dimension_numbers = #tpu.dot_dimension_numbers<[1], [0], [0], [1], [0, 0, 1, 1], [], []>} : vector<128x128xf32>, vector<128x128xf32>, vector<128x128xf32> -> vector<128x128xf32>
    %c4_95 = arith.constant 4 : index
    %c0_96 = arith.constant 0 : index
    %c0_97 = arith.constant 0 : index
    %114 = vector.load %arg5[%c4_95, %c0_96, %c0_97] : memref<5x1x128xf32, #tpu.memory_space<vmem>>, vector<1x1x128xf32>
    %115 = vector.shape_cast %114 : vector<1x1x128xf32> to vector<1x128xf32>
    %116 = vector.broadcast %115 : vector<1x128xf32> to vector<128x128xf32>
    %117 = arith.mulf %113, %116 : vector<128x128xf32>
    %c4_98 = arith.constant 4 : index
    %c0_99 = arith.constant 0 : index
    %c0_100 = arith.constant 0 : index
    %118 = vector.load %arg6[%c4_98, %c0_99, %c0_100] : memref<5x1x128xf32, #tpu.memory_space<vmem>>, vector<1x1x128xf32>
    %119 = vector.shape_cast %118 : vector<1x1x128xf32> to vector<1x128xf32>
    %120 = vector.broadcast %119 : vector<1x128xf32> to vector<128x128xf32>
    %121 = arith.addf %117, %120 : vector<128x128xf32>
    %cst_101 = arith.constant 0.000000e+00 : f32
    %122 = vector.broadcast %cst_101 : f32 to vector<128x128xf32>
    %123 = arith.maximumf %121, %122 : vector<128x128xf32>
    %c4_102 = arith.constant 4 : index
    %c0_103 = arith.constant 0 : index
    %c0_104 = arith.constant 0 : index
    %124 = vector.load %arg7[%c4_102, %c0_103, %c0_104] : memref<5x128x128xf32, #tpu.memory_space<vmem>>, vector<1x128x128xf32>
    %125 = vector.shape_cast %124 : vector<1x128x128xf32> to vector<128x128xf32>
    %cst_105 = arith.constant dense<0.000000e+00> : vector<128x128xf32>
    %126 = tpu.matmul %123, %125, %cst_105 {dimension_numbers = #tpu.dot_dimension_numbers<[1], [0], [0], [1], [0, 0, 1, 1], [], []>} : vector<128x128xf32>, vector<128x128xf32>, vector<128x128xf32> -> vector<128x128xf32>
    %c4_106 = arith.constant 4 : index
    %c0_107 = arith.constant 0 : index
    %c0_108 = arith.constant 0 : index
    %127 = vector.load %arg8[%c4_106, %c0_107, %c0_108] : memref<5x1x128xf32, #tpu.memory_space<vmem>>, vector<1x1x128xf32>
    %128 = vector.shape_cast %127 : vector<1x1x128xf32> to vector<1x128xf32>
    %129 = vector.broadcast %128 : vector<1x128xf32> to vector<128x128xf32>
    %130 = arith.mulf %126, %129 : vector<128x128xf32>
    %c4_109 = arith.constant 4 : index
    %c0_110 = arith.constant 0 : index
    %c0_111 = arith.constant 0 : index
    %131 = vector.load %arg9[%c4_109, %c0_110, %c0_111] : memref<5x1x128xf32, #tpu.memory_space<vmem>>, vector<1x1x128xf32>
    %132 = vector.shape_cast %131 : vector<1x1x128xf32> to vector<1x128xf32>
    %133 = vector.broadcast %132 : vector<1x128xf32> to vector<128x128xf32>
    %134 = arith.addf %130, %133 : vector<128x128xf32>
    %c0_112 = arith.constant 0 : index
    %c0_113 = arith.constant 0 : index
    %135 = vector.load %arg3[%c0_112, %c0_113] : memref<8x128xf32, #tpu.memory_space<vmem>>, vector<8x128xf32>
    %cst_114 = arith.constant dense<0.000000e+00> : vector<8x128xf32>
    %136 = tpu.matmul %135, %134, %cst_114 {dimension_numbers = #tpu.dot_dimension_numbers<[1], [0], [0], [1], [0, 0, 1, 1], [], []>} : vector<8x128xf32>, vector<128x128xf32>, vector<8x128xf32> -> vector<8x128xf32>
    %c0_115 = arith.constant 0 : index
    %c0_116 = arith.constant 0 : index
    %137 = vector.load %arg10[%c0_115, %c0_116] : memref<128x128xf32, #tpu.memory_space<vmem>>, vector<128x128xf32>
    %cst_117 = arith.constant dense<0.000000e+00> : vector<8x128xf32>
    %138 = tpu.matmul %136, %137, %cst_117 {dimension_numbers = #tpu.dot_dimension_numbers<[1], [0], [0], [1], [0, 0, 1, 1], [], []>} : vector<8x128xf32>, vector<128x128xf32>, vector<8x128xf32> -> vector<8x128xf32>
    %c0_118 = arith.constant 0 : index
    %c0_119 = arith.constant 0 : index
    %139 = vector.load %arg11[%c0_118, %c0_119] : memref<1x128xf32, #tpu.memory_space<vmem>>, vector<1x128xf32>
    %140 = vector.broadcast %139 : vector<1x128xf32> to vector<8x128xf32>
    %141 = arith.addf %138, %140 : vector<8x128xf32>
    %cst_120 = arith.constant 0.000000e+00 : f32
    %142 = vector.broadcast %cst_120 : f32 to vector<8x128xf32>
    %143 = arith.maximumf %141, %142 : vector<8x128xf32>
    %c0_121 = arith.constant 0 : index
    %c0_122 = arith.constant 0 : index
    %144 = vector.load %arg12[%c0_121, %c0_122] : memref<128x128xf32, #tpu.memory_space<vmem>>, vector<128x128xf32>
    %cst_123 = arith.constant dense<0.000000e+00> : vector<8x128xf32>
    %145 = tpu.matmul %143, %144, %cst_123 {dimension_numbers = #tpu.dot_dimension_numbers<[1], [0], [0], [1], [0, 0, 1, 1], [], []>} : vector<8x128xf32>, vector<128x128xf32>, vector<8x128xf32> -> vector<8x128xf32>
    %c0_124 = arith.constant 0 : index
    %c0_125 = arith.constant 0 : index
    %146 = vector.load %arg13[%c0_124, %c0_125] : memref<1x128xf32, #tpu.memory_space<vmem>>, vector<1x128xf32>
    %147 = vector.broadcast %146 : vector<1x128xf32> to vector<8x128xf32>
    %148 = arith.addf %145, %147 : vector<8x128xf32>
    %c0_126 = arith.constant 0 : index
    %c0_127 = arith.constant 0 : index
    %149 = vector.load %arg14[%c0_126, %c0_127] : memref<8x128xf32, #tpu.memory_space<vmem>>, vector<8x128xf32>
    tpu.vector_store %arg14[%c0_126, %c0_127], %148 {strides = array<i32>} : memref<8x128xf32, #tpu.memory_space<vmem>>, vector<8x128xf32>,
    return
  }
  func.func @transform_0(%arg0: i32) -> (i32, i32) {
    %c0_i32 = arith.constant 0 : i32
    %c0_i32_0 = arith.constant 0 : i32
    %c0_i32_1 = arith.constant 0 : i32
    return %c0_i32, %c0_i32_0 : i32, i32
  }
  func.func @transform_1(%arg0: i32) -> (i32, i32) {
    %c0_i32 = arith.constant 0 : i32
    %c0_i32_0 = arith.constant 0 : i32
    %c0_i32_1 = arith.constant 0 : i32
    return %c0_i32, %c0_i32_0 : i32, i32
  }
  func.func @transform_2(%arg0: i32) -> (i32, i32) {
    %c0_i32 = arith.constant 0 : i32
    %c0_i32_0 = arith.constant 0 : i32
    %c0_i32_1 = arith.constant 0 : i32
    return %c0_i32, %c0_i32_0 : i32, i32
  }
  func.func @transform_3(%arg0: i32) -> (i32, i32, i32) {
    %c0_i32 = arith.constant 0 : i32
    %c0_i32_0 = arith.constant 0 : i32
    %c0_i32_1 = arith.constant 0 : i32
    %c0_i32_2 = arith.constant 0 : i32
    return %c0_i32, %c0_i32_0, %c0_i32_1 : i32, i32, i32
  }
  func.func @transform_4(%arg0: i32) -> (i32, i32, i32) {
    %c0_i32 = arith.constant 0 : i32
    %c0_i32_0 = arith.constant 0 : i32
    %c0_i32_1 = arith.constant 0 : i32
    %c0_i32_2 = arith.constant 0 : i32
    return %c0_i32, %c0_i32_0, %c0_i32_1 : i32, i32, i32
  }
  func.func @transform_5(%arg0: i32) -> (i32, i32, i32) {
    %c0_i32 = arith.constant 0 : i32
    %c0_i32_0 = arith.constant 0 : i32
    %c0_i32_1 = arith.constant 0 : i32
    %c0_i32_2 = arith.constant 0 : i32
    return %c0_i32, %c0_i32_0, %c0_i32_1 : i32, i32, i32
  }
  func.func @transform_6(%arg0: i32) -> (i32, i32, i32) {
    %c0_i32 = arith.constant 0 : i32
    %c0_i32_0 = arith.constant 0 : i32
    %c0_i32_1 = arith.constant 0 : i32
    %c0_i32_2 = arith.constant 0 : i32
    return %c0_i32, %c0_i32_0, %c0_i32_1 : i32, i32, i32
  }
  func.func @transform_7(%arg0: i32) -> (i32, i32, i32) {
    %c0_i32 = arith.constant 0 : i32
    %c0_i32_0 = arith.constant 0 : i32
    %c0_i32_1 = arith.constant 0 : i32
    %c0_i32_2 = arith.constant 0 : i32
    return %c0_i32, %c0_i32_0, %c0_i32_1 : i32, i32, i32
  }
  func.func @transform_8(%arg0: i32) -> (i32, i32, i32) {
    %c0_i32 = arith.constant 0 : i32
    %c0_i32_0 = arith.constant 0 : i32
    %c0_i32_1 = arith.constant 0 : i32
    %c0_i32_2 = arith.constant 0 : i32
    return %c0_i32, %c0_i32_0, %c0_i32_1 : i32, i32, i32
  }
  func.func @transform_9(%arg0: i32) -> (i32, i32) {
    %c0_i32 = arith.constant 0 : i32
    %c0_i32_0 = arith.constant 0 : i32
    %c0_i32_1 = arith.constant 0 : i32
    return %c0_i32, %c0_i32_0 : i32, i32
  }
  func.func @transform_10(%arg0: i32) -> (i32, i32) {
    %c0_i32 = arith.constant 0 : i32
    %c0_i32_0 = arith.constant 0 : i32
    %c0_i32_1 = arith.constant 0 : i32
    return %c0_i32, %c0_i32_0 : i32, i32
  }
  func.func @transform_11(%arg0: i32) -> (i32, i32) {
    %c0_i32 = arith.constant 0 : i32
    %c0_i32_0 = arith.constant 0 : i32
    %c0_i32_1 = arith.constant 0 : i32
    return %c0_i32, %c0_i32_0 : i32, i32
  }
  func.func @transform_12(%arg0: i32) -> (i32, i32) {
    %c0_i32 = arith.constant 0 : i32
    %c0_i32_0 = arith.constant 0 : i32
    %c0_i32_1 = arith.constant 0 : i32
    return %c0_i32, %c0_i32_0 : i32, i32
  }
  func.func @transform_13(%arg0: i32) -> (i32, i32) {
    %c0_i32 = arith.constant 0 : i32
    %c0_i32_0 = arith.constant 0 : i32
    %c0_i32_1 = arith.constant 0 : i32
    return %c0_i32, %c0_i32_0 : i32, i32
  }
}

</mosaic_0001>

<bundles_post_ra>
// kernel: tpu_custom_call.1
= control target key start
LH: loop header
LB: loop body
LE: loop exit
PB: predicated region body
PF: predicated region fallthrough
CT: control target
= control target key end

     0   :  { %18 = vsyncpa [#allocation3], 0  ;;  %s6509_s0 = inlined_call_operand.hbm [shape: f32[128,128], index: 0, kind: input, shape index: {}]   ;;  %s6510_s1 = inlined_call_operand.hbm [shape: f32[128,128], index: 1, kind: input, shape index: {}]   ;;  %s6511_s2 = inlined_call_operand.hbm [shape: f32[8,128], index: 2, kind: input, shape index: {}]   ;;  %s6512_s3 = inlined_call_operand.hbm [shape: f32[5,128,128], index: 3, kind: input, shape index: {}]   ;;  %s6513_s4 = inlined_call_operand.vmem [shape: f32[5,1,128], index: 4, kind: input, shape index: {}]   ;;  %s6514_s5 = inlined_call_operand.vmem [shape: f32[5,1,128], index: 5, kind: input, shape index: {}]   ;;  %s6515_s6 = inlined_call_operand.hbm [shape: f32[5,128,128], index: 6, kind: input, shape index: {}]   ;;  %s6516_s7 = inlined_call_operand.vmem [shape: f32[5,1,128], index: 7, kind: input, shape index: {}]   ;;  %s6517_s8 = inlined_call_operand.vmem [shape: f32[5,1,128], index: 8, kind: input, shape index: {}]   ;;  %s6518_s9 = inlined_call_operand.hbm [shape: f32[128,128], index: 9, kind: input, shape index: {}]   ;;  %s6519_s10 = inlined_call_operand.vmem [shape: f32[1,128], index: 10, kind: input, shape index: {}]   ;;  %s6520_s11 = inlined_call_operand.hbm [shape: f32[128,128], index: 11, kind: input, shape index: {}]   ;;  %s6521_s12 = inlined_call_operand.vmem [shape: f32[1,128], index: 12, kind: input, shape index: {}]   ;;  %s6522_s13 = inlined_call_operand.hbm [shape: f32[8,128], index: 13, kind: output, shape index: {}]  }
   0x1   :  { %19 = vsyncpa [#allocation6], 0 }
   0x2   :  { %20 = vsyncpa [#allocation9], 0 }
   0x3   :  { %21 = vsyncpa [#allocation12], 0 }
   0x4   :  { %22 = vsyncpa [#allocation4], 0  ;;  %s5706_s25 = smov [#allocation5]   ;;  %s5707_s27 = smov [#allocation8]  }
   0x5   :  { %s40_s26 = sshll.u32 %s5706_s25, 4  ;;  %s62_s28 = sshll.u32 %s5707_s27, 4  ;;  %s41_s26 = int_to_ptr.vmem [resolvable:$true] %s40_s26  ;;  %s5789_s28 = int_to_ptr.vmem [resolvable:$true] %s62_s28 }
   0x6   :  { %s5520_s14 = scalar_lea.hbm %s6510_s1, 2048 }
   0x7   :  { %p5521_p0 = scmp.ne.s32.totalorder %s6510_s1, %s5520_s14  ;;  %p5524_p1 = scmp.lt.u32.totalorder %s5520_s14, %s6510_s1 }
   0x9   :  { %p5526_p2 = pnand %p5524_p1, %p5521_p0 }
   0xb   :  { %5529 = shalt.err (!%p5526_p2)
}
   0xc   :  { %s5530_s19 = scalar_lea.vmem %s41_s26, 2048  ;;  %p5535_p4 = scmp.lt.s32.totalorder %s41_s26, %s41_s26 }
   0xd   :  { %p5531_p3 = scmp.ne.s32.totalorder %s41_s26, %s5530_s19  ;;  %p5536_p5 = scmp.lt.s32.totalorder %s5530_s19, %s5530_s19 }
   0xf   :  { %p5537_p6 = por %p5536_p5, %p5535_p4 }
  0x11   :  { %p5538_p7 = pnand %p5537_p6, %p5531_p3 }
  0x13   :  { %5541 = shalt.err (!%p5538_p7)
}
  0x14   :  { %s5708_s20 = smov 128   ;;  %s5709_s21 = smov 8  }
  0x15   :  { %46 = dma.hbm_to_vmem [thread:$0]  %s6510_s1, 2048, %s41_s26, [#allocation6], %s5708_s20, %s5708_s20, %s5709_s21  }
  0x16   :  { %s5542_s27 = scalar_lea.hbm %s6512_s3, 10240 }
  0x17   :  { %p5543_p8 = scmp.ne.s32.totalorder %s6512_s3, %s5542_s27  ;;  %p5546_p9 = scmp.lt.u32.totalorder %s5542_s27, %s6512_s3 }
  0x19   :  { %p5548_p10 = pnand %p5546_p9, %p5543_p8 }
  0x1b   :  { %5551 = shalt.err (!%p5548_p10)
}
  0x1c   :  { %s5552_s16 = scalar_lea.vmem %s5789_s28, 10240  ;;  %p5557_p12 = scmp.lt.s32.totalorder %s5789_s28, %s5789_s28 }
  0x1d   :  { %p5553_p11 = scmp.ne.s32.totalorder %s5789_s28, %s5552_s16  ;;  %p5558_p13 = scmp.lt.s32.totalorder %s5552_s16, %s5552_s16 }
  0x1f   :  { %p5559_p0 = por %p5558_p13, %p5557_p12 }
  0x21   :  { %p5560_p1 = pnand %p5559_p0, %p5553_p11 }
  0x23   :  { %5563 = shalt.err (!%p5560_p1)
}
  0x24   :  { %68 = dma.hbm_to_vmem [thread:$0]  %s6512_s3, 10240, %s5789_s28, [#allocation9], %s5708_s20, %s5708_s20, %s5709_s21  }
  0x25   :  { %s5710_s17 = smov [#allocation11]   ;;  %s5711_s19 = smov [#allocation2]  }
  0x26   :  { %s94_s18 = sshll.u32 %s5710_s17, 4  ;;  %s28_s22 = sshll.u32 %s5711_s19, 4  ;;  %s95_s18 = int_to_ptr.vmem [resolvable:$true] %s94_s18  ;;  %s5826_s22 = int_to_ptr.vmem [resolvable:$true] %s28_s22 }
  0x27   :  { %s5564_s25 = scalar_lea.hbm %s6518_s9, 2048 }
  0x28   :  { %p5565_p2 = scmp.ne.s32.totalorder %s6518_s9, %s5564_s25  ;;  %p5568_p3 = scmp.lt.u32.totalorder %s5564_s25, %s6518_s9 }
  0x2a   :  { %p5570_p4 = pnand %p5568_p3, %p5565_p2 }
  0x2c   :  { %5573 = shalt.err (!%p5570_p4)
}
  0x2d   :  { %s5574_s3 = scalar_lea.vmem %s95_s18, 2048  ;;  %p5579_p6 = scmp.lt.s32.totalorder %s95_s18, %s95_s18 }
  0x2e   :  { %p5575_p5 = scmp.ne.s32.totalorder %s95_s18, %s5574_s3  ;;  %p5580_p7 = scmp.lt.s32.totalorder %s5574_s3, %s5574_s3 }
  0x30   :  { %p5581_p8 = por %p5580_p7, %p5579_p6 }
  0x32   :  { %p5582_p9 = pnand %p5581_p8, %p5575_p5 }
  0x34   :  { %5585 = shalt.err (!%p5582_p9)
}
  0x35   :  { %100 = dma.hbm_to_vmem [thread:$0]  %s6518_s9, 2048, %s95_s18, [#allocation12], %s5708_s20, %s5708_s20, %s5709_s21  }
  0x36   :  { %s5586_s26 = scalar_lea.hbm %s6509_s0, 2048 }
  0x37   :  { %p5587_p10 = scmp.ne.s32.totalorder %s6509_s0, %s5586_s26  ;;  %p5590_p11 = scmp.lt.u32.totalorder %s5586_s26, %s6509_s0 }
  0x39   :  { %p5592_p12 = pnand %p5590_p11, %p5587_p10 }
  0x3b   :  { %5595 = shalt.err (!%p5592_p12)
}
  0x3c   :  { %s5596_s25 = scalar_lea.vmem %s5826_s22, 2048  ;;  %p5601_p0 = scmp.lt.s32.totalorder %s5826_s22, %s5826_s22 }
  0x3d   :  { %p5597_p13 = scmp.ne.s32.totalorder %s5826_s22, %s5596_s25  ;;  %p5602_p1 = scmp.lt.s32.totalorder %s5596_s25, %s5596_s25 }
  0x3f   :  { %p5603_p2 = por %p5602_p1, %p5601_p0 }
  0x41   :  { %p5604_p3 = pnand %p5603_p2, %p5597_p13 }
  0x43   :  { %5607 = shalt.err (!%p5604_p3)
}
  0x44   :  { %34 = dma.hbm_to_vmem [thread:$0]  %s6509_s0, 2048, %s5826_s22, [#allocation3], %s5708_s20, %s5708_s20, %s5709_s21  }
  0x45   :  { %s5712_s27 = smov [#allocation7]   ;;  %s5713_s30 = smov [#allocation10]  }
  0x46   :  { %s53_s29 = sshll.u32 %s5712_s27, 4  ;;  %s78_s14 = sshll.u32 %s5713_s30, 4  ;;  %s54_s29 = int_to_ptr.vmem [resolvable:$true] %s53_s29  ;;  %s5863_s14 = int_to_ptr.vmem [resolvable:$true] %s78_s14 }
  0x47   :  { %s5608_s15 = scalar_lea.hbm %s6511_s2, 128 }
  0x48   :  { %p5609_p4 = scmp.ne.s32.totalorder %s6511_s2, %s5608_s15  ;;  %p5612_p5 = scmp.lt.u32.totalorder %s5608_s15, %s6511_s2 }
  0x4a   :  { %p5614_p6 = pnand %p5612_p5, %p5609_p4 }
  0x4c   :  { %5617 = shalt.err (!%p5614_p6)
}
  0x4d   :  { %s5618_s0 = scalar_lea.vmem %s54_s29, 128  ;;  %p5623_p8 = scmp.lt.s32.totalorder %s54_s29, %s54_s29 }
  0x4e   :  { %p5619_p7 = scmp.ne.s32.totalorder %s54_s29, %s5618_s0  ;;  %p5624_p9 = scmp.lt.s32.totalorder %s5618_s0, %s5618_s0 }
  0x50   :  { %p5625_p10 = por %p5624_p9, %p5623_p8 }
  0x52   :  { %p5626_p11 = pnand %p5625_p10, %p5619_p7 }
  0x54   :  { %5629 = shalt.err (!%p5626_p11)
}
  0x55   :  { %56 = dma.hbm_to_vmem [thread:$0]  %s6511_s2, 128, %s54_s29, [#allocation6]  }
  0x56   :  { %s5630_s25 = scalar_lea.hbm %s6515_s6, 10240 }
  0x57   :  { %p5631_p12 = scmp.ne.s32.totalorder %s6515_s6, %s5630_s25  ;;  %p5634_p13 = scmp.lt.u32.totalorder %s5630_s25, %s6515_s6 }
  0x59   :  { %p5636_p0 = pnand %p5634_p13, %p5631_p12 }
  0x5b   :  { %5639 = shalt.err (!%p5636_p0)
}
  0x5c   :  { %s5640_s3 = scalar_lea.vmem %s5863_s14, 10240  ;;  %p5645_p2 = scmp.lt.s32.totalorder %s5863_s14, %s5863_s14 }
  0x5d   :  { %p5641_p1 = scmp.ne.s32.totalorder %s5863_s14, %s5640_s3  ;;  %p5646_p3 = scmp.lt.s32.totalorder %s5640_s3, %s5640_s3 }
  0x5f   :  { %p5647_p4 = por %p5646_p3, %p5645_p2 }
  0x61   :  { %p5648_p5 = pnand %p5647_p4, %p5641_p1 }
  0x63   :  { %5651 = shalt.err (!%p5648_p5)
}
  0x64   :  { %84 = dma.hbm_to_vmem [thread:$0]  %s6515_s6, 10240, %s5863_s14, [#allocation9], %s5708_s20, %s5708_s20, %s5709_s21  }
  0x65   :  { %s5714_s28 = smov [#allocation13]   ;;  %s5652_s26 = scalar_lea.hbm %s6520_s11, 2048 }
  0x66   :  { %s108_s15 = sshll.u32 %s5714_s28, 4  ;;  %p5653_p6 = scmp.ne.s32.totalorder %s6520_s11, %s5652_s26  ;;  %s109_s15 = int_to_ptr.vmem [resolvable:$true] %s108_s15 }
  0x67   :  { %p5656_p7 = scmp.lt.u32.totalorder %s5652_s26, %s6520_s11 }
  0x69   :  { %p5658_p8 = pnand %p5656_p7, %p5653_p6 }
  0x6b   :  { %5661 = shalt.err (!%p5658_p8)
}
  0x6c   :  { %s5662_s23 = scalar_lea.vmem %s109_s15, 2048  ;;  %p5667_p10 = scmp.lt.s32.totalorder %s109_s15, %s109_s15 }
  0x6d   :  { %p5663_p9 = scmp.ne.s32.totalorder %s109_s15, %s5662_s23  ;;  %p5668_p11 = scmp.lt.s32.totalorder %s5662_s23, %s5662_s23 }
  0x6f   :  { %p5669_p12 = por %p5668_p11, %p5667_p10 }
  0x71   :  { %p5670_p13 = pnand %p5669_p12, %p5663_p9 }
  0x73   :  { %5673 = shalt.err (!%p5670_p13)
}
  0x74   :  { %114 = dma.hbm_to_vmem [thread:$0]  %s6520_s11, 2048, %s109_s15, [#allocation12], %s5708_s20, %s5708_s20, %s5709_s21  }
  0x75   :  { %5696 = dma.done.wait [#allocation3], 2048  }
  0x76   :  { %5697 = vsyncadd [#allocation3], 4294965248 }
  0x77   :  { %5698 = dma.done.wait [#allocation6], 2176  }
  0x78   :  { %5699 = vsyncadd [#allocation6], 4294965120 }
  0x79   :  { %5700 = dma.done.wait [#allocation9], 20480  }
  0x7a   :  { %5701 = vsyncadd [#allocation9], 4294946816 }
  0x7b   :  { %5702 = dma.done.wait [#allocation12], 4096  }
  0x7c   :  { %5703 = vsyncadd [#allocation12], 4294963200  ;;  %v138_v0 = vld [vmem:[#allocation5] sm:$0xff]  ;;  %v139_v1 = vld [vmem:[#allocation5 + $0x8] sm:$0xff]  ;;  %vm5716_vm0 = vmmov 0   ;;  %s5718_s26 = smov [#allocation14]  }
  0x7d   :  { %v140_v2 = vld [vmem:[#allocation5 + $0x10] sm:$0xff]  ;;  %v4924_v3 = vpack.c.bf16 %v139_v1, %v138_v0  ;;  %v141_v4 = vld [vmem:[#allocation5 + $0x18] sm:$0xff]  ;;  %v142_v6 = vld [vmem:[#allocation5 + $0x20] sm:$0xff]  ;;  %s3398_s17 = sshll.u32 %s5718_s26, 4  ;;  %s3399_s17 = int_to_ptr.vmem [resolvable:$true] %s3398_s17 }
  0x7e   :  { %v4928_v5 = vpack.c.bf16 %v141_v4, %v140_v2  ;;  %v143_v7 = vld [vmem:[#allocation5 + $0x28] sm:$0xff]  ;;  %v5912_v9 = vld [vmem:[#allocation2] sm:$0xff]  ;;  %v144_v10 = vld [vmem:[#allocation5 + $0x30] sm:$0xff]  ;;  %s5674_s0 = scalar_lea.vmem %s3399_s17, 128  ;;  %p5679_p1 = scmp.lt.s32.totalorder %s3399_s17, %s3399_s17 }
  0x7f   :  { %4925 = vmatprep.subr.bf16.mxu0 %v4924_v3  ;;  %v4932_v8 = vpack.c.bf16 %v143_v7, %v142_v6  ;;  %v145_v11 = vld [vmem:[#allocation5 + $0x38] sm:$0xff]  ;;  %4011 = vmatprep.mubr.f32.mxu0 %v5912_v9  ;;  %v146_v13 = vld [vmem:[#allocation5 + $0x40] sm:$0xff]  ;;  %v147_v14 = vld [vmem:[#allocation5 + $0x48] sm:$0xff]  ;;  %p5675_p0 = scmp.ne.s32.totalorder %s3399_s17, %s5674_s0  ;;  %p5680_p2 = scmp.lt.s32.totalorder %s5674_s0, %s5674_s0 }
  0x80   :  { %4927 = vmatpush3.bf16.msra.mxu0 %v4924_v3  ;;  %v4936_v12 = vpack.c.bf16 %v145_v11, %v144_v10  ;;  %v315_v15 = vld [vmem:[#allocation8] sm:$0xff]  ;;  %v316_v16 = vld [vmem:[#allocation8 + $0x8] sm:$0xff]  ;;  %v317_v17 = vld [vmem:[#allocation8 + $0x10] sm:$0xff]  ;;  %v4940_v21 = vpack.c.bf16 %v147_v14, %v146_v13 }
  0x81   :  { %4929 = vmatprep.subr.bf16.mxu0 %v4928_v5  ;;  %v318_v18 = vld [vmem:[#allocation8 + $0x18] sm:$0xff]  ;;  %v4956_v19 = vpack.c.bf16 %v316_v16, %v315_v15  ;;  %v319_v22 = vld [vmem:[#allocation8 + $0x20] sm:$0xff]  ;;  %v320_v23 = vld [vmem:[#allocation8 + $0x28] sm:$0xff]  ;;  %p5681_p3 = por %p5680_p2, %p5679_p1 }
  0x82   :  { %v4960_v20 = vpack.c.bf16 %v318_v18, %v317_v17  ;;  %v148_v24 = vld [vmem:[#allocation5 + $0x50] sm:$0xff]  ;;  %v149_v25 = vld [vmem:[#allocation5 + $0x58] sm:$0xff]  ;;  %v4964_v26 = vpack.c.bf16 %v320_v23, %v319_v22  ;;  %v322_v29 = vld [vmem:[#allocation8 + $0x38] sm:$0xff] }
  0x83   :  { %4957 = vmatprep.subr.bf16.mxu1 %v4956_v19  ;;  %v4944_v27 = vpack.c.bf16 %v149_v25, %v148_v24  ;;  %v321_v28 = vld [vmem:[#allocation8 + $0x30] sm:$0xff]  ;;  %v150_v30 = vld [vmem:[#allocation5 + $0x60] sm:$0xff]  ;;  %v151_v31 = vld [vmem:[#allocation5 + $0x68] sm:$0xff]  ;;  %p5682_p4 = pnand %p5681_p3, %p5675_p0 }
  0x84   :  { %4931 = vmatpush3.bf16.msra.mxu0 %v4928_v5  ;;  %4959 = vmatpush3.bf16.msra.mxu1 %v4956_v19  ;;  %v4968_v32 = vpack.c.bf16 %v322_v29, %v321_v28  ;;  %v4948_v33 = vpack.c.bf16 %v151_v31, %v150_v30  ;;  %v323_v34 = vld [vmem:[#allocation8 + $0x40] sm:$0xff]  ;;  %v324_v35 = vld [vmem:[#allocation8 + $0x48] sm:$0xff]  ;;  %v153_v37 = vld [vmem:[#allocation5 + $0x78] sm:$0xff] }
  0x85   :  { %4933 = vmatprep.subr.bf16.mxu0 %v4932_v8  ;;  %4961 = vmatprep.subr.bf16.mxu1 %v4960_v20  ;;  %v152_v36 = vld [vmem:[#allocation5 + $0x70] sm:$0xff]  ;;  %v4972_v38 = vpack.c.bf16 %v324_v35, %v323_v34  ;;  %v325_v40 = vld [vmem:[#allocation8 + $0x50] sm:$0xff]  ;;  %v326_v41 = vld [vmem:[#allocation8 + $0x58] sm:$0xff] }
  0x86   :  { %v4952_v39 = vpack.c.bf16 %v153_v37, %v152_v36  ;;  %v4976_v42 = vpack.c.bf16 %v326_v41, %v325_v40  ;;  %v327_v43 = vld [vmem:[#allocation8 + $0x60] sm:$0xff]  ;;  %v328_v44 = vld [vmem:[#allocation8 + $0x68] sm:$0xff]  ;;  %v329_v48 = vld [vmem:[#allocation8 + $0x70] sm:$0xff] }
  0x87   :  { %v5915_v45 = vld [vmem:[#allocation2 + $0x8] sm:$0xff]  ;;  %v4980_v46 = vpack.c.bf16 %v328_v44, %v327_v43  ;;  %v5917_v47 = vld [vmem:[#allocation2 + $0x10] sm:$0xff]  ;;  %v330_v49 = vld [vmem:[#allocation8 + $0x78] sm:$0xff] }
  0x88   :  { %4935 = vmatpush3.bf16.msra.mxu0 %v4932_v8  ;;  %4963 = vmatpush3.bf16.msra.mxu1 %v4960_v20  ;;  %v5921_v50 = vld [vmem:[#allocation2 + $0x18] sm:$0xff]  ;;  %v4984_v51 = vpack.c.bf16 %v330_v49, %v329_v48  ;;  %v5923_v52 = vld [vmem:[#allocation2 + $0x20] sm:$0xff]  ;;  %v5927_v53 = vld [vmem:[#allocation2 + $0x28] sm:$0xff] }
  0x89   :  { %4937 = vmatprep.subr.bf16.mxu0 %v4936_v12  ;;  %4965 = vmatprep.subr.bf16.mxu1 %v4964_v26  ;;  %v5929_v54 = vld [vmem:[#allocation2 + $0x30] sm:$0xff]  ;;  %v5933_v55 = vld [vmem:[#allocation2 + $0x38] sm:$0xff]  ;;  %v5935_v56 = vld [vmem:[#allocation2 + $0x40] sm:$0xff] }
  0x8a   :  { %v5939_v57 = vld [vmem:[#allocation2 + $0x48] sm:$0xff]  ;;  %v5941_v58 = vld [vmem:[#allocation2 + $0x50] sm:$0xff]  ;;  %v5945_v59 = vld [vmem:[#allocation2 + $0x58] sm:$0xff] }
  0x8b   :  { %v5947_v60 = vld [vmem:[#allocation2 + $0x60] sm:$0xff]  ;;  %v5951_v61 = vld [vmem:[#allocation2 + $0x68] sm:$0xff]  ;;  %v5953_v62 = vld [vmem:[#allocation2 + $0x70] sm:$0xff] }
  0x8c   :  { %4939 = vmatpush3.bf16.msra.mxu0 %v4936_v12  ;;  %4967 = vmatpush3.bf16.msra.mxu1 %v4964_v26  ;;  %v5957_v63 = vld [vmem:[#allocation2 + $0x78] sm:$0xff]  ;;  %v538_v0 = vld [vmem:[#allocation10] sm:$0xff]  ;;  %v539_v1 = vld [vmem:[#allocation10 + $0x8] sm:$0xff] }
  0x8d   :  { %4941 = vmatprep.subr.bf16.mxu0 %v4940_v21  ;;  %4969 = vmatprep.subr.bf16.mxu1 %v4968_v32  ;;  %v540_v2 = vld [vmem:[#allocation10 + $0x10] sm:$0xff]  ;;  %v4988_v3 = vpack.c.bf16 %v539_v1, %v538_v0  ;;  %v541_v4 = vld [vmem:[#allocation10 + $0x18] sm:$0xff]  ;;  %v542_v6 = vld [vmem:[#allocation10 + $0x20] sm:$0xff] }
  0x8e   :  { %v4992_v5 = vpack.c.bf16 %v541_v4, %v540_v2  ;;  %v543_v7 = vld [vmem:[#allocation10 + $0x28] sm:$0xff]  ;;  %v544_v10 = vld [vmem:[#allocation10 + $0x30] sm:$0xff]  ;;  %v545_v11 = vld [vmem:[#allocation10 + $0x38] sm:$0xff] }
  0x8f   :  { %v4996_v8 = vpack.c.bf16 %v543_v7, %v542_v6  ;;  %v5000_v12 = vpack.c.bf16 %v545_v11, %v544_v10  ;;  %v546_v13 = vld [vmem:[#allocation10 + $0x40] sm:$0xff]  ;;  %v547_v14 = vld [vmem:[#allocation10 + $0x48] sm:$0xff]  ;;  %v548_v16 = vld [vmem:[#allocation10 + $0x50] sm:$0xff] }
  0x90   :  { %4943 = vmatpush3.bf16.msra.mxu0 %v4940_v21  ;;  %4971 = vmatpush3.bf16.msra.mxu1 %v4968_v32  ;;  %v5004_v15 = vpack.c.bf16 %v547_v14, %v546_v13  ;;  %v549_v17 = vld [vmem:[#allocation10 + $0x58] sm:$0xff]  ;;  %v550_v35 = vld [vmem:[#allocation10 + $0x60] sm:$0xff]  ;;  %v551_v36 = vld [vmem:[#allocation10 + $0x68] sm:$0xff] }
  0x91   :  { %4945 = vmatprep.subr.bf16.mxu0 %v4944_v27  ;;  %4973 = vmatprep.subr.bf16.mxu1 %v4972_v38  ;;  %v5008_v18 = vpack.c.bf16 %v549_v17, %v548_v16  ;;  %v5012_v37 = vpack.c.bf16 %v551_v36, %v550_v35  ;;  %v5964_v41 = vld [vmem:[%s6513_s4] ss:$0 sm:$0xff] }
  0x92   :  { %v5969_v43 = vld [vmem:[%s6514_s5] ss:$0 sm:$0xff] }
  0x94   :  { %4947 = vmatpush3.bf16.msra.mxu0 %v4944_v27  ;;  %4975 = vmatpush3.bf16.msra.mxu1 %v4972_v38  ;;  %v552_v38 = vld [vmem:[#allocation10 + $0x70] sm:$0xff] }
  0x95   :  { %4949 = vmatprep.subr.bf16.mxu0 %v4948_v33  ;;  %4977 = vmatprep.subr.bf16.mxu1 %v4976_v42 }
  0x98   :  { %4951 = vmatpush3.bf16.msra.mxu0 %v4948_v33  ;;  %4979 = vmatpush3.bf16.msra.mxu1 %v4976_v42 }
  0x99   :  { %4953 = vmatprep.subr.bf16.mxu0 %v4952_v39  ;;  %4981 = vmatprep.subr.bf16.mxu1 %v4980_v46 }
  0x9c   :  { %4955 = vmatpush3.bf16.msra.mxu0 %v4952_v39  ;;  %4983 = vmatpush3.bf16.msra.mxu1 %v4980_v46  ;;  %v553_v39 = vld [vmem:[#allocation10 + $0x78] sm:$0xff] }
  0x9d   :  { %4985 = vmatprep.subr.bf16.mxu1 %v4984_v51  ;;  %4989 = vmatprep.subr.bf16.mxu0 %v4988_v3  ;;  %v5016_v40 = vpack.c.bf16 %v553_v39, %v552_v38 }
  0x9f   :  { %4012 = vmatmul.mubr.f32.vlgmr.msra.gmra.mrb[0].mxu0 %v5915_v45 }
  0xa0   :  { %4014 = vmatprep.mubr.f32.mxu0 %v5917_v47  ;;  %4987 = vmatpush3.bf16.msra.mxu1 %v4984_v51 }
  0xa1   :  { %4991 = vmatpush3.bf16.msra.mxu0 %v4988_v3 }
  0xa2   :  { %4993 = vmatprep.subr.bf16.mxu0 %v4992_v5 }
  0xa3   :  { %4015 = vmatmul.mubr.f32.gmra.mrb[2].mxu0 %v5921_v50 }
  0xa4   :  { %4017 = vmatprep.mubr.f32.mxu0 %v5923_v52 }
  0xa5   :  { %4995 = vmatpush3.bf16.msra.mxu0 %v4992_v5 }
  0xa6   :  { %4997 = vmatprep.subr.bf16.mxu0 %v4996_v8 }
  0xa7   :  { %4018 = vmatmul.mubr.f32.gmra.mrb[4].mxu0 %v5927_v53 }
  0xa8   :  { %4020 = vmatprep.mubr.f32.mxu0 %v5929_v54 }
  0xa9   :  { %4999 = vmatpush3.bf16.msra.mxu0 %v4996_v8 }
  0xaa   :  { %5001 = vmatprep.subr.bf16.mxu0 %v5000_v12 }
  0xab   :  { %4021 = vmatmul.mubr.f32.gmra.mrb[6].mxu0 %v5933_v55 }
  0xac   :  { %4023 = vmatprep.mubr.f32.mxu0 %v5935_v56 }
  0xad   :  { %5003 = vmatpush3.bf16.msra.mxu0 %v5000_v12 }
  0xae   :  { %5005 = vmatprep.subr.bf16.mxu0 %v5004_v15 }
  0xaf   :  { %4024 = vmatmul.mubr.f32.gmra.mrb[8].mxu0 %v5939_v57 }
  0xb0   :  { %4026 = vmatprep.mubr.f32.mxu0 %v5941_v58 }
  0xb1   :  { %5007 = vmatpush3.bf16.msra.mxu0 %v5004_v15 }
  0xb2   :  { %5009 = vmatprep.subr.bf16.mxu0 %v5008_v18 }
  0xb3   :  { %4027 = vmatmul.mubr.f32.gmra.mrb[10].mxu0 %v5945_v59 }
  0xb4   :  { %4029 = vmatprep.mubr.f32.mxu0 %v5947_v60 }
  0xb5   :  { %5011 = vmatpush3.bf16.msra.mxu0 %v5008_v18 }
  0xb6   :  { %5013 = vmatprep.subr.bf16.mxu0 %v5012_v37 }
  0xb7   :  { %4030 = vmatmul.mubr.f32.gmra.mrb[12].mxu0 %v5951_v61 }
  0xb8   :  { %4032 = vmatprep.mubr.f32.mxu0 %v5953_v62 }
  0xb9   :  { %5015 = vmatpush3.bf16.msra.mxu0 %v5012_v37 }
  0xba   :  { %5017 = vmatprep.subr.bf16.mxu0 %v5016_v40 }
  0xbb   :  { %4033 = vmatmul.mubr.f32.gmra.mrb[14].mxu0 %v5957_v63 }
  0xbd   :  { %5019 = vmatpush3.bf16.msra.mxu0 %v5016_v40 }
 0x172   :  { %v4013_v19 = vpop.f32.mrb[0].mxu0 }
 0x173   :  { %v236_v20 = vpop.f32.mrb[1].mxu0 }
 0x174   :  { %4067 = vmatprep.mubr.f32.mxu1 %v236_v20 }
 0x175   :  { %4068 = vmatmul.mubr.f32.vlgmr.msra.gmra.mrb[0].mxu1 %v4013_v19 }
 0x176   :  { %v4016_v21 = vpop.f32.mrb[2].mxu0 }
 0x177   :  { %v246_v22 = vpop.f32.mrb[3].mxu0 }
 0x178   :  { %4070 = vmatprep.mubr.f32.mxu1 %v246_v22 }
 0x179   :  { %4071 = vmatmul.mubr.f32.gmra.mrb[2].mxu1 %v4016_v21 }
 0x17a   :  { %v4019_v23 = vpop.f32.mrb[4].mxu0 }
 0x17b   :  { %v256_v24 = vpop.f32.mrb[5].mxu0 }
 0x17c   :  { %4073 = vmatprep.mubr.f32.mxu1 %v256_v24 }
 0x17d   :  { %4074 = vmatmul.mubr.f32.gmra.mrb[4].mxu1 %v4019_v23 }
 0x17e   :  { %v4022_v25 = vpop.f32.mrb[6].mxu0 }
 0x17f   :  { %v266_v26 = vpop.f32.mrb[7].mxu0 }
 0x180   :  { %4076 = vmatprep.mubr.f32.mxu1 %v266_v26 }
 0x181   :  { %4077 = vmatmul.mubr.f32.gmra.mrb[6].mxu1 %v4022_v25 }
 0x182   :  { %v4025_v27 = vpop.f32.mrb[8].mxu0 }
 0x183   :  { %v276_v28 = vpop.f32.mrb[9].mxu0 }
 0x184   :  { %4079 = vmatprep.mubr.f32.mxu1 %v276_v28 }
 0x185   :  { %4080 = vmatmul.mubr.f32.gmra.mrb[8].mxu1 %v4025_v27 }
 0x186   :  { %v4028_v29 = vpop.f32.mrb[10].mxu0 }
 0x187   :  { %v286_v30 = vpop.f32.mrb[11].mxu0 }
 0x188   :  { %4082 = vmatprep.mubr.f32.mxu1 %v286_v30 }
 0x189   :  { %4083 = vmatmul.mubr.f32.gmra.mrb[10].mxu1 %v4028_v29 }
 0x18a   :  { %v4031_v31 = vpop.f32.mrb[12].mxu0 }
 0x18b   :  { %v296_v32 = vpop.f32.mrb[13].mxu0 }
 0x18c   :  { %4085 = vmatprep.mubr.f32.mxu1 %v296_v32 }
 0x18d   :  { %4086 = vmatmul.mubr.f32.gmra.mrb[12].mxu1 %v4031_v31 }
 0x18e   :  { %v4034_v33 = vpop.f32.mrb[14].mxu0 }
 0x18f   :  { %v306_v34 = vpop.f32.mrb[15].mxu0 }
 0x190   :  { %4088 = vmatprep.mubr.f32.mxu1 %v306_v34 }
 0x191   :  { %4089 = vmatmul.mubr.f32.gmra.mrb[14].mxu1 %v4034_v33 }
 0x192   :  { %4179 = vmatprep.mubr.f32.mxu1 %v5912_v9 }
 0x248   :  { %v4069_v42 = vpop.f32.mrb[0].mxu1 }
 0x249   :  { %v484_v44 = vmul.f32 %v4069_v42, %v5964_v41  ;;  %v397_v46 = vpop.f32.mrb[1].mxu1 }
 0x24a   :  { %v483_v48 = vmul.f32 %v5964_v41, %v397_v46 }
 0x24b   :  { %v507_v49 = vadd.f32 %v5969_v43, %v484_v44 }
 0x24c   :  { %v506_v51 = vadd.f32 %v5969_v43, %v483_v48  ;;  %v4072_v0 = vpop.f32.mrb[2].mxu1 }
 0x24d   :  { %v486_v1 = vmul.f32 %v4072_v0, %v5964_v41  ;;  %v407_v2 = vpop.f32.mrb[3].mxu1  ;;  %v523_v5 = vmax.f32 %v507_v49, 0.0 }
 0x24e   :  { %v522_v3 = vmax.f32 %v506_v51, 0.0  ;;  %v485_v4 = vmul.f32 %v5964_v41, %v407_v2 }
 0x24f   :  { %v509_v6 = vadd.f32 %v5969_v43, %v486_v1 }
 0x250   :  { %v508_v7 = vadd.f32 %v5969_v43, %v485_v4  ;;  %v4075_v8 = vpop.f32.mrb[4].mxu1  ;;  %4123 = vmatprep.mubr.f32.mxu0 %v522_v3 }
 0x251   :  { %v488_v10 = vmul.f32 %v4075_v8, %v5964_v41  ;;  %v417_v11 = vpop.f32.mrb[5].mxu1  ;;  %4124 = vmatmul.mubr.f32.vlgmr.msra.gmra.mrb[16].mxu0 %v523_v5  ;;  %v525_v14 = vmax.f32 %v509_v6, 0.0 }
 0x252   :  { %v524_v12 = vmax.f32 %v508_v7, 0.0  ;;  %v487_v13 = vmul.f32 %v5964_v41, %v417_v11 }
 0x253   :  { %v511_v15 = vadd.f32 %v5969_v43, %v488_v10 }
 0x254   :  { %v510_v16 = vadd.f32 %v5969_v43, %v487_v13  ;;  %v4078_v17 = vpop.f32.mrb[6].mxu1  ;;  %4126 = vmatprep.mubr.f32.mxu0 %v524_v12  ;;  %v907_v13 = vld [vmem:[#allocation8 + $0x80] sm:$0xff] }
 0x255   :  { %v490_v18 = vmul.f32 %v4078_v17, %v5964_v41  ;;  %v427_v19 = vpop.f32.mrb[7].mxu1  ;;  %4127 = vmatmul.mubr.f32.gmra.mrb[18].mxu0 %v525_v14  ;;  %v527_v22 = vmax.f32 %v511_v15, 0.0  ;;  %v908_v14 = vld [vmem:[#allocation8 + $0x88] sm:$0xff]  ;;  %v909_v15 = vld [vmem:[#allocation8 + $0x90] sm:$0xff]  ;;  %v910_v17 = vld [vmem:[#allocation8 + $0x98] sm:$0xff] }
 0x256   :  { %v526_v20 = vmax.f32 %v510_v16, 0.0  ;;  %v489_v21 = vmul.f32 %v5964_v41, %v427_v19  ;;  %v5052_v16 = vpack.c.bf16 %v908_v14, %v907_v13  ;;  %v911_v19 = vld [vmem:[#allocation8 + $0xa0] sm:$0xff] }
 0x257   :  { %v513_v23 = vadd.f32 %v5969_v43, %v490_v18  ;;  %v5056_v18 = vpack.c.bf16 %v910_v17, %v909_v15 }
 0x258   :  { %v512_v24 = vadd.f32 %v5969_v43, %v489_v21  ;;  %v4081_v25 = vpop.f32.mrb[8].mxu1  ;;  %4129 = vmatprep.mubr.f32.mxu0 %v526_v20  ;;  %v912_v20 = vld [vmem:[#allocation8 + $0xa8] sm:$0xff]  ;;  %5053 = vmatprep.subr.bf16.mxu0 %v5052_v16  ;;  %v913_v21 = vld [vmem:[#allocation8 + $0xb0] sm:$0xff] }
 0x259   :  { %v492_v26 = vmul.f32 %v4081_v25, %v5964_v41  ;;  %v437_v27 = vpop.f32.mrb[9].mxu1  ;;  %4130 = vmatmul.mubr.f32.gmra.mrb[20].mxu0 %v527_v22  ;;  %v529_v30 = vmax.f32 %v513_v23, 0.0  ;;  %v915_v23 = vld [vmem:[#allocation8 + $0xc0] sm:$0xff] }
 0x25a   :  { %v528_v28 = vmax.f32 %v512_v24, 0.0  ;;  %v491_v29 = vmul.f32 %v5964_v41, %v437_v27  ;;  %5055 = vmatpush3.bf16.msra.mxu0 %v5052_v16  ;;  %v916_v24 = vld [vmem:[#allocation8 + $0xc8] sm:$0xff]  ;;  %v918_v27 = vld [vmem:[#allocation8 + $0xd8] sm:$0xff] }
 0x25b   :  { %v515_v31 = vadd.f32 %v5969_v43, %v492_v26  ;;  %5057 = vmatprep.subr.bf16.mxu0 %v5056_v18  ;;  %v5068_v25 = vpack.c.bf16 %v916_v24, %v915_v23  ;;  %v917_v26 = vld [vmem:[#allocation8 + $0xd0] sm:$0xff] }
 0x25c   :  { %v514_v32 = vadd.f32 %v5969_v43, %v491_v29  ;;  %v4084_v33 = vpop.f32.mrb[10].mxu1  ;;  %4132 = vmatprep.mubr.f32.mxu0 %v528_v28  ;;  %v5072_v28 = vpack.c.bf16 %v918_v27, %v917_v26  ;;  %v919_v29 = vld [vmem:[#allocation8 + $0xe0] sm:$0xff] }
 0x25d   :  { %v494_v34 = vmul.f32 %v4084_v33, %v5964_v41  ;;  %v447_v35 = vpop.f32.mrb[11].mxu1  ;;  %4133 = vmatmul.mubr.f32.gmra.mrb[22].mxu0 %v529_v30  ;;  %v531_v38 = vmax.f32 %v515_v31, 0.0  ;;  %v920_v30 = vld [vmem:[#allocation8 + $0xe8] sm:$0xff]  ;;  %v922_v33 = vld [vmem:[#allocation8 + $0xf8] sm:$0xff] }
 0x25e   :  { %v530_v36 = vmax.f32 %v514_v32, 0.0  ;;  %v493_v37 = vmul.f32 %v5964_v41, %v447_v35  ;;  %5059 = vmatpush3.bf16.msra.mxu0 %v5056_v18  ;;  %v5076_v31 = vpack.c.bf16 %v920_v30, %v919_v29  ;;  %v921_v32 = vld [vmem:[#allocation8 + $0xf0] sm:$0xff]  ;;  %v6006_v35 = vld [vmem:[%s6516_s7] ss:$0 sm:$0xff] }
 0x25f   :  { %v517_v39 = vadd.f32 %v5969_v43, %v494_v34  ;;  %v5080_v34 = vpack.c.bf16 %v922_v33, %v921_v32 }
 0x260   :  { %v516_v40 = vadd.f32 %v5969_v43, %v493_v37  ;;  %v4087_v42 = vpop.f32.mrb[12].mxu1  ;;  %4135 = vmatprep.mubr.f32.mxu0 %v530_v36  ;;  %v6011_v37 = vld [vmem:[%s6517_s8] ss:$0 sm:$0xff] }
 0x261   :  { %v496_v44 = vmul.f32 %v4087_v42, %v5964_v41  ;;  %v457_v46 = vpop.f32.mrb[13].mxu1  ;;  %4136 = vmatmul.mubr.f32.gmra.mrb[24].mxu0 %v531_v38  ;;  %v533_v51 = vmax.f32 %v517_v39, 0.0 }
 0x262   :  { %v532_v48 = vmax.f32 %v516_v40, 0.0  ;;  %v495_v49 = vmul.f32 %v5964_v41, %v457_v46 }
 0x263   :  { %v519_v0 = vadd.f32 %v5969_v43, %v496_v44 }
 0x264   :  { %v518_v1 = vadd.f32 %v5969_v43, %v495_v49  ;;  %v4090_v2 = vpop.f32.mrb[14].mxu1  ;;  %4138 = vmatprep.mubr.f32.mxu0 %v532_v48 }
 0x265   :  { %v498_v3 = vmul.f32 %v4090_v2, %v5964_v41  ;;  %v467_v4 = vpop.f32.mrb[15].mxu1  ;;  %4139 = vmatmul.mubr.f32.gmra.mrb[26].mxu0 %v533_v51  ;;  %v535_v7 = vmax.f32 %v519_v0, 0.0 }
 0x266   :  { %v534_v5 = vmax.f32 %v518_v1, 0.0  ;;  %v497_v6 = vmul.f32 %v5964_v41, %v467_v4  ;;  %v5060_v41 = vpack.c.bf16 %v912_v20, %v911_v19 }
 0x267   :  { %v521_v8 = vadd.f32 %v5969_v43, %v498_v3 }
 0x268   :  { %v520_v10 = vadd.f32 %v5969_v43, %v497_v6  ;;  %4141 = vmatprep.mubr.f32.mxu0 %v534_v5  ;;  %v914_v43 = vld [vmem:[#allocation8 + $0xb8] sm:$0xff]  ;;  %5061 = vmatprep.subr.bf16.mxu0 %v5060_v41 }
 0x269   :  { %4142 = vmatmul.mubr.f32.gmra.mrb[28].mxu0 %v535_v7  ;;  %v537_v12 = vmax.f32 %v521_v8, 0.0  ;;  %v5064_v22 = vpack.c.bf16 %v914_v43, %v913_v21 }
 0x26a   :  { %v536_v11 = vmax.f32 %v520_v10, 0.0  ;;  %5063 = vmatpush3.bf16.msra.mxu0 %v5060_v41 }
 0x26b   :  { %5065 = vmatprep.subr.bf16.mxu0 %v5064_v22 }
 0x26c   :  { %4144 = vmatprep.mubr.f32.mxu0 %v536_v11 }
 0x26d   :  { %4145 = vmatmul.mubr.f32.gmra.mrb[30].mxu0 %v537_v12 }
 0x26e   :  { %5067 = vmatpush3.bf16.msra.mxu0 %v5064_v22 }
 0x26f   :  { %5069 = vmatprep.subr.bf16.mxu0 %v5068_v25 }
 0x272   :  { %5071 = vmatpush3.bf16.msra.mxu0 %v5068_v25 }
 0x273   :  { %5073 = vmatprep.subr.bf16.mxu0 %v5072_v28 }
 0x276   :  { %5075 = vmatpush3.bf16.msra.mxu0 %v5072_v28 }
 0x277   :  { %5077 = vmatprep.subr.bf16.mxu0 %v5076_v31 }
 0x27a   :  { %5079 = vmatpush3.bf16.msra.mxu0 %v5076_v31 }
 0x27b   :  { %5081 = vmatprep.subr.bf16.mxu0 %v5080_v34 }
 0x27e   :  { %5083 = vmatpush3.bf16.msra.mxu0 %v5080_v34 }
 0x324   :  { %v4125_v36 = vpop.f32.mrb[16].mxu0 }
 0x325   :  { %v707_v38 = vmul.f32 %v4125_v36, %v6006_v35  ;;  %v620_v39 = vpop.f32.mrb[17].mxu0 }
 0x326   :  { %v706_v40 = vmul.f32 %v6006_v35, %v620_v39 }
 0x327   :  { %v730_v42 = vadd.f32 %v6011_v37, %v707_v38 }
 0x328   :  { %v729_v44 = vadd.f32 %v6011_v37, %v706_v40  ;;  %v4128_v46 = vpop.f32.mrb[18].mxu0 }
 0x329   :  { %v746_v48 = vmax.f32 %v730_v42, 0.0  ;;  %v709_v49 = vmul.f32 %v4128_v46, %v6006_v35  ;;  %v630_v51 = vpop.f32.mrb[19].mxu0 }
 0x32a   :  { %v745_v0 = vmax.f32 %v729_v44, 0.0  ;;  %v708_v1 = vmul.f32 %v6006_v35, %v630_v51 }
 0x32b   :  { %v732_v2 = vadd.f32 %v6011_v37, %v709_v49 }
 0x32c   :  { %v731_v3 = vadd.f32 %v6011_v37, %v708_v1  ;;  %v4131_v4 = vpop.f32.mrb[20].mxu0  ;;  %v5020_v5 = vpack.c.bf16 %v746_v48, %v745_v0 }
 0x32d   :  { %v748_v6 = vmax.f32 %v732_v2, 0.0  ;;  %v711_v7 = vmul.f32 %v4131_v4, %v6006_v35  ;;  %v640_v8 = vpop.f32.mrb[21].mxu0 }
 0x32e   :  { %v747_v10 = vmax.f32 %v731_v3, 0.0  ;;  %v710_v11 = vmul.f32 %v6006_v35, %v640_v8  ;;  %5021 = vmatprep.subr.bf16.mxu1 %v5020_v5 }
 0x32f   :  { %v734_v12 = vadd.f32 %v6011_v37, %v711_v7  ;;  %5023 = vmatpush3.bf16.msra.mxu1 %v5020_v5 }
 0x330   :  { %v733_v13 = vadd.f32 %v6011_v37, %v710_v11  ;;  %v4134_v14 = vpop.f32.mrb[22].mxu0  ;;  %v5024_v15 = vpack.c.bf16 %v748_v6, %v747_v10 }
 0x331   :  { %v750_v16 = vmax.f32 %v734_v12, 0.0  ;;  %v713_v17 = vmul.f32 %v4134_v14, %v6006_v35  ;;  %v650_v18 = vpop.f32.mrb[23].mxu0 }
 0x332   :  { %v749_v19 = vmax.f32 %v733_v13, 0.0  ;;  %v712_v20 = vmul.f32 %v6006_v35, %v650_v18  ;;  %5025 = vmatprep.subr.bf16.mxu1 %v5024_v15 }
 0x333   :  { %v736_v41 = vadd.f32 %v6011_v37, %v713_v17  ;;  %5027 = vmatpush3.bf16.msra.mxu1 %v5024_v15 }
 0x334   :  { %v735_v21 = vadd.f32 %v6011_v37, %v712_v20  ;;  %v4137_v43 = vpop.f32.mrb[24].mxu0  ;;  %v5028_v22 = vpack.c.bf16 %v750_v16, %v749_v19 }
 0x335   :  { %v752_v23 = vmax.f32 %v736_v41, 0.0  ;;  %v715_v24 = vmul.f32 %v4137_v43, %v6006_v35  ;;  %v660_v25 = vpop.f32.mrb[25].mxu0 }
 0x336   :  { %v751_v26 = vmax.f32 %v735_v21, 0.0  ;;  %v714_v27 = vmul.f32 %v6006_v35, %v660_v25  ;;  %5029 = vmatprep.subr.bf16.mxu1 %v5028_v22 }
 0x337   :  { %v738_v28 = vadd.f32 %v6011_v37, %v715_v24  ;;  %5031 = vmatpush3.bf16.msra.mxu1 %v5028_v22 }
 0x338   :  { %v737_v29 = vadd.f32 %v6011_v37, %v714_v27  ;;  %v4140_v30 = vpop.f32.mrb[26].mxu0  ;;  %v5032_v31 = vpack.c.bf16 %v752_v23, %v751_v26 }
 0x339   :  { %v754_v32 = vmax.f32 %v738_v28, 0.0  ;;  %v717_v33 = vmul.f32 %v4140_v30, %v6006_v35  ;;  %v670_v34 = vpop.f32.mrb[27].mxu0 }
 0x33a   :  { %v753_v36 = vmax.f32 %v737_v29, 0.0  ;;  %v716_v38 = vmul.f32 %v6006_v35, %v670_v34  ;;  %5033 = vmatprep.subr.bf16.mxu1 %v5032_v31 }
 0x33b   :  { %v740_v39 = vadd.f32 %v6011_v37, %v717_v33  ;;  %5035 = vmatpush3.bf16.msra.mxu1 %v5032_v31  ;;  %v1146_v33 = vld [vmem:[#allocation10 + $0xe8] sm:$0xff] }
 0x33c   :  { %v739_v40 = vadd.f32 %v6011_v37, %v716_v38  ;;  %v4143_v42 = vpop.f32.mrb[28].mxu0  ;;  %v5036_v44 = vpack.c.bf16 %v754_v32, %v753_v36  ;;  %v1145_v32 = vld [vmem:[#allocation10 + $0xe0] sm:$0xff]  ;;  %v1147_v36 = vld [vmem:[#allocation10 + $0xf0] sm:$0xff]  ;;  %v1148_v38 = vld [vmem:[#allocation10 + $0xf8] sm:$0xff] }
 0x33d   :  { %v756_v46 = vmax.f32 %v740_v39, 0.0  ;;  %v719_v48 = vmul.f32 %v4143_v42, %v6006_v35  ;;  %v680_v49 = vpop.f32.mrb[29].mxu0  ;;  %v5108_v34 = vpack.c.bf16 %v1146_v33, %v1145_v32  ;;  %v5112_v39 = vpack.c.bf16 %v1148_v38, %v1147_v36 }
 0x33e   :  { %v755_v51 = vmax.f32 %v739_v40, 0.0  ;;  %v718_v0 = vmul.f32 %v6006_v35, %v680_v49  ;;  %5037 = vmatprep.subr.bf16.mxu1 %v5036_v44  ;;  %v6064_v40 = vld [vmem:[%s6513_s4 + $0x1] ss:$0 sm:$0xff] }
 0x33f   :  { %v742_v1 = vadd.f32 %v6011_v37, %v719_v48  ;;  %5039 = vmatpush3.bf16.msra.mxu1 %v5036_v44 }
 0x340   :  { %v741_v2 = vadd.f32 %v6011_v37, %v718_v0  ;;  %v4146_v3 = vpop.f32.mrb[30].mxu0  ;;  %v5040_v4 = vpack.c.bf16 %v756_v46, %v755_v51 }
 0x341   :  { %v758_v5 = vmax.f32 %v742_v1, 0.0  ;;  %v721_v6 = vmul.f32 %v4146_v3, %v6006_v35  ;;  %v690_v7 = vpop.f32.mrb[31].mxu0 }
 0x342   :  { %v757_v8 = vmax.f32 %v741_v2, 0.0  ;;  %v720_v10 = vmul.f32 %v6006_v35, %v690_v7  ;;  %5041 = vmatprep.subr.bf16.mxu1 %v5040_v4  ;;  %v1143_v35 = vld [vmem:[#allocation10 + $0xd0] sm:$0xff] }
 0x343   :  { %v744_v11 = vadd.f32 %v6011_v37, %v721_v6  ;;  %5043 = vmatpush3.bf16.msra.mxu1 %v5040_v4 }
 0x344   :  { %v743_v12 = vadd.f32 %v6011_v37, %v720_v10  ;;  %v5044_v13 = vpack.c.bf16 %v758_v5, %v757_v8  ;;  %v1144_v37 = vld [vmem:[#allocation10 + $0xd8] sm:$0xff] }
 0x345   :  { %v760_v14 = vmax.f32 %v744_v11, 0.0  ;;  %v5104_v17 = vpack.c.bf16 %v1144_v37, %v1143_v35 }
 0x346   :  { %v759_v15 = vmax.f32 %v743_v12, 0.0  ;;  %5045 = vmatprep.subr.bf16.mxu1 %v5044_v13 }
 0x347   :  { %5047 = vmatpush3.bf16.msra.mxu1 %v5044_v13 }
 0x348   :  { %v5048_v16 = vpack.c.bf16 %v760_v14, %v759_v15 }
 0x34a   :  { %5049 = vmatprep.subr.bf16.mxu1 %v5048_v16 }
 0x34b   :  { %5051 = vmatpush3.bf16.msra.mxu1 %v5048_v16 }
 0x34e   :  { %4180 = vmatmul.mubr.f32.vlgmr.msra.gmra.mrb[16].mxu1 %v5915_v45  ;;  %v1133_v45 = vld [vmem:[#allocation10 + $0x80] sm:$0xff] }
 0x34f   :  { %4182 = vmatprep.mubr.f32.mxu1 %v5917_v47  ;;  %v1134_v47 = vld [vmem:[#allocation10 + $0x88] sm:$0xff] }
 0x352   :  { %4183 = vmatmul.mubr.f32.gmra.mrb[18].mxu1 %v5921_v50  ;;  %v1135_v50 = vld [vmem:[#allocation10 + $0x90] sm:$0xff] }
 0x353   :  { %4185 = vmatprep.mubr.f32.mxu1 %v5923_v52  ;;  %v5084_v52 = vpack.c.bf16 %v1134_v47, %v1133_v45 }
 0x355   :  { %5085 = vmatprep.subr.bf16.mxu1 %v5084_v52 }
 0x356   :  { %4186 = vmatmul.mubr.f32.gmra.mrb[20].mxu1 %v5927_v53  ;;  %v1136_v53 = vld [vmem:[#allocation10 + $0x98] sm:$0xff] }
 0x357   :  { %4188 = vmatprep.mubr.f32.mxu1 %v5929_v54  ;;  %v5088_v54 = vpack.c.bf16 %v1136_v53, %v1135_v50  ;;  %5087 = vmatpush3.bf16.msra.mxu1 %v5084_v52 }
 0x359   :  { %5089 = vmatprep.subr.bf16.mxu1 %v5088_v54 }
 0x35a   :  { %4189 = vmatmul.mubr.f32.gmra.mrb[22].mxu1 %v5933_v55  ;;  %v1137_v55 = vld [vmem:[#allocation10 + $0xa0] sm:$0xff] }
 0x35b   :  { %4191 = vmatprep.mubr.f32.mxu1 %v5935_v56  ;;  %v1138_v56 = vld [vmem:[#allocation10 + $0xa8] sm:$0xff]  ;;  %5091 = vmatpush3.bf16.msra.mxu1 %v5088_v54 }
 0x35e   :  { %4192 = vmatmul.mubr.f32.gmra.mrb[24].mxu1 %v5939_v57  ;;  %v5092_v57 = vpack.c.bf16 %v1138_v56, %v1137_v55 }
 0x35f   :  { %4194 = vmatprep.mubr.f32.mxu1 %v5941_v58  ;;  %v1139_v58 = vld [vmem:[#allocation10 + $0xb0] sm:$0xff] }
 0x360   :  { %5093 = vmatprep.subr.bf16.mxu1 %v5092_v57 }
 0x361   :  { %5095 = vmatpush3.bf16.msra.mxu1 %v5092_v57 }
 0x362   :  { %4195 = vmatmul.mubr.f32.gmra.mrb[26].mxu1 %v5945_v59  ;;  %v1140_v59 = vld [vmem:[#allocation10 + $0xb8] sm:$0xff] }
 0x363   :  { %4197 = vmatprep.mubr.f32.mxu1 %v5947_v60  ;;  %v5096_v60 = vpack.c.bf16 %v1140_v59, %v1139_v58 }
 0x365   :  { %5097 = vmatprep.subr.bf16.mxu1 %v5096_v60 }
 0x366   :  { %4198 = vmatmul.mubr.f32.gmra.mrb[28].mxu1 %v5951_v61  ;;  %v1141_v61 = vld [vmem:[#allocation10 + $0xc0] sm:$0xff] }
 0x367   :  { %4200 = vmatprep.mubr.f32.mxu1 %v5953_v62  ;;  %v1142_v62 = vld [vmem:[#allocation10 + $0xc8] sm:$0xff]  ;;  %5099 = vmatpush3.bf16.msra.mxu1 %v5096_v60 }
 0x36a   :  { %4201 = vmatmul.mubr.f32.gmra.mrb[30].mxu1 %v5957_v63  ;;  %v5100_v63 = vpack.c.bf16 %v1142_v62, %v1141_v61 }
 0x36c   :  { %5101 = vmatprep.subr.bf16.mxu1 %v5100_v63 }
 0x36d   :  { %5103 = vmatpush3.bf16.msra.mxu1 %v5100_v63 }
 0x36e   :  { %5105 = vmatprep.subr.bf16.mxu1 %v5104_v17 }
 0x371   :  { %5107 = vmatpush3.bf16.msra.mxu1 %v5104_v17 }
 0x372   :  { %5109 = vmatprep.subr.bf16.mxu1 %v5108_v34 }
 0x375   :  { %5111 = vmatpush3.bf16.msra.mxu1 %v5108_v34 }
 0x376   :  { %5113 = vmatprep.subr.bf16.mxu1 %v5112_v39 }
 0x379   :  { %5115 = vmatpush3.bf16.msra.mxu1 %v5112_v39 }
 0x421   :  { %v4181_v18 = vpop.f32.mrb[16].mxu1 }
 0x422   :  { %v827_v19 = vpop.f32.mrb[17].mxu1 }
 0x423   :  { %4235 = vmatprep.mubr.f32.mxu0 %v827_v19 }
 0x424   :  { %4236 = vmatmul.mubr.f32.vlgmr.msra.gmra.mrb[32].mxu0 %v4181_v18 }
 0x425   :  { %v4184_v20 = vpop.f32.mrb[18].mxu1 }
 0x426   :  { %v837_v41 = vpop.f32.mrb[19].mxu1 }
 0x427   :  { %4238 = vmatprep.mubr.f32.mxu0 %v837_v41 }
 0x428   :  { %4239 = vmatmul.mubr.f32.gmra.mrb[34].mxu0 %v4184_v20 }
 0x429   :  { %v4187_v21 = vpop.f32.mrb[20].mxu1 }
 0x42a   :  { %v847_v43 = vpop.f32.mrb[21].mxu1 }
 0x42b   :  { %4241 = vmatprep.mubr.f32.mxu0 %v847_v43 }
 0x42c   :  { %4242 = vmatmul.mubr.f32.gmra.mrb[36].mxu0 %v4187_v21 }
 0x42d   :  { %v4190_v22 = vpop.f32.mrb[22].mxu1 }
 0x42e   :  { %v857_v23 = vpop.f32.mrb[23].mxu1 }
 0x42f   :  { %4244 = vmatprep.mubr.f32.mxu0 %v857_v23 }
 0x430   :  { %4245 = vmatmul.mubr.f32.gmra.mrb[38].mxu0 %v4190_v22 }
 0x431   :  { %v4193_v24 = vpop.f32.mrb[24].mxu1 }
 0x432   :  { %v867_v25 = vpop.f32.mrb[25].mxu1 }
 0x433   :  { %4247 = vmatprep.mubr.f32.mxu0 %v867_v25 }
 0x434   :  { %4248 = vmatmul.mubr.f32.gmra.mrb[40].mxu0 %v4193_v24 }
 0x435   :  { %v4196_v26 = vpop.f32.mrb[26].mxu1 }
 0x436   :  { %v877_v27 = vpop.f32.mrb[27].mxu1 }
 0x437   :  { %4250 = vmatprep.mubr.f32.mxu0 %v877_v27 }
 0x438   :  { %4251 = vmatmul.mubr.f32.gmra.mrb[42].mxu0 %v4196_v26 }
 0x439   :  { %v4199_v28 = vpop.f32.mrb[28].mxu1 }
 0x43a   :  { %v887_v29 = vpop.f32.mrb[29].mxu1 }
 0x43b   :  { %4253 = vmatprep.mubr.f32.mxu0 %v887_v29 }
 0x43c   :  { %4254 = vmatmul.mubr.f32.gmra.mrb[44].mxu0 %v4199_v28 }
 0x43d   :  { %v4202_v30 = vpop.f32.mrb[30].mxu1 }
 0x43e   :  { %v897_v31 = vpop.f32.mrb[31].mxu1 }
 0x43f   :  { %4256 = vmatprep.mubr.f32.mxu0 %v897_v31 }
 0x440   :  { %4257 = vmatmul.mubr.f32.gmra.mrb[46].mxu0 %v4202_v30 }
 0x441   :  { %4347 = vmatprep.mubr.f32.mxu0 %v5912_v9  ;;  %v6069_v9 = vld [vmem:[%s6514_s5 + $0x1] ss:$0 sm:$0xff] }
 0x4f7   :  { %v4237_v42 = vpop.f32.mrb[32].mxu0 }
 0x4f8   :  { %v1077_v44 = vmul.f32 %v4237_v42, %v6064_v40  ;;  %v989_v46 = vpop.f32.mrb[33].mxu0 }
 0x4f9   :  { %v1076_v48 = vmul.f32 %v6064_v40, %v989_v46  ;;  %v1504_v46 = vld [vmem:[#allocation8 + $0x100] sm:$0xff] }
 0x4fa   :  { %v1101_v49 = vadd.f32 %v6069_v9, %v1077_v44 }
 0x4fb   :  { %v1100_v51 = vadd.f32 %v6069_v9, %v1076_v48  ;;  %v4240_v0 = vpop.f32.mrb[34].mxu0  ;;  %v1505_v48 = vld [vmem:[#allocation8 + $0x108] sm:$0xff] }
 0x4fc   :  { %v1079_v1 = vmul.f32 %v4240_v0, %v6064_v40  ;;  %v999_v2 = vpop.f32.mrb[35].mxu0  ;;  %v1117_v5 = vmax.f32 %v1101_v49, 0.0  ;;  %v1506_v49 = vld [vmem:[#allocation8 + $0x110] sm:$0xff]  ;;  %v1507_v0 = vld [vmem:[#allocation8 + $0x118] sm:$0xff] }
 0x4fd   :  { %v1116_v3 = vmax.f32 %v1100_v51, 0.0  ;;  %v1078_v4 = vmul.f32 %v6064_v40, %v999_v2  ;;  %v5148_v51 = vpack.c.bf16 %v1505_v48, %v1504_v46  ;;  %v1508_v2 = vld [vmem:[#allocation8 + $0x120] sm:$0xff] }
 0x4fe   :  { %v1103_v6 = vadd.f32 %v6069_v9, %v1079_v1  ;;  %v5152_v1 = vpack.c.bf16 %v1507_v0, %v1506_v49 }
 0x4ff   :  { %v1102_v7 = vadd.f32 %v6069_v9, %v1078_v4  ;;  %v4243_v8 = vpop.f32.mrb[36].mxu0  ;;  %4291 = vmatprep.mubr.f32.mxu1 %v1116_v3  ;;  %v1509_v3 = vld [vmem:[#allocation8 + $0x128] sm:$0xff]  ;;  %5149 = vmatprep.subr.bf16.mxu1 %v5148_v51  ;;  %v1510_v4 = vld [vmem:[#allocation8 + $0x130] sm:$0xff] }
 0x500   :  { %v1081_v10 = vmul.f32 %v4243_v8, %v6064_v40  ;;  %v1009_v11 = vpop.f32.mrb[37].mxu0  ;;  %4292 = vmatmul.mubr.f32.vlgmr.msra.gmra.mrb[32].mxu1 %v1117_v5  ;;  %v1119_v14 = vmax.f32 %v1103_v6, 0.0  ;;  %v1512_v6 = vld [vmem:[#allocation8 + $0x140] sm:$0xff] }
 0x501   :  { %v1118_v12 = vmax.f32 %v1102_v7, 0.0  ;;  %v1080_v13 = vmul.f32 %v6064_v40, %v1009_v11  ;;  %5151 = vmatpush3.bf16.msra.mxu1 %v5148_v51  ;;  %v1513_v7 = vld [vmem:[#allocation8 + $0x148] sm:$0xff]  ;;  %v1515_v11 = vld [vmem:[#allocation8 + $0x158] sm:$0xff] }
 0x502   :  { %v1105_v15 = vadd.f32 %v6069_v9, %v1081_v10  ;;  %5153 = vmatprep.subr.bf16.mxu1 %v5152_v1  ;;  %v5164_v8 = vpack.c.bf16 %v1513_v7, %v1512_v6  ;;  %v1514_v10 = vld [vmem:[#allocation8 + $0x150] sm:$0xff] }
 0x503   :  { %v1104_v16 = vadd.f32 %v6069_v9, %v1080_v13  ;;  %v4246_v45 = vpop.f32.mrb[38].mxu0  ;;  %4294 = vmatprep.mubr.f32.mxu1 %v1118_v12  ;;  %v5168_v12 = vpack.c.bf16 %v1515_v11, %v1514_v10  ;;  %v1516_v13 = vld [vmem:[#allocation8 + $0x160] sm:$0xff] }
 0x504   :  { %v1083_v47 = vmul.f32 %v4246_v45, %v6064_v40  ;;  %v1019_v50 = vpop.f32.mrb[39].mxu0  ;;  %4295 = vmatmul.mubr.f32.gmra.mrb[34].mxu1 %v1119_v14  ;;  %v1121_v54 = vmax.f32 %v1105_v15, 0.0  ;;  %v1517_v14 = vld [vmem:[#allocation8 + $0x168] sm:$0xff]  ;;  %v1519_v45 = vld [vmem:[#allocation8 + $0x178] sm:$0xff] }
 0x505   :  { %v1120_v52 = vmax.f32 %v1104_v16, 0.0  ;;  %v1082_v53 = vmul.f32 %v6064_v40, %v1019_v50  ;;  %5155 = vmatpush3.bf16.msra.mxu1 %v5152_v1  ;;  %v5172_v15 = vpack.c.bf16 %v1517_v14, %v1516_v13  ;;  %v1518_v16 = vld [vmem:[#allocation8 + $0x170] sm:$0xff]  ;;  %v6106_v50 = vld [vmem:[%s6516_s7 + $0x1] ss:$0 sm:$0xff] }
 0x506   :  { %v1107_v55 = vadd.f32 %v6069_v9, %v1083_v47  ;;  %v5176_v47 = vpack.c.bf16 %v1519_v45, %v1518_v16 }
 0x507   :  { %v1106_v56 = vadd.f32 %v6069_v9, %v1082_v53  ;;  %v4249_v57 = vpop.f32.mrb[40].mxu0  ;;  %4297 = vmatprep.mubr.f32.mxu1 %v1120_v52  ;;  %v6111_v53 = vld [vmem:[%s6517_s8 + $0x1] ss:$0 sm:$0xff] }
 0x508   :  { %v1085_v58 = vmul.f32 %v4249_v57, %v6064_v40  ;;  %v1029_v59 = vpop.f32.mrb[41].mxu0  ;;  %4298 = vmatmul.mubr.f32.gmra.mrb[36].mxu1 %v1121_v54  ;;  %v1123_v62 = vmax.f32 %v1107_v55, 0.0 }
 0x509   :  { %v1122_v60 = vmax.f32 %v1106_v56, 0.0  ;;  %v1084_v61 = vmul.f32 %v6064_v40, %v1029_v59 }
 0x50a   :  { %v1109_v63 = vadd.f32 %v6069_v9, %v1085_v58 }
 0x50b   :  { %v1108_v35 = vadd.f32 %v6069_v9, %v1084_v61  ;;  %v4252_v37 = vpop.f32.mrb[42].mxu0  ;;  %4300 = vmatprep.mubr.f32.mxu1 %v1122_v60 }
 0x50c   :  { %v1087_v17 = vmul.f32 %v4252_v37, %v6064_v40  ;;  %v1039_v18 = vpop.f32.mrb[43].mxu0  ;;  %4301 = vmatmul.mubr.f32.gmra.mrb[38].mxu1 %v1123_v62  ;;  %v1125_v41 = vmax.f32 %v1109_v63, 0.0 }
 0x50d   :  { %v1124_v19 = vmax.f32 %v1108_v35, 0.0  ;;  %v1086_v20 = vmul.f32 %v6064_v40, %v1039_v18 }
 0x50e   :  { %v1111_v21 = vadd.f32 %v6069_v9, %v1087_v17 }
 0x50f   :  { %v1110_v43 = vadd.f32 %v6069_v9, %v1086_v20  ;;  %v4255_v22 = vpop.f32.mrb[44].mxu0  ;;  %4303 = vmatprep.mubr.f32.mxu1 %v1124_v19 }
 0x510   :  { %v1089_v23 = vmul.f32 %v4255_v22, %v6064_v40  ;;  %v1049_v24 = vpop.f32.mrb[45].mxu0  ;;  %4304 = vmatmul.mubr.f32.gmra.mrb[40].mxu1 %v1125_v41  ;;  %v1127_v27 = vmax.f32 %v1111_v21, 0.0 }
 0x511   :  { %v1126_v25 = vmax.f32 %v1110_v43, 0.0  ;;  %v1088_v26 = vmul.f32 %v6064_v40, %v1049_v24 }
 0x512   :  { %v1113_v28 = vadd.f32 %v6069_v9, %v1089_v23 }
 0x513   :  { %v1112_v29 = vadd.f32 %v6069_v9, %v1088_v26  ;;  %v4258_v30 = vpop.f32.mrb[46].mxu0  ;;  %4306 = vmatprep.mubr.f32.mxu1 %v1126_v25 }
 0x514   :  { %v1091_v31 = vmul.f32 %v4258_v30, %v6064_v40  ;;  %v1059_v32 = vpop.f32.mrb[47].mxu0  ;;  %4307 = vmatmul.mubr.f32.gmra.mrb[42].mxu1 %v1127_v27  ;;  %v1129_v36 = vmax.f32 %v1113_v28, 0.0 }
 0x515   :  { %v1128_v33 = vmax.f32 %v1112_v29, 0.0  ;;  %v1090_v34 = vmul.f32 %v6064_v40, %v1059_v32  ;;  %v5156_v40 = vpack.c.bf16 %v1509_v3, %v1508_v2 }
 0x516   :  { %v1115_v38 = vadd.f32 %v6069_v9, %v1091_v31 }
 0x517   :  { %v1114_v39 = vadd.f32 %v6069_v9, %v1090_v34  ;;  %4309 = vmatprep.mubr.f32.mxu1 %v1128_v33  ;;  %v1511_v9 = vld [vmem:[#allocation8 + $0x138] sm:$0xff]  ;;  %5157 = vmatprep.subr.bf16.mxu1 %v5156_v40 }
 0x518   :  { %4310 = vmatmul.mubr.f32.gmra.mrb[44].mxu1 %v1129_v36  ;;  %v1131_v44 = vmax.f32 %v1115_v38, 0.0  ;;  %v5160_v5 = vpack.c.bf16 %v1511_v9, %v1510_v4 }
 0x519   :  { %v1130_v42 = vmax.f32 %v1114_v39, 0.0  ;;  %5159 = vmatpush3.bf16.msra.mxu1 %v5156_v40 }
 0x51a   :  { %5161 = vmatprep.subr.bf16.mxu1 %v5160_v5 }
 0x51b   :  { %4312 = vmatprep.mubr.f32.mxu1 %v1130_v42 }
 0x51c   :  { %4313 = vmatmul.mubr.f32.gmra.mrb[46].mxu1 %v1131_v44 }
 0x51d   :  { %5163 = vmatpush3.bf16.msra.mxu1 %v5160_v5 }
 0x51e   :  { %5165 = vmatprep.subr.bf16.mxu1 %v5164_v8 }
 0x521   :  { %5167 = vmatpush3.bf16.msra.mxu1 %v5164_v8 }
 0x522   :  { %5169 = vmatprep.subr.bf16.mxu1 %v5168_v12 }
 0x525   :  { %5171 = vmatpush3.bf16.msra.mxu1 %v5168_v12 }
 0x526   :  { %5173 = vmatprep.subr.bf16.mxu1 %v5172_v15 }
 0x529   :  { %5175 = vmatpush3.bf16.msra.mxu1 %v5172_v15 }
 0x52a   :  { %5177 = vmatprep.subr.bf16.mxu1 %v5176_v47 }
 0x52d   :  { %5179 = vmatpush3.bf16.msra.mxu1 %v5176_v47 }
 0x5d3   :  { %v4293_v52 = vpop.f32.mrb[32].mxu1 }
 0x5d4   :  { %v1303_v54 = vmul.f32 %v4293_v52, %v6106_v50  ;;  %v1215_v55 = vpop.f32.mrb[33].mxu1 }
 0x5d5   :  { %v1302_v56 = vmul.f32 %v6106_v50, %v1215_v55 }
 0x5d6   :  { %v1327_v57 = vadd.f32 %v6111_v53, %v1303_v54 }
 0x5d7   :  { %v1326_v58 = vadd.f32 %v6111_v53, %v1302_v56  ;;  %v4296_v59 = vpop.f32.mrb[34].mxu1 }
 0x5d8   :  { %v1343_v60 = vmax.f32 %v1327_v57, 0.0  ;;  %v1305_v61 = vmul.f32 %v4296_v59, %v6106_v50  ;;  %v1225_v62 = vpop.f32.mrb[35].mxu1 }
 0x5d9   :  { %v1342_v63 = vmax.f32 %v1326_v58, 0.0  ;;  %v1304_v35 = vmul.f32 %v6106_v50, %v1225_v62 }
 0x5da   :  { %v1329_v37 = vadd.f32 %v6111_v53, %v1305_v61 }
 0x5db   :  { %v1328_v17 = vadd.f32 %v6111_v53, %v1304_v35  ;;  %v4299_v18 = vpop.f32.mrb[36].mxu1  ;;  %v5116_v19 = vpack.c.bf16 %v1343_v60, %v1342_v63  ;;  %v6145_v63 = vld [vmem:[#allocation2 + $0x8] sm:$0xff]  ;;  %v6148_v35 = vld [vmem:[#allocation2 + $0x10] sm:$0xff] }
 0x5dc   :  { %v1345_v20 = vmax.f32 %v1329_v37, 0.0  ;;  %v1307_v41 = vmul.f32 %v4299_v18, %v6106_v50  ;;  %v1235_v21 = vpop.f32.mrb[37].mxu1  ;;  %v6157_v37 = vld [vmem:[#allocation2 + $0x28] sm:$0xff]  ;;  %v6163_v18 = vld [vmem:[#allocation2 + $0x38] sm:$0xff] }
 0x5dd   :  { %v1344_v43 = vmax.f32 %v1328_v17, 0.0  ;;  %v1306_v22 = vmul.f32 %v6106_v50, %v1235_v21  ;;  %5117 = vmatprep.subr.bf16.mxu0 %v5116_v19  ;;  %v6160_v17 = vld [vmem:[#allocation2 + $0x30] sm:$0xff]  ;;  %v6175_v21 = vld [vmem:[#allocation2 + $0x58] sm:$0xff] }
 0x5de   :  { %v1331_v23 = vadd.f32 %v6111_v53, %v1307_v41  ;;  %5119 = vmatpush3.bf16.msra.mxu0 %v5116_v19  ;;  %v6166_v19 = vld [vmem:[#allocation2 + $0x40] sm:$0xff]  ;;  %v6172_v41 = vld [vmem:[#allocation2 + $0x50] sm:$0xff] }
 0x5df   :  { %v1330_v24 = vadd.f32 %v6111_v53, %v1306_v22  ;;  %v4302_v25 = vpop.f32.mrb[38].mxu1  ;;  %v5120_v26 = vpack.c.bf16 %v1345_v20, %v1344_v43  ;;  %v6169_v20 = vld [vmem:[#allocation2 + $0x48] sm:$0xff]  ;;  %v6178_v43 = vld [vmem:[#allocation2 + $0x60] sm:$0xff] }
 0x5e0   :  { %v1347_v27 = vmax.f32 %v1331_v23, 0.0  ;;  %v1309_v28 = vmul.f32 %v4302_v25, %v6106_v50  ;;  %v1245_v29 = vpop.f32.mrb[39].mxu1  ;;  %v6181_v22 = vld [vmem:[#allocation2 + $0x68] sm:$0xff]  ;;  %v6184_v23 = vld [vmem:[#allocation2 + $0x70] sm:$0xff] }
 0x5e1   :  { %v1346_v30 = vmax.f32 %v1330_v24, 0.0  ;;  %v1308_v31 = vmul.f32 %v6106_v50, %v1245_v29  ;;  %5121 = vmatprep.subr.bf16.mxu0 %v5120_v26  ;;  %v6187_v24 = vld [vmem:[#allocation2 + $0x78] sm:$0xff]  ;;  %v1730_v25 = vld [vmem:[#allocation10 + $0x100] sm:$0xff]  ;;  %v1733_v29 = vld [vmem:[#allocation10 + $0x118] sm:$0xff] }
 0x5e2   :  { %v1333_v32 = vadd.f32 %v6111_v53, %v1309_v28  ;;  %5123 = vmatpush3.bf16.msra.mxu0 %v5120_v26  ;;  %v1731_v26 = vld [vmem:[#allocation10 + $0x108] sm:$0xff] }
 0x5e3   :  { %v1332_v33 = vadd.f32 %v6111_v53, %v1308_v31  ;;  %v4305_v34 = vpop.f32.mrb[40].mxu1  ;;  %v5124_v36 = vpack.c.bf16 %v1347_v27, %v1346_v30  ;;  %v1732_v27 = vld [vmem:[#allocation10 + $0x110] sm:$0xff]  ;;  %v5180_v28 = vpack.c.bf16 %v1731_v26, %v1730_v25  ;;  %v1734_v31 = vld [vmem:[#allocation10 + $0x120] sm:$0xff] }
 0x5e4   :  { %v1349_v38 = vmax.f32 %v1333_v32, 0.0  ;;  %v1311_v39 = vmul.f32 %v4305_v34, %v6106_v50  ;;  %v1255_v42 = vpop.f32.mrb[41].mxu1  ;;  %v5184_v30 = vpack.c.bf16 %v1733_v29, %v1732_v27  ;;  %v1735_v32 = vld [vmem:[#allocation10 + $0x128] sm:$0xff]  ;;  %v1736_v34 = vld [vmem:[#allocation10 + $0x130] sm:$0xff] }
 0x5e5   :  { %v1348_v44 = vmax.f32 %v1332_v33, 0.0  ;;  %v1310_v46 = vmul.f32 %v6106_v50, %v1255_v42  ;;  %5125 = vmatprep.subr.bf16.mxu0 %v5124_v36  ;;  %v5188_v33 = vpack.c.bf16 %v1735_v32, %v1734_v31  ;;  %v1739_v42 = vld [vmem:[#allocation10 + $0x148] sm:$0xff] }
 0x5e6   :  { %v1335_v48 = vadd.f32 %v6111_v53, %v1311_v39  ;;  %5127 = vmatpush3.bf16.msra.mxu0 %v5124_v36  ;;  %v1737_v36 = vld [vmem:[#allocation10 + $0x138] sm:$0xff]  ;;  %v1738_v39 = vld [vmem:[#allocation10 + $0x140] sm:$0xff] }
 0x5e7   :  { %v1334_v49 = vadd.f32 %v6111_v53, %v1310_v46  ;;  %v4308_v51 = vpop.f32.mrb[42].mxu1  ;;  %v5128_v0 = vpack.c.bf16 %v1349_v38, %v1348_v44  ;;  %v5192_v38 = vpack.c.bf16 %v1737_v36, %v1736_v34  ;;  %v5196_v44 = vpack.c.bf16 %v1739_v42, %v1738_v39  ;;  %v1740_v46 = vld [vmem:[#allocation10 + $0x150] sm:$0xff] }
 0x5e8   :  { %v1351_v1 = vmax.f32 %v1335_v48, 0.0  ;;  %v1313_v2 = vmul.f32 %v4308_v51, %v6106_v50  ;;  %v1265_v3 = vpop.f32.mrb[43].mxu1  ;;  %v1741_v48 = vld [vmem:[#allocation10 + $0x158] sm:$0xff] }
 0x5e9   :  { %v1350_v40 = vmax.f32 %v1334_v49, 0.0  ;;  %v1312_v4 = vmul.f32 %v6106_v50, %v1265_v3  ;;  %5129 = vmatprep.subr.bf16.mxu0 %v5128_v0  ;;  %v5200_v49 = vpack.c.bf16 %v1741_v48, %v1740_v46 }
 0x5ea   :  { %v1337_v9 = vadd.f32 %v6111_v53, %v1313_v2  ;;  %5131 = vmatpush3.bf16.msra.mxu0 %v5128_v0 }
 0x5eb   :  { %v1336_v5 = vadd.f32 %v6111_v53, %v1312_v4  ;;  %v4311_v6 = vpop.f32.mrb[44].mxu1  ;;  %v5132_v7 = vpack.c.bf16 %v1351_v1, %v1350_v40 }
 0x5ec   :  { %v1353_v8 = vmax.f32 %v1337_v9, 0.0  ;;  %v1315_v10 = vmul.f32 %v4311_v6, %v6106_v50  ;;  %v1275_v11 = vpop.f32.mrb[45].mxu1 }
 0x5ed   :  { %v1352_v12 = vmax.f32 %v1336_v5, 0.0  ;;  %v1314_v13 = vmul.f32 %v6106_v50, %v1275_v11  ;;  %5133 = vmatprep.subr.bf16.mxu0 %v5132_v7 }
 0x5ee   :  { %v1339_v14 = vadd.f32 %v6111_v53, %v1315_v10  ;;  %5135 = vmatpush3.bf16.msra.mxu0 %v5132_v7 }
 0x5ef   :  { %v1338_v15 = vadd.f32 %v6111_v53, %v1314_v13  ;;  %v4314_v16 = vpop.f32.mrb[46].mxu1  ;;  %v5136_v45 = vpack.c.bf16 %v1353_v8, %v1352_v12 }
 0x5f0   :  { %v1355_v47 = vmax.f32 %v1339_v14, 0.0  ;;  %v1317_v52 = vmul.f32 %v4314_v16, %v6106_v50  ;;  %v1285_v54 = vpop.f32.mrb[47].mxu1  ;;  %v6190_v14 = vld [vmem:[#allocation2] sm:$0xff]  ;;  %v1743_v16 = vld [vmem:[#allocation10 + $0x168] sm:$0xff] }
 0x5f1   :  { %v1354_v55 = vmax.f32 %v1338_v15, 0.0  ;;  %v1316_v56 = vmul.f32 %v6106_v50, %v1285_v54  ;;  %5137 = vmatprep.subr.bf16.mxu0 %v5136_v45  ;;  %v6151_v50 = vld [vmem:[#allocation2 + $0x18] sm:$0xff]  ;;  %v1742_v15 = vld [vmem:[#allocation10 + $0x160] sm:$0xff] }
 0x5f2   :  { %v1341_v57 = vadd.f32 %v6111_v53, %v1317_v52  ;;  %5139 = vmatpush3.bf16.msra.mxu0 %v5136_v45  ;;  %v5204_v45 = vpack.c.bf16 %v1743_v16, %v1742_v15  ;;  %v1745_v52 = vld [vmem:[#allocation10 + $0x178] sm:$0xff] }
 0x5f3   :  { %v1340_v58 = vadd.f32 %v6111_v53, %v1316_v56  ;;  %v5140_v59 = vpack.c.bf16 %v1355_v47, %v1354_v55  ;;  %v6154_v53 = vld [vmem:[#allocation2 + $0x20] sm:$0xff]  ;;  %v1744_v47 = vld [vmem:[#allocation10 + $0x170] sm:$0xff] }
 0x5f4   :  { %v1357_v60 = vmax.f32 %v1341_v57, 0.0  ;;  %v5208_v54 = vpack.c.bf16 %v1745_v52, %v1744_v47  ;;  %v6196_v55 = vld [vmem:[%s6513_s4 + $0x2] ss:$0 sm:$0xff] }
 0x5f5   :  { %v1356_v61 = vmax.f32 %v1340_v58, 0.0  ;;  %5141 = vmatprep.subr.bf16.mxu0 %v5140_v59  ;;  %v6201_v57 = vld [vmem:[%s6514_s5 + $0x2] ss:$0 sm:$0xff] }
 0x5f6   :  { %5143 = vmatpush3.bf16.msra.mxu0 %v5140_v59 }
 0x5f7   :  { %v5144_v62 = vpack.c.bf16 %v1357_v60, %v1356_v61 }
 0x5f9   :  { %5145 = vmatprep.subr.bf16.mxu0 %v5144_v62 }
 0x5fa   :  { %5147 = vmatpush3.bf16.msra.mxu0 %v5144_v62 }
 0x5fb   :  { %5181 = vmatprep.subr.bf16.mxu0 %v5180_v28 }
 0x5fd   :  { %4348 = vmatmul.mubr.f32.vlgmr.msra.gmra.mrb[48].mxu0 %v6145_v63 }
 0x5fe   :  { %4350 = vmatprep.mubr.f32.mxu0 %v6148_v35  ;;  %5183 = vmatpush3.bf16.msra.mxu0 %v5180_v28 }
 0x5ff   :  { %5185 = vmatprep.subr.bf16.mxu0 %v5184_v30 }
 0x601   :  { %4351 = vmatmul.mubr.f32.gmra.mrb[50].mxu0 %v6151_v50 }
 0x602   :  { %4353 = vmatprep.mubr.f32.mxu0 %v6154_v53  ;;  %5187 = vmatpush3.bf16.msra.mxu0 %v5184_v30 }
 0x603   :  { %5189 = vmatprep.subr.bf16.mxu0 %v5188_v33 }
 0x605   :  { %4354 = vmatmul.mubr.f32.gmra.mrb[52].mxu0 %v6157_v37 }
 0x606   :  { %4356 = vmatprep.mubr.f32.mxu0 %v6160_v17  ;;  %5191 = vmatpush3.bf16.msra.mxu0 %v5188_v33 }
 0x607   :  { %5193 = vmatprep.subr.bf16.mxu0 %v5192_v38 }
 0x609   :  { %4357 = vmatmul.mubr.f32.gmra.mrb[54].mxu0 %v6163_v18 }
 0x60a   :  { %4359 = vmatprep.mubr.f32.mxu0 %v6166_v19  ;;  %5195 = vmatpush3.bf16.msra.mxu0 %v5192_v38 }
 0x60b   :  { %5197 = vmatprep.subr.bf16.mxu0 %v5196_v44 }
 0x60d   :  { %4360 = vmatmul.mubr.f32.gmra.mrb[56].mxu0 %v6169_v20 }
 0x60e   :  { %4362 = vmatprep.mubr.f32.mxu0 %v6172_v41  ;;  %5199 = vmatpush3.bf16.msra.mxu0 %v5196_v44 }
 0x60f   :  { %5201 = vmatprep.subr.bf16.mxu0 %v5200_v49 }
 0x611   :  { %4363 = vmatmul.mubr.f32.gmra.mrb[58].mxu0 %v6175_v21 }
 0x612   :  { %4365 = vmatprep.mubr.f32.mxu0 %v6178_v43  ;;  %5203 = vmatpush3.bf16.msra.mxu0 %v5200_v49 }
 0x613   :  { %5205 = vmatprep.subr.bf16.mxu0 %v5204_v45 }
 0x615   :  { %4366 = vmatmul.mubr.f32.gmra.mrb[60].mxu0 %v6181_v22 }
 0x616   :  { %4368 = vmatprep.mubr.f32.mxu0 %v6184_v23  ;;  %5207 = vmatpush3.bf16.msra.mxu0 %v5204_v45 }
 0x617   :  { %5209 = vmatprep.subr.bf16.mxu0 %v5208_v54 }
 0x619   :  { %4369 = vmatmul.mubr.f32.gmra.mrb[62].mxu0 %v6187_v24 }
 0x61a   :  { %5211 = vmatpush3.bf16.msra.mxu0 %v5208_v54 }
 0x6d0   :  { %v4349_v51 = vpop.f32.mrb[48].mxu0 }
 0x6d1   :  { %v1424_v0 = vpop.f32.mrb[49].mxu0 }
 0x6d2   :  { %4403 = vmatprep.mubr.f32.mxu1 %v1424_v0 }
 0x6d3   :  { %4404 = vmatmul.mubr.f32.vlgmr.msra.gmra.mrb[48].mxu1 %v4349_v51 }
 0x6d4   :  { %v4352_v1 = vpop.f32.mrb[50].mxu0 }
 0x6d5   :  { %v1434_v2 = vpop.f32.mrb[51].mxu0 }
 0x6d6   :  { %4406 = vmatprep.mubr.f32.mxu1 %v1434_v2 }
 0x6d7   :  { %4407 = vmatmul.mubr.f32.gmra.mrb[50].mxu1 %v4352_v1 }
 0x6d8   :  { %v4355_v3 = vpop.f32.mrb[52].mxu0 }
 0x6d9   :  { %v1444_v40 = vpop.f32.mrb[53].mxu0 }
 0x6da   :  { %4409 = vmatprep.mubr.f32.mxu1 %v1444_v40 }
 0x6db   :  { %4410 = vmatmul.mubr.f32.gmra.mrb[52].mxu1 %v4355_v3 }
 0x6dc   :  { %v4358_v4 = vpop.f32.mrb[54].mxu0 }
 0x6dd   :  { %v1454_v9 = vpop.f32.mrb[55].mxu0 }
 0x6de   :  { %4412 = vmatprep.mubr.f32.mxu1 %v1454_v9 }
 0x6df   :  { %4413 = vmatmul.mubr.f32.gmra.mrb[54].mxu1 %v4358_v4 }
 0x6e0   :  { %v4361_v5 = vpop.f32.mrb[56].mxu0 }
 0x6e1   :  { %v1464_v6 = vpop.f32.mrb[57].mxu0 }
 0x6e2   :  { %4415 = vmatprep.mubr.f32.mxu1 %v1464_v6 }
 0x6e3   :  { %4416 = vmatmul.mubr.f32.gmra.mrb[56].mxu1 %v4361_v5 }
 0x6e4   :  { %v4364_v7 = vpop.f32.mrb[58].mxu0 }
 0x6e5   :  { %v1474_v8 = vpop.f32.mrb[59].mxu0 }
 0x6e6   :  { %4418 = vmatprep.mubr.f32.mxu1 %v1474_v8 }
 0x6e7   :  { %4419 = vmatmul.mubr.f32.gmra.mrb[58].mxu1 %v4364_v7 }
 0x6e8   :  { %v4367_v10 = vpop.f32.mrb[60].mxu0 }
 0x6e9   :  { %v1484_v11 = vpop.f32.mrb[61].mxu0 }
 0x6ea   :  { %4421 = vmatprep.mubr.f32.mxu1 %v1484_v11 }
 0x6eb   :  { %4422 = vmatmul.mubr.f32.gmra.mrb[60].mxu1 %v4367_v10 }
 0x6ec   :  { %v4370_v12 = vpop.f32.mrb[62].mxu0 }
 0x6ed   :  { %v1494_v13 = vpop.f32.mrb[63].mxu0 }
 0x6ee   :  { %4424 = vmatprep.mubr.f32.mxu1 %v1494_v13 }
 0x6ef   :  { %4425 = vmatmul.mubr.f32.gmra.mrb[62].mxu1 %v4370_v12 }
 0x6f0   :  { %4515 = vmatprep.mubr.f32.mxu1 %v6190_v14 }
 0x7a6   :  { %v4405_v56 = vpop.f32.mrb[48].mxu1 }
 0x7a7   :  { %v1674_v58 = vmul.f32 %v4405_v56, %v6196_v55  ;;  %v1586_v59 = vpop.f32.mrb[49].mxu1 }
 0x7a8   :  { %v1673_v60 = vmul.f32 %v6196_v55, %v1586_v59 }
 0x7a9   :  { %v1698_v61 = vadd.f32 %v6201_v57, %v1674_v58 }
 0x7aa   :  { %v1697_v62 = vadd.f32 %v6201_v57, %v1673_v60  ;;  %v4408_v25 = vpop.f32.mrb[50].mxu1 }
 0x7ab   :  { %v1676_v26 = vmul.f32 %v4408_v25, %v6196_v55  ;;  %v1596_v27 = vpop.f32.mrb[51].mxu1  ;;  %v1714_v30 = vmax.f32 %v1698_v61, 0.0 }
 0x7ac   :  { %v1713_v28 = vmax.f32 %v1697_v62, 0.0  ;;  %v1675_v29 = vmul.f32 %v6196_v55, %v1596_v27 }
 0x7ad   :  { %v1700_v31 = vadd.f32 %v6201_v57, %v1676_v26 }
 0x7ae   :  { %v1699_v32 = vadd.f32 %v6201_v57, %v1675_v29  ;;  %v4411_v33 = vpop.f32.mrb[52].mxu1  ;;  %4459 = vmatprep.mubr.f32.mxu0 %v1713_v28 }
 0x7af   :  { %v1678_v34 = vmul.f32 %v4411_v33, %v6196_v55  ;;  %v1606_v36 = vpop.f32.mrb[53].mxu1  ;;  %4460 = vmatmul.mubr.f32.vlgmr.msra.gmra.mrb[64].mxu0 %v1714_v30  ;;  %v1716_v42 = vmax.f32 %v1700_v31, 0.0 }
 0x7b0   :  { %v1715_v38 = vmax.f32 %v1699_v32, 0.0  ;;  %v1677_v39 = vmul.f32 %v6196_v55, %v1606_v36 }
 0x7b1   :  { %v1702_v44 = vadd.f32 %v6201_v57, %v1678_v34 }
 0x7b2   :  { %v1701_v46 = vadd.f32 %v6201_v57, %v1677_v39  ;;  %v4414_v48 = vpop.f32.mrb[54].mxu1  ;;  %4462 = vmatprep.mubr.f32.mxu0 %v1715_v38  ;;  %v2101_v39 = vld [vmem:[#allocation8 + $0x180] sm:$0xff] }
 0x7b3   :  { %v1680_v49 = vmul.f32 %v4414_v48, %v6196_v55  ;;  %v1616_v51 = vpop.f32.mrb[55].mxu1  ;;  %4463 = vmatmul.mubr.f32.gmra.mrb[66].mxu0 %v1716_v42  ;;  %v1718_v2 = vmax.f32 %v1702_v44, 0.0  ;;  %v2102_v42 = vld [vmem:[#allocation8 + $0x188] sm:$0xff]  ;;  %v2103_v44 = vld [vmem:[#allocation8 + $0x190] sm:$0xff]  ;;  %v2104_v48 = vld [vmem:[#allocation8 + $0x198] sm:$0xff] }
 0x7b4   :  { %v1717_v0 = vmax.f32 %v1701_v46, 0.0  ;;  %v1679_v1 = vmul.f32 %v6196_v55, %v1616_v51  ;;  %v5244_v46 = vpack.c.bf16 %v2102_v42, %v2101_v39  ;;  %v2105_v51 = vld [vmem:[#allocation8 + $0x1a0] sm:$0xff] }
 0x7b5   :  { %v1704_v3 = vadd.f32 %v6201_v57, %v1680_v49  ;;  %v5248_v49 = vpack.c.bf16 %v2104_v48, %v2103_v44 }
 0x7b6   :  { %v1703_v40 = vadd.f32 %v6201_v57, %v1679_v1  ;;  %v4417_v4 = vpop.f32.mrb[56].mxu1  ;;  %4465 = vmatprep.mubr.f32.mxu0 %v1717_v0  ;;  %v2106_v0 = vld [vmem:[#allocation8 + $0x1a8] sm:$0xff]  ;;  %5245 = vmatprep.subr.bf16.mxu0 %v5244_v46  ;;  %v2107_v1 = vld [vmem:[#allocation8 + $0x1b0] sm:$0xff] }
 0x7b7   :  { %v1682_v9 = vmul.f32 %v4417_v4, %v6196_v55  ;;  %v1626_v5 = vpop.f32.mrb[57].mxu1  ;;  %4466 = vmatmul.mubr.f32.gmra.mrb[68].mxu0 %v1718_v2  ;;  %v1720_v8 = vmax.f32 %v1704_v3, 0.0  ;;  %v2109_v3 = vld [vmem:[#allocation8 + $0x1c0] sm:$0xff] }
 0x7b8   :  { %v1719_v6 = vmax.f32 %v1703_v40, 0.0  ;;  %v1681_v7 = vmul.f32 %v6196_v55, %v1626_v5  ;;  %5247 = vmatpush3.bf16.msra.mxu0 %v5244_v46  ;;  %v2110_v40 = vld [vmem:[#allocation8 + $0x1c8] sm:$0xff]  ;;  %v2112_v5 = vld [vmem:[#allocation8 + $0x1d8] sm:$0xff] }
 0x7b9   :  { %v1706_v10 = vadd.f32 %v6201_v57, %v1682_v9  ;;  %5249 = vmatprep.subr.bf16.mxu0 %v5248_v49  ;;  %v5260_v4 = vpack.c.bf16 %v2110_v40, %v2109_v3  ;;  %v2111_v9 = vld [vmem:[#allocation8 + $0x1d0] sm:$0xff] }
 0x7ba   :  { %v1705_v11 = vadd.f32 %v6201_v57, %v1681_v7  ;;  %v4420_v12 = vpop.f32.mrb[58].mxu1  ;;  %4468 = vmatprep.mubr.f32.mxu0 %v1719_v6  ;;  %v5264_v6 = vpack.c.bf16 %v2112_v5, %v2111_v9  ;;  %v2113_v7 = vld [vmem:[#allocation8 + $0x1e0] sm:$0xff] }
 0x7bb   :  { %v1684_v13 = vmul.f32 %v4420_v12, %v6196_v55  ;;  %v1636_v15 = vpop.f32.mrb[59].mxu1  ;;  %4469 = vmatmul.mubr.f32.gmra.mrb[70].mxu0 %v1720_v8  ;;  %v1722_v47 = vmax.f32 %v1706_v10, 0.0  ;;  %v2114_v8 = vld [vmem:[#allocation8 + $0x1e8] sm:$0xff]  ;;  %v2116_v12 = vld [vmem:[#allocation8 + $0x1f8] sm:$0xff] }
 0x7bc   :  { %v1721_v16 = vmax.f32 %v1705_v11, 0.0  ;;  %v1683_v45 = vmul.f32 %v6196_v55, %v1636_v15  ;;  %5251 = vmatpush3.bf16.msra.mxu0 %v5248_v49  ;;  %v5268_v10 = vpack.c.bf16 %v2114_v8, %v2113_v7  ;;  %v2115_v11 = vld [vmem:[#allocation8 + $0x1f0] sm:$0xff]  ;;  %v6238_v15 = vld [vmem:[%s6516_s7 + $0x2] ss:$0 sm:$0xff] }
 0x7bd   :  { %v1708_v52 = vadd.f32 %v6201_v57, %v1684_v13  ;;  %v5272_v13 = vpack.c.bf16 %v2116_v12, %v2115_v11 }
 0x7be   :  { %v1707_v54 = vadd.f32 %v6201_v57, %v1683_v45  ;;  %v4423_v56 = vpop.f32.mrb[60].mxu1  ;;  %4471 = vmatprep.mubr.f32.mxu0 %v1721_v16  ;;  %v6243_v45 = vld [vmem:[%s6517_s8 + $0x2] ss:$0 sm:$0xff] }
 0x7bf   :  { %v1686_v58 = vmul.f32 %v4423_v56, %v6196_v55  ;;  %v1646_v59 = vpop.f32.mrb[61].mxu1  ;;  %4472 = vmatmul.mubr.f32.gmra.mrb[72].mxu0 %v1722_v47  ;;  %v1724_v62 = vmax.f32 %v1708_v52, 0.0 }
 0x7c0   :  { %v1723_v60 = vmax.f32 %v1707_v54, 0.0  ;;  %v1685_v61 = vmul.f32 %v6196_v55, %v1646_v59 }
 0x7c1   :  { %v1710_v25 = vadd.f32 %v6201_v57, %v1686_v58 }
 0x7c2   :  { %v1709_v26 = vadd.f32 %v6201_v57, %v1685_v61  ;;  %v4426_v27 = vpop.f32.mrb[62].mxu1  ;;  %4474 = vmatprep.mubr.f32.mxu0 %v1723_v60 }
 0x7c3   :  { %v1688_v28 = vmul.f32 %v4426_v27, %v6196_v55  ;;  %v1656_v29 = vpop.f32.mrb[63].mxu1  ;;  %4475 = vmatmul.mubr.f32.gmra.mrb[74].mxu0 %v1724_v62  ;;  %v1726_v32 = vmax.f32 %v1710_v25, 0.0 }
 0x7c4   :  { %v1725_v30 = vmax.f32 %v1709_v26, 0.0  ;;  %v1687_v31 = vmul.f32 %v6196_v55, %v1656_v29  ;;  %v5252_v55 = vpack.c.bf16 %v2106_v0, %v2105_v51 }
 0x7c5   :  { %v1712_v33 = vadd.f32 %v6201_v57, %v1688_v28 }
 0x7c6   :  { %v1711_v34 = vadd.f32 %v6201_v57, %v1687_v31  ;;  %4477 = vmatprep.mubr.f32.mxu0 %v1725_v30  ;;  %v2108_v57 = vld [vmem:[#allocation8 + $0x1b8] sm:$0xff]  ;;  %5253 = vmatprep.subr.bf16.mxu0 %v5252_v55 }
 0x7c7   :  { %4478 = vmatmul.mubr.f32.gmra.mrb[76].mxu0 %v1726_v32  ;;  %v1728_v38 = vmax.f32 %v1712_v33, 0.0  ;;  %v5256_v2 = vpack.c.bf16 %v2108_v57, %v2107_v1 }
 0x7c8   :  { %v1727_v36 = vmax.f32 %v1711_v34, 0.0  ;;  %5255 = vmatpush3.bf16.msra.mxu0 %v5252_v55 }
 0x7c9   :  { %5257 = vmatprep.subr.bf16.mxu0 %v5256_v2 }
 0x7ca   :  { %4480 = vmatprep.mubr.f32.mxu0 %v1727_v36 }
 0x7cb   :  { %4481 = vmatmul.mubr.f32.gmra.mrb[78].mxu0 %v1728_v38 }
 0x7cc   :  { %5259 = vmatpush3.bf16.msra.mxu0 %v5256_v2 }
 0x7cd   :  { %5261 = vmatprep.subr.bf16.mxu0 %v5260_v4 }
 0x7d0   :  { %5263 = vmatpush3.bf16.msra.mxu0 %v5260_v4 }
 0x7d1   :  { %5265 = vmatprep.subr.bf16.mxu0 %v5264_v6 }
 0x7d4   :  { %5267 = vmatpush3.bf16.msra.mxu0 %v5264_v6 }
 0x7d5   :  { %5269 = vmatprep.subr.bf16.mxu0 %v5268_v10 }
 0x7d8   :  { %5271 = vmatpush3.bf16.msra.mxu0 %v5268_v10 }
 0x7d9   :  { %5273 = vmatprep.subr.bf16.mxu0 %v5272_v13 }
 0x7dc   :  { %5275 = vmatpush3.bf16.msra.mxu0 %v5272_v13 }
 0x882   :  { %v4461_v16 = vpop.f32.mrb[64].mxu0 }
 0x883   :  { %v1900_v47 = vmul.f32 %v4461_v16, %v6238_v15  ;;  %v1812_v52 = vpop.f32.mrb[65].mxu0 }
 0x884   :  { %v1899_v54 = vmul.f32 %v6238_v15, %v1812_v52 }
 0x885   :  { %v1924_v56 = vadd.f32 %v6243_v45, %v1900_v47 }
 0x886   :  { %v1923_v58 = vadd.f32 %v6243_v45, %v1899_v54  ;;  %v4464_v59 = vpop.f32.mrb[66].mxu0 }
 0x887   :  { %v1940_v60 = vmax.f32 %v1924_v56, 0.0  ;;  %v1902_v61 = vmul.f32 %v4464_v59, %v6238_v15  ;;  %v1822_v62 = vpop.f32.mrb[67].mxu0 }
 0x888   :  { %v1939_v25 = vmax.f32 %v1923_v58, 0.0  ;;  %v1901_v26 = vmul.f32 %v6238_v15, %v1822_v62 }
 0x889   :  { %v1926_v27 = vadd.f32 %v6243_v45, %v1902_v61 }
 0x88a   :  { %v1925_v28 = vadd.f32 %v6243_v45, %v1901_v26  ;;  %v4467_v29 = vpop.f32.mrb[68].mxu0  ;;  %v5212_v30 = vpack.c.bf16 %v1940_v60, %v1939_v25 }
 0x88b   :  { %v1942_v31 = vmax.f32 %v1926_v27, 0.0  ;;  %v1904_v32 = vmul.f32 %v4467_v29, %v6238_v15  ;;  %v1832_v33 = vpop.f32.mrb[69].mxu0 }
 0x88c   :  { %v1941_v34 = vmax.f32 %v1925_v28, 0.0  ;;  %v1903_v36 = vmul.f32 %v6238_v15, %v1832_v33  ;;  %5213 = vmatprep.subr.bf16.mxu1 %v5212_v30 }
 0x88d   :  { %v1928_v38 = vadd.f32 %v6243_v45, %v1904_v32  ;;  %5215 = vmatpush3.bf16.msra.mxu1 %v5212_v30 }
 0x88e   :  { %v1927_v39 = vadd.f32 %v6243_v45, %v1903_v36  ;;  %v4470_v42 = vpop.f32.mrb[70].mxu0  ;;  %v5216_v44 = vpack.c.bf16 %v1942_v31, %v1941_v34 }
 0x88f   :  { %v1944_v46 = vmax.f32 %v1928_v38, 0.0  ;;  %v1906_v48 = vmul.f32 %v4470_v42, %v6238_v15  ;;  %v1842_v49 = vpop.f32.mrb[71].mxu0 }
 0x890   :  { %v1943_v51 = vmax.f32 %v1927_v39, 0.0  ;;  %v1905_v0 = vmul.f32 %v6238_v15, %v1842_v49  ;;  %5217 = vmatprep.subr.bf16.mxu1 %v5216_v44 }
 0x891   :  { %v1930_v55 = vadd.f32 %v6243_v45, %v1906_v48  ;;  %5219 = vmatpush3.bf16.msra.mxu1 %v5216_v44 }
 0x892   :  { %v1929_v1 = vadd.f32 %v6243_v45, %v1905_v0  ;;  %v4473_v57 = vpop.f32.mrb[72].mxu0  ;;  %v5220_v2 = vpack.c.bf16 %v1944_v46, %v1943_v51 }
 0x893   :  { %v1946_v3 = vmax.f32 %v1930_v55, 0.0  ;;  %v1908_v40 = vmul.f32 %v4473_v57, %v6238_v15  ;;  %v1852_v4 = vpop.f32.mrb[73].mxu0 }
 0x894   :  { %v1945_v9 = vmax.f32 %v1929_v1, 0.0  ;;  %v1907_v5 = vmul.f32 %v6238_v15, %v1852_v4  ;;  %5221 = vmatprep.subr.bf16.mxu1 %v5220_v2 }
 0x895   :  { %v1932_v6 = vadd.f32 %v6243_v45, %v1908_v40  ;;  %5223 = vmatpush3.bf16.msra.mxu1 %v5220_v2 }
 0x896   :  { %v1931_v7 = vadd.f32 %v6243_v45, %v1907_v5  ;;  %v4476_v8 = vpop.f32.mrb[74].mxu0  ;;  %v5224_v10 = vpack.c.bf16 %v1946_v3, %v1945_v9 }
 0x897   :  { %v1948_v11 = vmax.f32 %v1932_v6, 0.0  ;;  %v1910_v12 = vmul.f32 %v4476_v8, %v6238_v15  ;;  %v1862_v13 = vpop.f32.mrb[75].mxu0 }
 0x898   :  { %v1947_v16 = vmax.f32 %v1931_v7, 0.0  ;;  %v1909_v47 = vmul.f32 %v6238_v15, %v1862_v13  ;;  %5225 = vmatprep.subr.bf16.mxu1 %v5224_v10 }
 0x899   :  { %v1934_v52 = vadd.f32 %v6243_v45, %v1910_v12  ;;  %5227 = vmatpush3.bf16.msra.mxu1 %v5224_v10  ;;  %v2340_v12 = vld [vmem:[#allocation10 + $0x1e8] sm:$0xff] }
 0x89a   :  { %v1933_v54 = vadd.f32 %v6243_v45, %v1909_v47  ;;  %v4479_v56 = vpop.f32.mrb[76].mxu0  ;;  %v5228_v58 = vpack.c.bf16 %v1948_v11, %v1947_v16  ;;  %v2339_v11 = vld [vmem:[#allocation10 + $0x1e0] sm:$0xff]  ;;  %v2341_v16 = vld [vmem:[#allocation10 + $0x1f0] sm:$0xff]  ;;  %v2342_v47 = vld [vmem:[#allocation10 + $0x1f8] sm:$0xff] }
 0x89b   :  { %v1950_v59 = vmax.f32 %v1934_v52, 0.0  ;;  %v1912_v60 = vmul.f32 %v4479_v56, %v6238_v15  ;;  %v1872_v61 = vpop.f32.mrb[77].mxu0  ;;  %v5300_v13 = vpack.c.bf16 %v2340_v12, %v2339_v11  ;;  %v5304_v52 = vpack.c.bf16 %v2342_v47, %v2341_v16 }
 0x89c   :  { %v1949_v62 = vmax.f32 %v1933_v54, 0.0  ;;  %v1911_v25 = vmul.f32 %v6238_v15, %v1872_v61  ;;  %5229 = vmatprep.subr.bf16.mxu1 %v5228_v58  ;;  %v6296_v54 = vld [vmem:[%s6513_s4 + $0x3] ss:$0 sm:$0xff] }
 0x89d   :  { %v1936_v26 = vadd.f32 %v6243_v45, %v1912_v60  ;;  %5231 = vmatpush3.bf16.msra.mxu1 %v5228_v58 }
 0x89e   :  { %v1935_v27 = vadd.f32 %v6243_v45, %v1911_v25  ;;  %v4482_v28 = vpop.f32.mrb[78].mxu0  ;;  %v5232_v29 = vpack.c.bf16 %v1950_v59, %v1949_v62 }
 0x89f   :  { %v1952_v30 = vmax.f32 %v1936_v26, 0.0  ;;  %v1914_v31 = vmul.f32 %v4482_v28, %v6238_v15  ;;  %v1882_v32 = vpop.f32.mrb[79].mxu0 }
 0x8a0   :  { %v1951_v33 = vmax.f32 %v1935_v27, 0.0  ;;  %v1913_v34 = vmul.f32 %v6238_v15, %v1882_v32  ;;  %5233 = vmatprep.subr.bf16.mxu1 %v5232_v29  ;;  %v2337_v15 = vld [vmem:[#allocation10 + $0x1d0] sm:$0xff] }
 0x8a1   :  { %v1938_v36 = vadd.f32 %v6243_v45, %v1914_v31  ;;  %5235 = vmatpush3.bf16.msra.mxu1 %v5232_v29 }
 0x8a2   :  { %v1937_v38 = vadd.f32 %v6243_v45, %v1913_v34  ;;  %v5236_v39 = vpack.c.bf16 %v1952_v30, %v1951_v33  ;;  %v2338_v45 = vld [vmem:[#allocation10 + $0x1d8] sm:$0xff] }
 0x8a3   :  { %v1954_v42 = vmax.f32 %v1938_v36, 0.0  ;;  %v5296_v48 = vpack.c.bf16 %v2338_v45, %v2337_v15 }
 0x8a4   :  { %v1953_v44 = vmax.f32 %v1937_v38, 0.0  ;;  %5237 = vmatprep.subr.bf16.mxu1 %v5236_v39 }
 0x8a5   :  { %5239 = vmatpush3.bf16.msra.mxu1 %v5236_v39 }
 0x8a6   :  { %v5240_v46 = vpack.c.bf16 %v1954_v42, %v1953_v44 }
 0x8a8   :  { %5241 = vmatprep.subr.bf16.mxu1 %v5240_v46 }
 0x8a9   :  { %5243 = vmatpush3.bf16.msra.mxu1 %v5240_v46 }
 0x8ac   :  { %4516 = vmatmul.mubr.f32.vlgmr.msra.gmra.mrb[64].mxu1 %v6145_v63  ;;  %v2327_v63 = vld [vmem:[#allocation10 + $0x180] sm:$0xff] }
 0x8ad   :  { %4518 = vmatprep.mubr.f32.mxu1 %v6148_v35  ;;  %v2328_v35 = vld [vmem:[#allocation10 + $0x188] sm:$0xff] }
 0x8b0   :  { %4519 = vmatmul.mubr.f32.gmra.mrb[66].mxu1 %v6151_v50  ;;  %v2329_v50 = vld [vmem:[#allocation10 + $0x190] sm:$0xff] }
 0x8b1   :  { %4521 = vmatprep.mubr.f32.mxu1 %v6154_v53  ;;  %v5276_v53 = vpack.c.bf16 %v2328_v35, %v2327_v63 }
 0x8b3   :  { %5277 = vmatprep.subr.bf16.mxu1 %v5276_v53 }
 0x8b4   :  { %4522 = vmatmul.mubr.f32.gmra.mrb[68].mxu1 %v6157_v37  ;;  %v2330_v37 = vld [vmem:[#allocation10 + $0x198] sm:$0xff] }
 0x8b5   :  { %4524 = vmatprep.mubr.f32.mxu1 %v6160_v17  ;;  %v5280_v17 = vpack.c.bf16 %v2330_v37, %v2329_v50  ;;  %5279 = vmatpush3.bf16.msra.mxu1 %v5276_v53 }
 0x8b7   :  { %5281 = vmatprep.subr.bf16.mxu1 %v5280_v17 }
 0x8b8   :  { %4525 = vmatmul.mubr.f32.gmra.mrb[70].mxu1 %v6163_v18  ;;  %v2331_v18 = vld [vmem:[#allocation10 + $0x1a0] sm:$0xff] }
 0x8b9   :  { %4527 = vmatprep.mubr.f32.mxu1 %v6166_v19  ;;  %v2332_v19 = vld [vmem:[#allocation10 + $0x1a8] sm:$0xff]  ;;  %5283 = vmatpush3.bf16.msra.mxu1 %v5280_v17 }
 0x8bc   :  { %4528 = vmatmul.mubr.f32.gmra.mrb[72].mxu1 %v6169_v20  ;;  %v5284_v20 = vpack.c.bf16 %v2332_v19, %v2331_v18 }
 0x8bd   :  { %4530 = vmatprep.mubr.f32.mxu1 %v6172_v41  ;;  %v2333_v41 = vld [vmem:[#allocation10 + $0x1b0] sm:$0xff] }
 0x8be   :  { %5285 = vmatprep.subr.bf16.mxu1 %v5284_v20 }
 0x8bf   :  { %5287 = vmatpush3.bf16.msra.mxu1 %v5284_v20 }
 0x8c0   :  { %4531 = vmatmul.mubr.f32.gmra.mrb[74].mxu1 %v6175_v21  ;;  %v2334_v21 = vld [vmem:[#allocation10 + $0x1b8] sm:$0xff] }
 0x8c1   :  { %4533 = vmatprep.mubr.f32.mxu1 %v6178_v43  ;;  %v5288_v43 = vpack.c.bf16 %v2334_v21, %v2333_v41 }
 0x8c3   :  { %5289 = vmatprep.subr.bf16.mxu1 %v5288_v43 }
 0x8c4   :  { %4534 = vmatmul.mubr.f32.gmra.mrb[76].mxu1 %v6181_v22  ;;  %v2335_v22 = vld [vmem:[#allocation10 + $0x1c0] sm:$0xff] }
 0x8c5   :  { %4536 = vmatprep.mubr.f32.mxu1 %v6184_v23  ;;  %v2336_v23 = vld [vmem:[#allocation10 + $0x1c8] sm:$0xff]  ;;  %5291 = vmatpush3.bf16.msra.mxu1 %v5288_v43 }
 0x8c8   :  { %4537 = vmatmul.mubr.f32.gmra.mrb[78].mxu1 %v6187_v24  ;;  %v5292_v24 = vpack.c.bf16 %v2336_v23, %v2335_v22 }
 0x8ca   :  { %5293 = vmatprep.subr.bf16.mxu1 %v5292_v24 }
 0x8cb   :  { %5295 = vmatpush3.bf16.msra.mxu1 %v5292_v24 }
 0x8cc   :  { %5297 = vmatprep.subr.bf16.mxu1 %v5296_v48 }
 0x8cf   :  { %5299 = vmatpush3.bf16.msra.mxu1 %v5296_v48 }
 0x8d0   :  { %5301 = vmatprep.subr.bf16.mxu1 %v5300_v13 }
 0x8d3   :  { %5303 = vmatpush3.bf16.msra.mxu1 %v5300_v13 }
 0x8d4   :  { %5305 = vmatprep.subr.bf16.mxu1 %v5304_v52 }
 0x8d7   :  { %5307 = vmatpush3.bf16.msra.mxu1 %v5304_v52 }
 0x97f   :  { %v4517_v49 = vpop.f32.mrb[64].mxu1 }
 0x980   :  { %v2021_v51 = vpop.f32.mrb[65].mxu1 }
 0x981   :  { %4571 = vmatprep.mubr.f32.mxu0 %v2021_v51 }
 0x982   :  { %4572 = vmatmul.mubr.f32.vlgmr.msra.gmra.mrb[80].mxu0 %v4517_v49 }
 0x983   :  { %v4520_v0 = vpop.f32.mrb[66].mxu1 }
 0x984   :  { %v2031_v55 = vpop.f32.mrb[67].mxu1 }
 0x985   :  { %4574 = vmatprep.mubr.f32.mxu0 %v2031_v55 }
 0x986   :  { %4575 = vmatmul.mubr.f32.gmra.mrb[82].mxu0 %v4520_v0 }
 0x987   :  { %v4523_v1 = vpop.f32.mrb[68].mxu1 }
 0x988   :  { %v2041_v57 = vpop.f32.mrb[69].mxu1 }
 0x989   :  { %4577 = vmatprep.mubr.f32.mxu0 %v2041_v57 }
 0x98a   :  { %4578 = vmatmul.mubr.f32.gmra.mrb[84].mxu0 %v4523_v1 }
 0x98b   :  { %v4526_v2 = vpop.f32.mrb[70].mxu1 }
 0x98c   :  { %v2051_v3 = vpop.f32.mrb[71].mxu1 }
 0x98d   :  { %4580 = vmatprep.mubr.f32.mxu0 %v2051_v3 }
 0x98e   :  { %4581 = vmatmul.mubr.f32.gmra.mrb[86].mxu0 %v4526_v2 }
 0x98f   :  { %v4529_v40 = vpop.f32.mrb[72].mxu1 }
 0x990   :  { %v2061_v4 = vpop.f32.mrb[73].mxu1 }
 0x991   :  { %4583 = vmatprep.mubr.f32.mxu0 %v2061_v4 }
 0x992   :  { %4584 = vmatmul.mubr.f32.gmra.mrb[88].mxu0 %v4529_v40 }
 0x993   :  { %v4532_v9 = vpop.f32.mrb[74].mxu1 }
 0x994   :  { %v2071_v5 = vpop.f32.mrb[75].mxu1 }
 0x995   :  { %4586 = vmatprep.mubr.f32.mxu0 %v2071_v5 }
 0x996   :  { %4587 = vmatmul.mubr.f32.gmra.mrb[90].mxu0 %v4532_v9 }
 0x997   :  { %v4535_v6 = vpop.f32.mrb[76].mxu1 }
 0x998   :  { %v2081_v7 = vpop.f32.mrb[77].mxu1 }
 0x999   :  { %4589 = vmatprep.mubr.f32.mxu0 %v2081_v7 }
 0x99a   :  { %4590 = vmatmul.mubr.f32.gmra.mrb[92].mxu0 %v4535_v6 }
 0x99b   :  { %v4538_v8 = vpop.f32.mrb[78].mxu1 }
 0x99c   :  { %v2091_v10 = vpop.f32.mrb[79].mxu1 }
 0x99d   :  { %4592 = vmatprep.mubr.f32.mxu0 %v2091_v10 }
 0x99e   :  { %4593 = vmatmul.mubr.f32.gmra.mrb[94].mxu0 %v4538_v8 }
 0x99f   :  { %4683 = vmatprep.mubr.f32.mxu0 %v6190_v14  ;;  %v6301_v14 = vld [vmem:[%s6514_s5 + $0x3] ss:$0 sm:$0xff] }
 0xa55   :  { %v4573_v56 = vpop.f32.mrb[80].mxu0 }
 0xa56   :  { %v2271_v58 = vmul.f32 %v4573_v56, %v6296_v54  ;;  %v2183_v59 = vpop.f32.mrb[81].mxu0 }
 0xa57   :  { %v2270_v60 = vmul.f32 %v6296_v54, %v2183_v59  ;;  %v2698_v59 = vld [vmem:[#allocation8 + $0x200] sm:$0xff] }
 0xa58   :  { %v2295_v61 = vadd.f32 %v6301_v14, %v2271_v58 }
 0xa59   :  { %v2294_v62 = vadd.f32 %v6301_v14, %v2270_v60  ;;  %v4576_v25 = vpop.f32.mrb[82].mxu0  ;;  %v2699_v60 = vld [vmem:[#allocation8 + $0x208] sm:$0xff] }
 0xa5a   :  { %v2273_v26 = vmul.f32 %v4576_v25, %v6296_v54  ;;  %v2193_v27 = vpop.f32.mrb[83].mxu0  ;;  %v2311_v30 = vmax.f32 %v2295_v61, 0.0  ;;  %v2700_v61 = vld [vmem:[#allocation8 + $0x210] sm:$0xff]  ;;  %v2701_v25 = vld [vmem:[#allocation8 + $0x218] sm:$0xff] }
 0xa5b   :  { %v2310_v28 = vmax.f32 %v2294_v62, 0.0  ;;  %v2272_v29 = vmul.f32 %v6296_v54, %v2193_v27  ;;  %v5340_v62 = vpack.c.bf16 %v2699_v60, %v2698_v59  ;;  %v2702_v27 = vld [vmem:[#allocation8 + $0x220] sm:$0xff] }
 0xa5c   :  { %v2297_v31 = vadd.f32 %v6301_v14, %v2273_v26  ;;  %v5344_v26 = vpack.c.bf16 %v2701_v25, %v2700_v61 }
 0xa5d   :  { %v2296_v32 = vadd.f32 %v6301_v14, %v2272_v29  ;;  %v4579_v33 = vpop.f32.mrb[84].mxu0  ;;  %4627 = vmatprep.mubr.f32.mxu1 %v2310_v28  ;;  %v2703_v28 = vld [vmem:[#allocation8 + $0x228] sm:$0xff]  ;;  %5341 = vmatprep.subr.bf16.mxu1 %v5340_v62  ;;  %v2704_v29 = vld [vmem:[#allocation8 + $0x230] sm:$0xff] }
 0xa5e   :  { %v2275_v34 = vmul.f32 %v4579_v33, %v6296_v54  ;;  %v2203_v36 = vpop.f32.mrb[85].mxu0  ;;  %4628 = vmatmul.mubr.f32.vlgmr.msra.gmra.mrb[80].mxu1 %v2311_v30  ;;  %v2313_v42 = vmax.f32 %v2297_v31, 0.0  ;;  %v2706_v31 = vld [vmem:[#allocation8 + $0x240] sm:$0xff] }
 0xa5f   :  { %v2312_v38 = vmax.f32 %v2296_v32, 0.0  ;;  %v2274_v39 = vmul.f32 %v6296_v54, %v2203_v36  ;;  %5343 = vmatpush3.bf16.msra.mxu1 %v5340_v62  ;;  %v2707_v32 = vld [vmem:[#allocation8 + $0x248] sm:$0xff]  ;;  %v2709_v36 = vld [vmem:[#allocation8 + $0x258] sm:$0xff] }
 0xa60   :  { %v2299_v44 = vadd.f32 %v6301_v14, %v2275_v34  ;;  %5345 = vmatprep.subr.bf16.mxu1 %v5344_v26  ;;  %v5356_v33 = vpack.c.bf16 %v2707_v32, %v2706_v31  ;;  %v2708_v34 = vld [vmem:[#allocation8 + $0x250] sm:$0xff] }
 0xa61   :  { %v2298_v46 = vadd.f32 %v6301_v14, %v2274_v39  ;;  %v4582_v63 = vpop.f32.mrb[86].mxu0  ;;  %4630 = vmatprep.mubr.f32.mxu1 %v2312_v38  ;;  %v5360_v38 = vpack.c.bf16 %v2709_v36, %v2708_v34  ;;  %v2710_v39 = vld [vmem:[#allocation8 + $0x260] sm:$0xff] }
 0xa62   :  { %v2277_v35 = vmul.f32 %v4582_v63, %v6296_v54  ;;  %v2213_v50 = vpop.f32.mrb[87].mxu0  ;;  %4631 = vmatmul.mubr.f32.gmra.mrb[82].mxu1 %v2313_v42  ;;  %v2315_v17 = vmax.f32 %v2299_v44, 0.0  ;;  %v2711_v42 = vld [vmem:[#allocation8 + $0x268] sm:$0xff]  ;;  %v2713_v63 = vld [vmem:[#allocation8 + $0x278] sm:$0xff] }
 0xa63   :  { %v2314_v53 = vmax.f32 %v2298_v46, 0.0  ;;  %v2276_v37 = vmul.f32 %v6296_v54, %v2213_v50  ;;  %5347 = vmatpush3.bf16.msra.mxu1 %v5344_v26  ;;  %v5364_v44 = vpack.c.bf16 %v2711_v42, %v2710_v39  ;;  %v2712_v46 = vld [vmem:[#allocation8 + $0x270] sm:$0xff]  ;;  %v6338_v50 = vld [vmem:[%s6516_s7 + $0x3] ss:$0 sm:$0xff] }
 0xa64   :  { %v2301_v18 = vadd.f32 %v6301_v14, %v2277_v35  ;;  %v5368_v35 = vpack.c.bf16 %v2713_v63, %v2712_v46 }
 0xa65   :  { %v2300_v19 = vadd.f32 %v6301_v14, %v2276_v37  ;;  %v4585_v20 = vpop.f32.mrb[88].mxu0  ;;  %4633 = vmatprep.mubr.f32.mxu1 %v2314_v53  ;;  %v6343_v37 = vld [vmem:[%s6517_s8 + $0x3] ss:$0 sm:$0xff] }
 0xa66   :  { %v2279_v41 = vmul.f32 %v4585_v20, %v6296_v54  ;;  %v2223_v21 = vpop.f32.mrb[89].mxu0  ;;  %4634 = vmatmul.mubr.f32.gmra.mrb[84].mxu1 %v2315_v17  ;;  %v2317_v23 = vmax.f32 %v2301_v18, 0.0 }
 0xa67   :  { %v2316_v43 = vmax.f32 %v2300_v19, 0.0  ;;  %v2278_v22 = vmul.f32 %v6296_v54, %v2223_v21 }
 0xa68   :  { %v2303_v24 = vadd.f32 %v6301_v14, %v2279_v41 }
 0xa69   :  { %v2302_v15 = vadd.f32 %v6301_v14, %v2278_v22  ;;  %v4588_v45 = vpop.f32.mrb[90].mxu0  ;;  %4636 = vmatprep.mubr.f32.mxu1 %v2316_v43 }
 0xa6a   :  { %v2281_v48 = vmul.f32 %v4588_v45, %v6296_v54  ;;  %v2233_v49 = vpop.f32.mrb[91].mxu0  ;;  %4637 = vmatmul.mubr.f32.gmra.mrb[86].mxu1 %v2317_v23  ;;  %v2319_v55 = vmax.f32 %v2303_v24, 0.0 }
 0xa6b   :  { %v2318_v51 = vmax.f32 %v2302_v15, 0.0  ;;  %v2280_v0 = vmul.f32 %v6296_v54, %v2233_v49 }
 0xa6c   :  { %v2305_v1 = vadd.f32 %v6301_v14, %v2281_v48 }
 0xa6d   :  { %v2304_v57 = vadd.f32 %v6301_v14, %v2280_v0  ;;  %v4591_v2 = vpop.f32.mrb[92].mxu0  ;;  %4639 = vmatprep.mubr.f32.mxu1 %v2318_v51 }
 0xa6e   :  { %v2283_v3 = vmul.f32 %v4591_v2, %v6296_v54  ;;  %v2243_v40 = vpop.f32.mrb[93].mxu0  ;;  %4640 = vmatmul.mubr.f32.gmra.mrb[88].mxu1 %v2319_v55  ;;  %v2321_v5 = vmax.f32 %v2305_v1, 0.0 }
 0xa6f   :  { %v2320_v4 = vmax.f32 %v2304_v57, 0.0  ;;  %v2282_v9 = vmul.f32 %v6296_v54, %v2243_v40 }
 0xa70   :  { %v2307_v6 = vadd.f32 %v6301_v14, %v2283_v3 }
 0xa71   :  { %v2306_v7 = vadd.f32 %v6301_v14, %v2282_v9  ;;  %v4594_v8 = vpop.f32.mrb[94].mxu0  ;;  %4642 = vmatprep.mubr.f32.mxu1 %v2320_v4 }
 0xa72   :  { %v2285_v10 = vmul.f32 %v4594_v8, %v6296_v54  ;;  %v2253_v11 = vpop.f32.mrb[95].mxu0  ;;  %4643 = vmatmul.mubr.f32.gmra.mrb[90].mxu1 %v2321_v5  ;;  %v2323_v16 = vmax.f32 %v2307_v6, 0.0 }
 0xa73   :  { %v2322_v12 = vmax.f32 %v2306_v7, 0.0  ;;  %v2284_v13 = vmul.f32 %v6296_v54, %v2253_v11  ;;  %v5348_v54 = vpack.c.bf16 %v2703_v28, %v2702_v27 }
 0xa74   :  { %v2309_v47 = vadd.f32 %v6301_v14, %v2285_v10 }
 0xa75   :  { %v2308_v52 = vadd.f32 %v6301_v14, %v2284_v13  ;;  %4645 = vmatprep.mubr.f32.mxu1 %v2322_v12  ;;  %v2705_v14 = vld [vmem:[#allocation8 + $0x238] sm:$0xff]  ;;  %5349 = vmatprep.subr.bf16.mxu1 %v5348_v54 }
 0xa76   :  { %4646 = vmatmul.mubr.f32.gmra.mrb[92].mxu1 %v2323_v16  ;;  %v2325_v58 = vmax.f32 %v2309_v47, 0.0  ;;  %v5352_v30 = vpack.c.bf16 %v2705_v14, %v2704_v29 }
 0xa77   :  { %v2324_v56 = vmax.f32 %v2308_v52, 0.0  ;;  %5351 = vmatpush3.bf16.msra.mxu1 %v5348_v54 }
 0xa78   :  { %5353 = vmatprep.subr.bf16.mxu1 %v5352_v30 }
 0xa79   :  { %4648 = vmatprep.mubr.f32.mxu1 %v2324_v56 }
 0xa7a   :  { %4649 = vmatmul.mubr.f32.gmra.mrb[94].mxu1 %v2325_v58 }
 0xa7b   :  { %5355 = vmatpush3.bf16.msra.mxu1 %v5352_v30 }
 0xa7c   :  { %5357 = vmatprep.subr.bf16.mxu1 %v5356_v33 }
 0xa7f   :  { %5359 = vmatpush3.bf16.msra.mxu1 %v5356_v33 }
 0xa80   :  { %5361 = vmatprep.subr.bf16.mxu1 %v5360_v38 }
 0xa83   :  { %5363 = vmatpush3.bf16.msra.mxu1 %v5360_v38 }
 0xa84   :  { %5365 = vmatprep.subr.bf16.mxu1 %v5364_v44 }
 0xa87   :  { %5367 = vmatpush3.bf16.msra.mxu1 %v5364_v44 }
 0xa88   :  { %5369 = vmatprep.subr.bf16.mxu1 %v5368_v35 }
 0xa8b   :  { %5371 = vmatpush3.bf16.msra.mxu1 %v5368_v35 }
 0xb31   :  { %v4629_v53 = vpop.f32.mrb[80].mxu1 }
 0xb32   :  { %v2497_v17 = vmul.f32 %v4629_v53, %v6338_v50  ;;  %v2409_v18 = vpop.f32.mrb[81].mxu1 }
 0xb33   :  { %v2496_v19 = vmul.f32 %v6338_v50, %v2409_v18 }
 0xb34   :  { %v2521_v20 = vadd.f32 %v6343_v37, %v2497_v17 }
 0xb35   :  { %v2520_v41 = vadd.f32 %v6343_v37, %v2496_v19  ;;  %v4632_v21 = vpop.f32.mrb[82].mxu1 }
 0xb36   :  { %v2537_v43 = vmax.f32 %v2521_v20, 0.0  ;;  %v2499_v22 = vmul.f32 %v4632_v21, %v6338_v50  ;;  %v2419_v23 = vpop.f32.mrb[83].mxu1 }
 0xb37   :  { %v2536_v24 = vmax.f32 %v2520_v41, 0.0  ;;  %v2498_v15 = vmul.f32 %v6338_v50, %v2419_v23 }
 0xb38   :  { %v2523_v45 = vadd.f32 %v6343_v37, %v2499_v22 }
 0xb39   :  { %v2522_v48 = vadd.f32 %v6343_v37, %v2498_v15  ;;  %v4635_v49 = vpop.f32.mrb[84].mxu1  ;;  %v5308_v51 = vpack.c.bf16 %v2537_v43, %v2536_v24  ;;  %v5505_v24 = vld [vmem:[#allocation2 + $0x8] sm:$0xff]  ;;  %v5506_v15 = vld [vmem:[#allocation2 + $0x10] sm:$0xff] }
 0xb3a   :  { %v2539_v0 = vmax.f32 %v2523_v45, 0.0  ;;  %v2501_v55 = vmul.f32 %v4635_v49, %v6338_v50  ;;  %v2429_v1 = vpop.f32.mrb[85].mxu1  ;;  %v5507_v45 = vld [vmem:[#allocation2 + $0x18] sm:$0xff]  ;;  %v5510_v49 = vld [vmem:[#allocation2 + $0x30] sm:$0xff] }
 0xb3b   :  { %v2538_v57 = vmax.f32 %v2522_v48, 0.0  ;;  %v2500_v2 = vmul.f32 %v6338_v50, %v2429_v1  ;;  %5309 = vmatprep.subr.bf16.mxu0 %v5308_v51  ;;  %v5509_v48 = vld [vmem:[#allocation2 + $0x28] sm:$0xff]  ;;  %v5515_v1 = vld [vmem:[#allocation2 + $0x58] sm:$0xff] }
 0xb3c   :  { %v2525_v3 = vadd.f32 %v6343_v37, %v2501_v55  ;;  %5311 = vmatpush3.bf16.msra.mxu0 %v5308_v51  ;;  %v5512_v51 = vld [vmem:[#allocation2 + $0x40] sm:$0xff]  ;;  %v5514_v55 = vld [vmem:[#allocation2 + $0x50] sm:$0xff] }
 0xb3d   :  { %v2524_v40 = vadd.f32 %v6343_v37, %v2500_v2  ;;  %v4638_v4 = vpop.f32.mrb[86].mxu1  ;;  %v5312_v9 = vpack.c.bf16 %v2539_v0, %v2538_v57  ;;  %v5513_v0 = vld [vmem:[#allocation2 + $0x48] sm:$0xff]  ;;  %v5516_v57 = vld [vmem:[#allocation2 + $0x60] sm:$0xff] }
 0xb3e   :  { %v2541_v5 = vmax.f32 %v2525_v3, 0.0  ;;  %v2503_v6 = vmul.f32 %v4638_v4, %v6338_v50  ;;  %v2439_v7 = vpop.f32.mrb[87].mxu1  ;;  %v5517_v2 = vld [vmem:[#allocation2 + $0x68] sm:$0xff]  ;;  %v5518_v3 = vld [vmem:[#allocation2 + $0x70] sm:$0xff] }
 0xb3f   :  { %v2540_v8 = vmax.f32 %v2524_v40, 0.0  ;;  %v2502_v10 = vmul.f32 %v6338_v50, %v2439_v7  ;;  %5313 = vmatprep.subr.bf16.mxu0 %v5312_v9  ;;  %v5519_v40 = vld [vmem:[#allocation2 + $0x78] sm:$0xff]  ;;  %v2924_v4 = vld [vmem:[#allocation10 + $0x200] sm:$0xff]  ;;  %v2927_v7 = vld [vmem:[#allocation10 + $0x218] sm:$0xff] }
 0xb40   :  { %v2527_v11 = vadd.f32 %v6343_v37, %v2503_v6  ;;  %5315 = vmatpush3.bf16.msra.mxu0 %v5312_v9  ;;  %v2925_v9 = vld [vmem:[#allocation10 + $0x208] sm:$0xff] }
 0xb41   :  { %v2526_v12 = vadd.f32 %v6343_v37, %v2502_v10  ;;  %v4641_v13 = vpop.f32.mrb[88].mxu1  ;;  %v5316_v16 = vpack.c.bf16 %v2541_v5, %v2540_v8  ;;  %v2926_v5 = vld [vmem:[#allocation10 + $0x210] sm:$0xff]  ;;  %v5372_v6 = vpack.c.bf16 %v2925_v9, %v2924_v4  ;;  %v2928_v10 = vld [vmem:[#allocation10 + $0x220] sm:$0xff] }
 0xb42   :  { %v2543_v47 = vmax.f32 %v2527_v11, 0.0  ;;  %v2505_v52 = vmul.f32 %v4641_v13, %v6338_v50  ;;  %v2449_v56 = vpop.f32.mrb[89].mxu1  ;;  %v5376_v8 = vpack.c.bf16 %v2927_v7, %v2926_v5  ;;  %v2929_v11 = vld [vmem:[#allocation10 + $0x228] sm:$0xff]  ;;  %v2930_v13 = vld [vmem:[#allocation10 + $0x230] sm:$0xff] }
 0xb43   :  { %v2542_v58 = vmax.f32 %v2526_v12, 0.0  ;;  %v2504_v59 = vmul.f32 %v6338_v50, %v2449_v56  ;;  %5317 = vmatprep.subr.bf16.mxu0 %v5316_v16  ;;  %v5380_v12 = vpack.c.bf16 %v2929_v11, %v2928_v10  ;;  %v2933_v56 = vld [vmem:[#allocation10 + $0x248] sm:$0xff] }
 0xb44   :  { %v2529_v60 = vadd.f32 %v6343_v37, %v2505_v52  ;;  %5319 = vmatpush3.bf16.msra.mxu0 %v5316_v16  ;;  %v2931_v16 = vld [vmem:[#allocation10 + $0x238] sm:$0xff]  ;;  %v2932_v52 = vld [vmem:[#allocation10 + $0x240] sm:$0xff] }
 0xb45   :  { %v2528_v61 = vadd.f32 %v6343_v37, %v2504_v59  ;;  %v4644_v62 = vpop.f32.mrb[90].mxu1  ;;  %v5320_v25 = vpack.c.bf16 %v2543_v47, %v2542_v58  ;;  %v5384_v47 = vpack.c.bf16 %v2931_v16, %v2930_v13  ;;  %v5388_v58 = vpack.c.bf16 %v2933_v56, %v2932_v52  ;;  %v2934_v59 = vld [vmem:[#allocation10 + $0x250] sm:$0xff] }
 0xb46   :  { %v2545_v26 = vmax.f32 %v2529_v60, 0.0  ;;  %v2507_v27 = vmul.f32 %v4644_v62, %v6338_v50  ;;  %v2459_v28 = vpop.f32.mrb[91].mxu1  ;;  %v2935_v60 = vld [vmem:[#allocation10 + $0x258] sm:$0xff] }
 0xb47   :  { %v2544_v54 = vmax.f32 %v2528_v61, 0.0  ;;  %v2506_v29 = vmul.f32 %v6338_v50, %v2459_v28  ;;  %5321 = vmatprep.subr.bf16.mxu0 %v5320_v25  ;;  %v5392_v61 = vpack.c.bf16 %v2935_v60, %v2934_v59 }
 0xb48   :  { %v2531_v14 = vadd.f32 %v6343_v37, %v2507_v27  ;;  %5323 = vmatpush3.bf16.msra.mxu0 %v5320_v25 }
 0xb49   :  { %v2530_v30 = vadd.f32 %v6343_v37, %v2506_v29  ;;  %v4647_v31 = vpop.f32.mrb[92].mxu1  ;;  %v5324_v32 = vpack.c.bf16 %v2545_v26, %v2544_v54 }
 0xb4a   :  { %v2547_v33 = vmax.f32 %v2531_v14, 0.0  ;;  %v2509_v34 = vmul.f32 %v4647_v31, %v6338_v50  ;;  %v2469_v36 = vpop.f32.mrb[93].mxu1 }
 0xb4b   :  { %v2546_v38 = vmax.f32 %v2530_v30, 0.0  ;;  %v2508_v39 = vmul.f32 %v6338_v50, %v2469_v36  ;;  %5325 = vmatprep.subr.bf16.mxu0 %v5324_v32 }
 0xb4c   :  { %v2533_v42 = vadd.f32 %v6343_v37, %v2509_v34  ;;  %5327 = vmatpush3.bf16.msra.mxu0 %v5324_v32 }
 0xb4d   :  { %v2532_v44 = vadd.f32 %v6343_v37, %v2508_v39  ;;  %v4650_v46 = vpop.f32.mrb[94].mxu1  ;;  %v5328_v63 = vpack.c.bf16 %v2547_v33, %v2546_v38 }
 0xb4e   :  { %v2549_v35 = vmax.f32 %v2533_v42, 0.0  ;;  %v2511_v53 = vmul.f32 %v4650_v46, %v6338_v50  ;;  %v2479_v17 = vpop.f32.mrb[95].mxu1  ;;  %v2936_v42 = vld [vmem:[#allocation10 + $0x260] sm:$0xff] }
 0xb4f   :  { %v2548_v18 = vmax.f32 %v2532_v44, 0.0  ;;  %v2510_v19 = vmul.f32 %v6338_v50, %v2479_v17  ;;  %5329 = vmatprep.subr.bf16.mxu0 %v5328_v63  ;;  %v5508_v50 = vld [vmem:[#allocation2 + $0x20] sm:$0xff]  ;;  %v2937_v44 = vld [vmem:[#allocation10 + $0x268] sm:$0xff] }
 0xb50   :  { %v2535_v20 = vadd.f32 %v6343_v37, %v2511_v53  ;;  %5331 = vmatpush3.bf16.msra.mxu0 %v5328_v63  ;;  %v5396_v46 = vpack.c.bf16 %v2937_v44, %v2936_v42  ;;  %v2938_v63 = vld [vmem:[#allocation10 + $0x270] sm:$0xff]  ;;  %v6380_v17 = vld [vmem:[%s6513_s4 + $0x4] ss:$0 sm:$0xff] }
 0xb51   :  { %v2534_v41 = vadd.f32 %v6343_v37, %v2510_v19  ;;  %v5332_v21 = vpack.c.bf16 %v2549_v35, %v2548_v18  ;;  %v5511_v37 = vld [vmem:[#allocation2 + $0x38] sm:$0xff]  ;;  %v2939_v35 = vld [vmem:[#allocation10 + $0x278] sm:$0xff] }
 0xb52   :  { %v2551_v43 = vmax.f32 %v2535_v20, 0.0  ;;  %v5400_v53 = vpack.c.bf16 %v2939_v35, %v2938_v63  ;;  %v6385_v19 = vld [vmem:[%s6514_s5 + $0x4] ss:$0 sm:$0xff] }
 0xb53   :  { %v2550_v22 = vmax.f32 %v2534_v41, 0.0  ;;  %5333 = vmatprep.subr.bf16.mxu0 %v5332_v21 }
 0xb54   :  { %5335 = vmatpush3.bf16.msra.mxu0 %v5332_v21 }
 0xb55   :  { %v5336_v23 = vpack.c.bf16 %v2551_v43, %v2550_v22 }
 0xb57   :  { %5337 = vmatprep.subr.bf16.mxu0 %v5336_v23 }
 0xb58   :  { %5339 = vmatpush3.bf16.msra.mxu0 %v5336_v23 }
 0xb59   :  { %5373 = vmatprep.subr.bf16.mxu0 %v5372_v6 }
 0xb5b   :  { %4684 = vmatmul.mubr.f32.vlgmr.msra.gmra.mrb[96].mxu0 %v5505_v24 }
 0xb5c   :  { %4686 = vmatprep.mubr.f32.mxu0 %v5506_v15  ;;  %5375 = vmatpush3.bf16.msra.mxu0 %v5372_v6 }
 0xb5d   :  { %5377 = vmatprep.subr.bf16.mxu0 %v5376_v8 }
 0xb5f   :  { %4687 = vmatmul.mubr.f32.gmra.mrb[98].mxu0 %v5507_v45 }
 0xb60   :  { %4689 = vmatprep.mubr.f32.mxu0 %v5508_v50  ;;  %5379 = vmatpush3.bf16.msra.mxu0 %v5376_v8 }
 0xb61   :  { %5381 = vmatprep.subr.bf16.mxu0 %v5380_v12 }
 0xb63   :  { %4690 = vmatmul.mubr.f32.gmra.mrb[100].mxu0 %v5509_v48 }
 0xb64   :  { %4692 = vmatprep.mubr.f32.mxu0 %v5510_v49  ;;  %5383 = vmatpush3.bf16.msra.mxu0 %v5380_v12 }
 0xb65   :  { %5385 = vmatprep.subr.bf16.mxu0 %v5384_v47 }
 0xb67   :  { %4693 = vmatmul.mubr.f32.gmra.mrb[102].mxu0 %v5511_v37 }
 0xb68   :  { %4695 = vmatprep.mubr.f32.mxu0 %v5512_v51  ;;  %5387 = vmatpush3.bf16.msra.mxu0 %v5384_v47 }
 0xb69   :  { %5389 = vmatprep.subr.bf16.mxu0 %v5388_v58 }
 0xb6b   :  { %4696 = vmatmul.mubr.f32.gmra.mrb[104].mxu0 %v5513_v0 }
 0xb6c   :  { %4698 = vmatprep.mubr.f32.mxu0 %v5514_v55  ;;  %5391 = vmatpush3.bf16.msra.mxu0 %v5388_v58 }
 0xb6d   :  { %5393 = vmatprep.subr.bf16.mxu0 %v5392_v61 }
 0xb6f   :  { %4699 = vmatmul.mubr.f32.gmra.mrb[106].mxu0 %v5515_v1 }
 0xb70   :  { %4701 = vmatprep.mubr.f32.mxu0 %v5516_v57  ;;  %5395 = vmatpush3.bf16.msra.mxu0 %v5392_v61 }
 0xb71   :  { %5397 = vmatprep.subr.bf16.mxu0 %v5396_v46 }
 0xb73   :  { %4702 = vmatmul.mubr.f32.gmra.mrb[108].mxu0 %v5517_v2 }
 0xb74   :  { %4704 = vmatprep.mubr.f32.mxu0 %v5518_v3  ;;  %5399 = vmatpush3.bf16.msra.mxu0 %v5396_v46 }
 0xb75   :  { %5401 = vmatprep.subr.bf16.mxu0 %v5400_v53 }
 0xb77   :  { %4705 = vmatmul.mubr.f32.gmra.mrb[110].mxu0 %v5519_v40 }
 0xb78   :  { %5403 = vmatpush3.bf16.msra.mxu0 %v5400_v53 }
 0xc2e   :  { %v4685_v62 = vpop.f32.mrb[96].mxu0 }
 0xc2f   :  { %v2618_v25 = vpop.f32.mrb[97].mxu0 }
 0xc30   :  { %4739 = vmatprep.mubr.f32.mxu1 %v2618_v25 }
 0xc31   :  { %4740 = vmatmul.mubr.f32.vlgmr.msra.gmra.mrb[96].mxu1 %v4685_v62 }
 0xc32   :  { %v4688_v26 = vpop.f32.mrb[98].mxu0 }
 0xc33   :  { %v2628_v27 = vpop.f32.mrb[99].mxu0 }
 0xc34   :  { %4742 = vmatprep.mubr.f32.mxu1 %v2628_v27 }
 0xc35   :  { %4743 = vmatmul.mubr.f32.gmra.mrb[98].mxu1 %v4688_v26 }
 0xc36   :  { %v4691_v28 = vpop.f32.mrb[100].mxu0 }
 0xc37   :  { %v2638_v54 = vpop.f32.mrb[101].mxu0 }
 0xc38   :  { %4745 = vmatprep.mubr.f32.mxu1 %v2638_v54 }
 0xc39   :  { %4746 = vmatmul.mubr.f32.gmra.mrb[100].mxu1 %v4691_v28 }
 0xc3a   :  { %v4694_v29 = vpop.f32.mrb[102].mxu0 }
 0xc3b   :  { %v2648_v14 = vpop.f32.mrb[103].mxu0 }
 0xc3c   :  { %4748 = vmatprep.mubr.f32.mxu1 %v2648_v14 }
 0xc3d   :  { %4749 = vmatmul.mubr.f32.gmra.mrb[102].mxu1 %v4694_v29 }
 0xc3e   :  { %v4697_v30 = vpop.f32.mrb[104].mxu0 }
 0xc3f   :  { %v2658_v31 = vpop.f32.mrb[105].mxu0 }
 0xc40   :  { %4751 = vmatprep.mubr.f32.mxu1 %v2658_v31 }
 0xc41   :  { %4752 = vmatmul.mubr.f32.gmra.mrb[104].mxu1 %v4697_v30 }
 0xc42   :  { %v4700_v32 = vpop.f32.mrb[106].mxu0 }
 0xc43   :  { %v2668_v33 = vpop.f32.mrb[107].mxu0 }
 0xc44   :  { %4754 = vmatprep.mubr.f32.mxu1 %v2668_v33 }
 0xc45   :  { %4755 = vmatmul.mubr.f32.gmra.mrb[106].mxu1 %v4700_v32 }
 0xc46   :  { %v4703_v34 = vpop.f32.mrb[108].mxu0 }
 0xc47   :  { %v2678_v36 = vpop.f32.mrb[109].mxu0 }
 0xc48   :  { %4757 = vmatprep.mubr.f32.mxu1 %v2678_v36 }
 0xc49   :  { %4758 = vmatmul.mubr.f32.gmra.mrb[108].mxu1 %v4703_v34 }
 0xc4a   :  { %v4706_v38 = vpop.f32.mrb[110].mxu0 }
 0xc4b   :  { %v2688_v39 = vpop.f32.mrb[111].mxu0 }
 0xc4c   :  { %4760 = vmatprep.mubr.f32.mxu1 %v2688_v39 }
 0xc4d   :  { %4761 = vmatmul.mubr.f32.gmra.mrb[110].mxu1 %v4706_v38 }
 0xd04   :  { %v4741_v18 = vpop.f32.mrb[96].mxu1 }
 0xd05   :  { %v2868_v20 = vmul.f32 %v4741_v18, %v6380_v17  ;;  %v2780_v41 = vpop.f32.mrb[97].mxu1 }
 0xd06   :  { %v2867_v21 = vmul.f32 %v6380_v17, %v2780_v41  ;;  %v5715_v41 = vmov 0.0|0.0  }
 0xd07   :  { %v2892_v43 = vadd.f32 %v6385_v19, %v2868_v20  ;;  %5404 = vmatprep.subr.bf16.mxu1 %v5715_v41  ;;  %5428 = vmatprep.subr.bf16.mxu0 %v5715_v41 }
 0xd08   :  { %v2891_v22 = vadd.f32 %v6385_v19, %v2867_v21  ;;  %v4744_v23 = vpop.f32.mrb[98].mxu1  ;;  %v5717_v21 = vmov 0.0  }
 0xd09   :  { %v2870_v24 = vmul.f32 %v4744_v23, %v6380_v17  ;;  %v2790_v15 = vpop.f32.mrb[99].mxu1  ;;  %v2908_v48 = vmax.f32 %v2892_v43, 0.0  ;;  %4851 = vmatprep.mubr.msk.f32.mxu1 %vm5716_vm0, %v5717_v21  ;;  %v3206_v43 = vld [vmem:[#allocation11 + $0x10] sm:$0xff]  ;;  %v3207_v23 = vld [vmem:[#allocation11 + $0x18] sm:$0xff] }
 0xd0a   :  { %v2907_v45 = vmax.f32 %v2891_v22, 0.0  ;;  %v2869_v50 = vmul.f32 %v6380_v17, %v2790_v15  ;;  %v3208_v15 = vld [vmem:[#allocation11 + $0x20] sm:$0xff] }
 0xd0b   :  { %v2894_v49 = vadd.f32 %v6385_v19, %v2870_v24  ;;  %v5432_v24 = vpack.c.bf16 %v3207_v23, %v3206_v43 }
 0xd0c   :  { %v2893_v37 = vadd.f32 %v6385_v19, %v2869_v50  ;;  %v4747_v51 = vpop.f32.mrb[100].mxu1  ;;  %4795 = vmatprep.mubr.f32.mxu0 %v2907_v45  ;;  %v3209_v45 = vld [vmem:[#allocation11 + $0x28] sm:$0xff] }
 0xd0d   :  { %v2872_v0 = vmul.f32 %v4747_v51, %v6380_v17  ;;  %v2800_v55 = vpop.f32.mrb[101].mxu1  ;;  %4796 = vmatmul.mubr.f32.vlgmr.msra.gmra.mrb[112].mxu0 %v2908_v48  ;;  %v2910_v2 = vmax.f32 %v2894_v49, 0.0  ;;  %v5435_v50 = vpack.c.bf16 %v3209_v45, %v3208_v15  ;;  %v3210_v48 = vld [vmem:[#allocation11 + $0x30] sm:$0xff]  ;;  %v3211_v49 = vld [vmem:[#allocation11 + $0x38] sm:$0xff]  ;;  %v3212_v51 = vld [vmem:[#allocation11 + $0x40] sm:$0xff] }
 0xd0e   :  { %v2909_v1 = vmax.f32 %v2893_v37, 0.0  ;;  %v2871_v57 = vmul.f32 %v6380_v17, %v2800_v55  ;;  %v5438_v37 = vpack.c.bf16 %v3211_v49, %v3210_v48 }
 0xd0f   :  { %v2896_v3 = vadd.f32 %v6385_v19, %v2872_v0  ;;  %v3213_v0 = vld [vmem:[#allocation11 + $0x48] sm:$0xff] }
 0xd10   :  { %v2895_v40 = vadd.f32 %v6385_v19, %v2871_v57  ;;  %v4750_v4 = vpop.f32.mrb[102].mxu1  ;;  %4798 = vmatprep.mubr.f32.mxu0 %v2909_v1  ;;  %v5441_v55 = vpack.c.bf16 %v3213_v0, %v3212_v51  ;;  %v3214_v1 = vld [vmem:[#allocation11 + $0x50] sm:$0xff]  ;;  %v3215_v57 = vld [vmem:[#allocation11 + $0x58] sm:$0xff] }
 0xd11   :  { %v2874_v9 = vmul.f32 %v4750_v4, %v6380_v17  ;;  %v2810_v5 = vpop.f32.mrb[103].mxu1  ;;  %4799 = vmatmul.mubr.f32.gmra.mrb[114].mxu0 %v2910_v2  ;;  %v2912_v8 = vmax.f32 %v2896_v3, 0.0  ;;  %v5444_v2 = vpack.c.bf16 %v3215_v57, %v3214_v1  ;;  %v3216_v3 = vld [vmem:[#allocation11 + $0x60] sm:$0xff] }
 0xd12   :  { %v2911_v6 = vmax.f32 %v2895_v40, 0.0  ;;  %v2873_v7 = vmul.f32 %v6380_v17, %v2810_v5  ;;  %v3217_v40 = vld [vmem:[#allocation11 + $0x68] sm:$0xff]  ;;  %v3219_v5 = vld [vmem:[#allocation11 + $0x78] sm:$0xff] }
 0xd13   :  { %v2898_v10 = vadd.f32 %v6385_v19, %v2874_v9  ;;  %v5447_v4 = vpack.c.bf16 %v3217_v40, %v3216_v3  ;;  %v3218_v9 = vld [vmem:[#allocation11 + $0x70] sm:$0xff] }
 0xd14   :  { %v2897_v11 = vadd.f32 %v6385_v19, %v2873_v7  ;;  %v4753_v12 = vpop.f32.mrb[104].mxu1  ;;  %4801 = vmatprep.mubr.f32.mxu0 %v2911_v6  ;;  %v5450_v6 = vpack.c.bf16 %v3219_v5, %v3218_v9  ;;  %v6435_v7 = vld [vmem:[%s6516_s7 + $0x4] ss:$0 sm:$0xff]  ;;  %v3298_v9 = vld [vmem:[#allocation13] sm:$0xff]  ;;  %v3299_v5 = vld [vmem:[#allocation13 + $0x8] sm:$0xff] }
 0xd15   :  { %v2876_v13 = vmul.f32 %v4753_v12, %v6380_v17  ;;  %v2820_v16 = vpop.f32.mrb[105].mxu1  ;;  %4802 = vmatmul.mubr.f32.gmra.mrb[116].mxu0 %v2912_v8  ;;  %v2914_v56 = vmax.f32 %v2898_v10, 0.0  ;;  %v6440_v10 = vld [vmem:[%s6517_s8 + $0x4] ss:$0 sm:$0xff] }
 0xd16   :  { %v2913_v47 = vmax.f32 %v2897_v11, 0.0  ;;  %v2875_v52 = vmul.f32 %v6380_v17, %v2820_v16 }
 0xd17   :  { %v2900_v58 = vadd.f32 %v6385_v19, %v2876_v13 }
 0xd18   :  { %v2899_v59 = vadd.f32 %v6385_v19, %v2875_v52  ;;  %v4756_v60 = vpop.f32.mrb[106].mxu1  ;;  %4804 = vmatprep.mubr.f32.mxu0 %v2913_v47 }
 0xd19   :  { %v2878_v61 = vmul.f32 %v4756_v60, %v6380_v17  ;;  %v2830_v62 = vpop.f32.mrb[107].mxu1  ;;  %4805 = vmatmul.mubr.f32.gmra.mrb[118].mxu0 %v2914_v56  ;;  %v2916_v27 = vmax.f32 %v2900_v58, 0.0 }
 0xd1a   :  { %v2915_v25 = vmax.f32 %v2899_v59, 0.0  ;;  %v2877_v26 = vmul.f32 %v6380_v17, %v2830_v62 }
 0xd1b   :  { %v2902_v28 = vadd.f32 %v6385_v19, %v2878_v61 }
 0xd1c   :  { %v2901_v54 = vadd.f32 %v6385_v19, %v2877_v26  ;;  %v4759_v29 = vpop.f32.mrb[108].mxu1  ;;  %4807 = vmatprep.mubr.f32.mxu0 %v2915_v25 }
 0xd1d   :  { %v2880_v14 = vmul.f32 %v4759_v29, %v6380_v17  ;;  %v2840_v30 = vpop.f32.mrb[109].mxu1  ;;  %4808 = vmatmul.mubr.f32.gmra.mrb[120].mxu0 %v2916_v27  ;;  %v2918_v33 = vmax.f32 %v2902_v28, 0.0 }
 0xd1e   :  { %v2917_v31 = vmax.f32 %v2901_v54, 0.0  ;;  %v2879_v32 = vmul.f32 %v6380_v17, %v2840_v30 }
 0xd1f   :  { %v2904_v34 = vadd.f32 %v6385_v19, %v2880_v14 }
 0xd20   :  { %v2903_v36 = vadd.f32 %v6385_v19, %v2879_v32  ;;  %v4762_v38 = vpop.f32.mrb[110].mxu1  ;;  %4810 = vmatprep.mubr.f32.mxu0 %v2917_v31 }
 0xd21   :  { %v2882_v39 = vmul.f32 %v4762_v38, %v6380_v17  ;;  %v2850_v42 = vpop.f32.mrb[111].mxu1  ;;  %4811 = vmatmul.mubr.f32.gmra.mrb[122].mxu0 %v2918_v33  ;;  %v2920_v63 = vmax.f32 %v2904_v34, 0.0 }
 0xd22   :  { %v2919_v44 = vmax.f32 %v2903_v36, 0.0  ;;  %v2881_v46 = vmul.f32 %v6380_v17, %v2850_v42  ;;  %v3204_v17 = vld [vmem:[#allocation11] sm:$0xff] }
 0xd23   :  { %v2906_v35 = vadd.f32 %v6385_v19, %v2882_v39 }
 0xd24   :  { %v2905_v53 = vadd.f32 %v6385_v19, %v2881_v46  ;;  %4813 = vmatprep.mubr.f32.mxu0 %v2919_v44  ;;  %v3205_v19 = vld [vmem:[#allocation11 + $0x8] sm:$0xff] }
 0xd25   :  { %4814 = vmatmul.mubr.f32.gmra.mrb[124].mxu0 %v2920_v63  ;;  %v2922_v20 = vmax.f32 %v2906_v35, 0.0  ;;  %v5429_v22 = vpack.c.bf16 %v3205_v19, %v3204_v17 }
 0xd26   :  { %v2921_v18 = vmax.f32 %v2905_v53, 0.0 }
 0xd27   :  { %5430 = vmatpush3.bf16.msra.mxu0 %v5429_v22 }
 0xd28   :  { %4816 = vmatprep.mubr.f32.mxu0 %v2921_v18  ;;  %5431 = vmatprep.subr.bf16.mxu0 %v5715_v41 }
 0xd29   :  { %4817 = vmatmul.mubr.f32.gmra.mrb[126].mxu0 %v2922_v20 }
 0xd2a   :  { %4886 = vmatprep.mubr.msk.f32.mxu0 %vm5716_vm0, %v5717_v21 }
 0xd2b   :  { %5433 = vmatpush3.bf16.msra.mxu0 %v5432_v24 }
 0xd2c   :  { %5434 = vmatprep.subr.bf16.mxu0 %v5715_v41 }
 0xd2f   :  { %5436 = vmatpush3.bf16.msra.mxu0 %v5435_v50 }
 0xd30   :  { %5437 = vmatprep.subr.bf16.mxu0 %v5715_v41 }
 0xd33   :  { %5439 = vmatpush3.bf16.msra.mxu0 %v5438_v37 }
 0xd34   :  { %5440 = vmatprep.subr.bf16.mxu0 %v5715_v41 }
 0xd37   :  { %5442 = vmatpush3.bf16.msra.mxu0 %v5441_v55 }
 0xd38   :  { %5443 = vmatprep.subr.bf16.mxu0 %v5715_v41 }
 0xd3b   :  { %5445 = vmatpush3.bf16.msra.mxu0 %v5444_v2 }
 0xd3c   :  { %5446 = vmatprep.subr.bf16.mxu0 %v5715_v41 }
 0xd3f   :  { %5448 = vmatpush3.bf16.msra.mxu0 %v5447_v4  ;;  %v3133_v4 = vld [vmem:[#allocation7] sm:$0xff] }
 0xd40   :  { %5449 = vmatprep.subr.bf16.mxu0 %v5715_v41 }
 0xd43   :  { %5451 = vmatpush3.bf16.msra.mxu0 %v5450_v6  ;;  %v3300_v6 = vld [vmem:[#allocation13 + $0x10] sm:$0xff] }
 0xde0   :  { %v4797_v8 = vpop.f32.mrb[112].mxu0 }
 0xde1   :  { %v3094_v11 = vmul.f32 %v4797_v8, %v6435_v7  ;;  %v3006_v12 = vpop.f32.mrb[113].mxu0  ;;  %v3301_v8 = vld [vmem:[#allocation13 + $0x18] sm:$0xff] }
 0xde2   :  { %v3093_v13 = vmul.f32 %v6435_v7, %v3006_v12  ;;  %v3303_v12 = vld [vmem:[#allocation13 + $0x28] sm:$0xff] }
 0xde3   :  { %v3118_v16 = vadd.f32 %v6440_v10, %v3094_v11  ;;  %v5456_v11 = vpack.c.bf16 %v3301_v8, %v3300_v6 }
 0xde4   :  { %v3117_v47 = vadd.f32 %v6440_v10, %v3093_v13  ;;  %v4800_v52 = vpop.f32.mrb[114].mxu0 }
 0xde5   :  { %v3096_v56 = vmul.f32 %v4800_v52, %v6435_v7  ;;  %v3016_v58 = vpop.f32.mrb[115].mxu0 }
 0xde6   :  { %v5405_v59 = vpack.c.bf16 %v3118_v16, %v3117_v47  ;;  %v3095_v60 = vmul.f32 %v6435_v7, %v3016_v58  ;;  %v3304_v16 = vld [vmem:[#allocation13 + $0x30] sm:$0xff]  ;;  %v3305_v47 = vld [vmem:[#allocation13 + $0x38] sm:$0xff] }
 0xde7   :  { %v3120_v61 = vadd.f32 %v6440_v10, %v3096_v56  ;;  %v5462_v52 = vpack.c.bf16 %v3305_v47, %v3304_v16  ;;  %v3307_v56 = vld [vmem:[#allocation13 + $0x48] sm:$0xff] }
 0xde8   :  { %v3119_v62 = vadd.f32 %v6440_v10, %v3095_v60  ;;  %v4803_v25 = vpop.f32.mrb[116].mxu0  ;;  %5406 = vmatpush3.bf16.msra.mxu1 %v5405_v59  ;;  %v3308_v59 = vld [vmem:[#allocation13 + $0x50] sm:$0xff]  ;;  %v3309_v60 = vld [vmem:[#allocation13 + $0x58] sm:$0xff] }
 0xde9   :  { %v3098_v26 = vmul.f32 %v4803_v25, %v6435_v7  ;;  %v3026_v27 = vpop.f32.mrb[117].mxu0  ;;  %5407 = vmatprep.subr.bf16.mxu1 %v5715_v41  ;;  %v3311_v25 = vld [vmem:[#allocation13 + $0x68] sm:$0xff] }
 0xdea   :  { %v5408_v28 = vpack.c.bf16 %v3120_v61, %v3119_v62  ;;  %v3097_v54 = vmul.f32 %v6435_v7, %v3026_v27  ;;  %v5468_v61 = vpack.c.bf16 %v3309_v60, %v3308_v59  ;;  %v3310_v62 = vld [vmem:[#allocation13 + $0x60] sm:$0xff] }
 0xdeb   :  { %v3122_v29 = vadd.f32 %v6440_v10, %v3098_v26  ;;  %v5471_v26 = vpack.c.bf16 %v3311_v25, %v3310_v62 }
 0xdec   :  { %v3121_v14 = vadd.f32 %v6440_v10, %v3097_v54  ;;  %v4806_v30 = vpop.f32.mrb[118].mxu0  ;;  %5409 = vmatpush3.bf16.msra.mxu1 %v5408_v28  ;;  %v3312_v54 = vld [vmem:[#allocation13 + $0x70] sm:$0xff] }
 0xded   :  { %v3100_v31 = vmul.f32 %v4806_v30, %v6435_v7  ;;  %v3036_v32 = vpop.f32.mrb[119].mxu0  ;;  %5410 = vmatprep.subr.bf16.mxu1 %v5715_v41  ;;  %v3446_v30 = vld [vmem:[%s6519_s10] ss:$0 sm:$0xff] }
 0xdee   :  { %v5411_v33 = vpack.c.bf16 %v3122_v29, %v3121_v14  ;;  %v3099_v34 = vmul.f32 %v6435_v7, %v3036_v32  ;;  %v3313_v29 = vld [vmem:[#allocation13 + $0x78] sm:$0xff] }
 0xdef   :  { %v3124_v36 = vadd.f32 %v6440_v10, %v3100_v31  ;;  %v5474_v14 = vpack.c.bf16 %v3313_v29, %v3312_v54 }
 0xdf0   :  { %v3123_v38 = vadd.f32 %v6440_v10, %v3099_v34  ;;  %v4809_v39 = vpop.f32.mrb[120].mxu0  ;;  %5412 = vmatpush3.bf16.msra.mxu1 %v5411_v33 }
 0xdf1   :  { %v3102_v42 = vmul.f32 %v4809_v39, %v6435_v7  ;;  %v3046_v44 = vpop.f32.mrb[121].mxu0  ;;  %5413 = vmatprep.subr.bf16.mxu1 %v5715_v41 }
 0xdf2   :  { %v5414_v46 = vpack.c.bf16 %v3124_v36, %v3123_v38  ;;  %v3101_v63 = vmul.f32 %v6435_v7, %v3046_v44 }
 0xdf3   :  { %v3126_v35 = vadd.f32 %v6440_v10, %v3102_v42 }
 0xdf4   :  { %v3125_v53 = vadd.f32 %v6440_v10, %v3101_v63  ;;  %v4812_v18 = vpop.f32.mrb[122].mxu0  ;;  %5415 = vmatpush3.bf16.msra.mxu1 %v5414_v46 }
 0xdf5   :  { %v3104_v20 = vmul.f32 %v4812_v18, %v6435_v7  ;;  %v3056_v17 = vpop.f32.mrb[123].mxu0  ;;  %5416 = vmatprep.subr.bf16.mxu1 %v5715_v41 }
 0xdf6   :  { %v5417_v19 = vpack.c.bf16 %v3126_v35, %v3125_v53  ;;  %v3103_v43 = vmul.f32 %v6435_v7, %v3056_v17 }
 0xdf7   :  { %v3128_v22 = vadd.f32 %v6440_v10, %v3104_v20 }
 0xdf8   :  { %v3127_v23 = vadd.f32 %v6440_v10, %v3103_v43  ;;  %v4815_v24 = vpop.f32.mrb[124].mxu0  ;;  %5418 = vmatpush3.bf16.msra.mxu1 %v5417_v19 }
 0xdf9   :  { %v3106_v15 = vmul.f32 %v4815_v24, %v6435_v7  ;;  %v3066_v45 = vpop.f32.mrb[125].mxu0  ;;  %5419 = vmatprep.subr.bf16.mxu1 %v5715_v41 }
 0xdfa   :  { %v5420_v50 = vpack.c.bf16 %v3128_v22, %v3127_v23  ;;  %v3105_v48 = vmul.f32 %v6435_v7, %v3066_v45 }
 0xdfb   :  { %v3130_v49 = vadd.f32 %v6440_v10, %v3106_v15 }
 0xdfc   :  { %v3129_v37 = vadd.f32 %v6440_v10, %v3105_v48  ;;  %v4818_v51 = vpop.f32.mrb[126].mxu0  ;;  %5421 = vmatpush3.bf16.msra.mxu1 %v5420_v50 }
 0xdfd   :  { %v3108_v0 = vmul.f32 %v4818_v51, %v6435_v7  ;;  %v3076_v55 = vpop.f32.mrb[127].mxu0  ;;  %5422 = vmatprep.subr.bf16.mxu1 %v5715_v41 }
 0xdfe   :  { %v5423_v1 = vpack.c.bf16 %v3130_v49, %v3129_v37  ;;  %v3107_v57 = vmul.f32 %v6435_v7, %v3076_v55  ;;  %v5453_v7 = vpack.c.bf16 %v3299_v5, %v3298_v9 }
 0xdff   :  { %v3132_v2 = vadd.f32 %v6440_v10, %v3108_v0 }
 0xe00   :  { %v3131_v3 = vadd.f32 %v6440_v10, %v3107_v57  ;;  %5424 = vmatpush3.bf16.msra.mxu1 %v5423_v1  ;;  %v3302_v10 = vld [vmem:[#allocation13 + $0x20] sm:$0xff] }
 0xe01   :  { %5425 = vmatprep.subr.bf16.mxu1 %v5715_v41  ;;  %v5459_v13 = vpack.c.bf16 %v3303_v12, %v3302_v10 }
 0xe02   :  { %v5426_v40 = vpack.c.bf16 %v3132_v2, %v3131_v3 }
 0xe04   :  { %5427 = vmatpush3.bf16.msra.mxu1 %v5426_v40 }
 0xe05   :  { %5452 = vmatprep.subr.bf16.mxu1 %v5715_v41 }
 0xe07   :  { %4852 = vmatmul.mubr.f32.vlgmr.msra.gmra.mrb[112].mxu1 %v3133_v4 }
 0xe08   :  { %4921 = vmatprep.mubr.msk.f32.mxu1 %vm5716_vm0, %v5717_v21  ;;  %5454 = vmatpush3.bf16.msra.mxu1 %v5453_v7  ;;  %v3306_v21 = vld [vmem:[#allocation13 + $0x40] sm:$0xff] }
 0xe09   :  { %5455 = vmatprep.subr.bf16.mxu1 %v5715_v41  ;;  %v5465_v58 = vpack.c.bf16 %v3307_v56, %v3306_v21 }
 0xe0c   :  { %5457 = vmatpush3.bf16.msra.mxu1 %v5456_v11 }
 0xe0d   :  { %5458 = vmatprep.subr.bf16.mxu1 %v5715_v41 }
 0xe10   :  { %5460 = vmatpush3.bf16.msra.mxu1 %v5459_v13 }
 0xe11   :  { %5461 = vmatprep.subr.bf16.mxu1 %v5715_v41 }
 0xe14   :  { %5463 = vmatpush3.bf16.msra.mxu1 %v5462_v52 }
 0xe15   :  { %5464 = vmatprep.subr.bf16.mxu1 %v5715_v41 }
 0xe18   :  { %5466 = vmatpush3.bf16.msra.mxu1 %v5465_v58 }
 0xe19   :  { %5467 = vmatprep.subr.bf16.mxu1 %v5715_v41 }
 0xe1c   :  { %5469 = vmatpush3.bf16.msra.mxu1 %v5468_v61 }
 0xe1d   :  { %5470 = vmatprep.subr.bf16.mxu1 %v5715_v41 }
 0xe20   :  { %5472 = vmatpush3.bf16.msra.mxu1 %v5471_v26 }
 0xe21   :  { %5473 = vmatprep.subr.bf16.mxu1 %v5715_v41  ;;  %v3447_v41 = vld [vmem:[%s6521_s12] ss:$0 sm:$0xff] }
 0xe24   :  { %5475 = vmatpush3.bf16.msra.mxu1 %v5474_v14 }
 0xeda   :  { %v3200_v27 = vpop.f32.mrb[112].mxu1 }
 0xedb   :  { %v4853_v28 = vpop.f32.mrb[113].mxu1  ;;  %4887 = vmatmul.mubr.f32.vlgmr.msra.gmra.mrb[128].mxu0 %v3200_v27 }
 0xfae   :  { %v3293_v31 = vpop.f32.mrb[128].mxu0 }
 0xfaf   :  { %v3294_v32 = vadd.f32 %v3446_v30, %v3293_v31  ;;  %v4888_v33 = vpop.f32.mrb[129].mxu0 }
 0xfb1   :  { %v3297_v34 = vmax.f32 %v3294_v32, 0.0 }
 0xfb3   :  { %4922 = vmatmul.mubr.f32.vlgmr.msra.gmra.mrb[114].mxu1 %v3297_v34 }
0x1086   :  { %v3387_v36 = vpop.f32.mrb[114].mxu1 }
0x1087   :  { %v3388_v38 = vadd.f32 %v3447_v41, %v3387_v36  ;;  %v4923_v39 = vpop.f32.mrb[115].mxu1 }
0x1089   :  { %3391 = vst [vmem:[#allocation14] sm:$0xff] %v3388_v38 }
0x108a   :  { %5685 = shalt.err (!%p5682_p4)
}
0x108b   :  { %s5686_s19 = scalar_lea.hbm %s6522_s13, 128 }
0x108c   :  { %p5687_p5 = scmp.ne.s32.totalorder %s6522_s13, %s5686_s19  ;;  %p5690_p6 = scmp.lt.u32.totalorder %s5686_s19, %s6522_s13 }
0x108e   :  { %p5692_p7 = pnand %p5690_p6, %p5687_p5 }
0x1090   :  { %5695 = shalt.err (!%p5692_p7)
}
0x1091   :  { %3401 = dma.vmem_to_hbm [thread:$0]  %s3399_s17, 128, %s6522_s13, [#allocation4]  }
0x1092   :  { %5704 = dma.done.wait [#allocation4], 128  }
0x1093   :  { %5705 = vsyncadd [#allocation4], 4294967168 }
0x1094   :  { %3405 = vsyncpa [#allocation3], 1 }
0x1095   :  { %3406 = vsyncpa [#allocation6], 1 }
0x1096   :  { %3407 = vsyncpa [#allocation9], 1 }
0x1097   :  { %3408 = vsyncpa [#allocation12], 1 }
0x1098   :  { %3409 = vsyncpa [#allocation4], 1 }

</bundles_post_ra>
